<compile_context>
chip_gen: v6e
topology: v6e:2x2x1
jax: 0.10.0
libtpu: 0.0.40
codegen_flags: <defaults>
</compile_context>

<pallas_src>
import functools
import math

import jax
import jax.numpy as jnp
from jax.experimental import pallas as pl
from jax.experimental.pallas import tpu as pltpu


LRELU_SLOPE = 0.2
LN_EPS = 1e-5
_LANES = 128
_SUB = 8          # sublanes per register-blocked sub-tile (1 f32 vreg / plane)


def _cdiv(a, b):
    return -(-a // b)


def _round_up(x, m):
    return _cdiv(x, m) * m


def weightnet_kernel(layer_dims, nsub, pb_ref, x_ref, o_ref):
    """Fused (Linear -> folded-LayerNorm -> LeakyReLU) stack, channels-first.

    pb_ref : (P, 8, 128) VMEM -- every scalar parameter pre-broadcast to a
             vreg-sized plane, packed per layer as [W'(co*ci), b'(co),
             gamma'(co), beta(co)].
    x_ref  : (C_in, tile, 128) VMEM block  -- dense channel planes.
    o_ref  : (C_out, tile, 128) VMEM block.
    """
    c_in = layer_dims[0]
    c_out = layer_dims[-1]

    def sub_tile(t, carry):
        r0 = pl.multiple_of(t * _SUB, _SUB)
        cur = [x_ref[i, pl.ds(r0, _SUB), :].astype(jnp.float32)
               for i in range(c_in)]

        off = 0
        for li in range(len(layer_dims) - 1):
            ci, co = layer_dims[li], layer_dims[li + 1]
            w_off = off
            b_off = w_off + co * ci
            g_off = b_off + co
            be_off = g_off + co
            off = be_off + co

            # Linear with host-centered weights/bias -> already-centered
            # activations (no runtime mean).  Vreg-resident vector FMAs.
            cent = []
            for o in range(co):
                acc = pb_ref[w_off + o * ci] * cur[0]
                for i in range(1, ci):
                    acc = acc + pb_ref[w_off + o * ci + i] * cur[i]
                cent.append(acc + pb_ref[b_off + o])

            # Folded LayerNorm: inv = rsqrt(sum_c cent_c^2 + co*eps);
            # gamma was pre-scaled by sqrt(co) host-side (torch-biased var).
            var_sum = cent[0] * cent[0]
            for o in range(1, co):
                var_sum = var_sum + cent[o] * cent[o]
            inv = jax.lax.rsqrt(var_sum + float(co) * LN_EPS)

            nxt = []
            for o in range(co):
                y = cent[o] * (inv * pb_ref[g_off + o]) + pb_ref[be_off + o]
                # LeakyReLU(0.2) == max(y, 0.2*y) since 0 < slope < 1.
                nxt.append(jnp.maximum(y, LRELU_SLOPE * y))
            cur = nxt

        for o in range(c_out):
            o_ref[o, pl.ds(r0, _SUB), :] = cur[o].astype(o_ref.dtype)
        return carry

    jax.lax.fori_loop(0, nsub, sub_tile, 0)


def _pack_params(params):
    """Fold LayerNorm into the Linear params and flatten to one f32 vector.

    Per layer the slab holds [W' (co*ci row-major), b' (co), gamma' (co),
    beta (co)] with  W' = W - mean_over_out_channels(W),  b' = b - mean(b),
    gamma' = gamma * sqrt(co)   (eps is scaled by co inside the kernel).
    """
    flat = []
    for (w, b, g, be) in params:
        w = w.astype(jnp.float32)
        b = b.astype(jnp.float32)
        co = int(w.shape[0])
        w_c = w - jnp.mean(w, axis=0, keepdims=True)
        b_c = b - jnp.mean(b)
        g_s = g.astype(jnp.float32) * math.sqrt(co)
        flat += [w_c.reshape(-1), b_c.reshape(-1), g_s.reshape(-1),
                 be.astype(jnp.float32).reshape(-1)]
    return jnp.concatenate(flat)


def weightnet_forward(x, params, *, tile_s=256, out_dtype=jnp.bfloat16,
                      channels_first_output=False):
    """x: (..., C_in).  Fused WeightNet forward.

    Returns (..., C_out) by default (bf16), or (C_out, ...) with no wrapper
    transpose when channels_first_output=True (for fused PointConv consumers).
    """
    lead = x.shape[:-1]
    c_in = int(x.shape[-1])
    layer_dims = (c_in,) + tuple(int(w.shape[0]) for (w, _, _, _) in params)
    c_out = layer_dims[-1]

    params_flat = _pack_params(params)
    n_par = int(params_flat.shape[0])
    # Pre-broadcast every scalar parameter to an (8,128) plane: each use in
    # the kernel is then a single full-vreg load (no in-loop broadcasts).
    params_bcast = jnp.broadcast_to(params_flat[:, None, None],
                                    (n_par, _SUB, _LANES))

    m = int(math.prod(lead)) if lead else 1
    s = _cdiv(m, _LANES)                         # 128-lane row groups
    n_tiles = _cdiv(s, tile_s)
    if n_tiles < 2 and s >= 2 * _SUB:
        n_tiles = 2                              # both v7x TensorCores engage
    tile = _round_up(_cdiv(s, n_tiles), _SUB)    # balanced, multiple of 8
    n_tiles = _cdiv(s, tile)
    s_pad = n_tiles * tile
    m_pad = s_pad * _LANES

    x2 = x.reshape(m, c_in)                      # keep caller dtype (bf16 ok)
    if m_pad != m:
        x2 = jnp.pad(x2, ((0, m_pad - m), (0, 0)))   # zero rows, sliced later
    # Channels-first: each channel becomes a dense (s_pad, 128) plane.  The
    # input-side transpose is cheap (C_in is tiny vs C_out).
    x_cf = x2.T.reshape(c_in, s_pad, _LANES)

    kernel = functools.partial(weightnet_kernel, layer_dims, tile // _SUB)

    out_cf = pl.pallas_call(
        kernel,
        out_shape=jax.ShapeDtypeStruct((c_out, s_pad, _LANES), out_dtype),
        grid_spec=pltpu.PrefetchScalarGridSpec(
            num_scalar_prefetch=0,
            grid=(n_tiles,),
            in_specs=[
                # Constant block index -> parameter planes stay VMEM-resident
                # across grid steps (fetched once per core).
                pl.BlockSpec((n_par, _SUB, _LANES), lambda i: (0, 0, 0)),
                pl.BlockSpec((c_in, tile, _LANES), lambda i: (0, i, 0)),
            ],
            out_specs=pl.BlockSpec((c_out, tile, _LANES), lambda i: (0, i, 0)),
        ),
        compiler_params=pltpu.CompilerParams(
            dimension_semantics=("parallel",),    # megacore shard on v7x
        ),
    )(params_bcast, x_cf)

    if channels_first_output:
        # No wrapper transpose: PointConv's next contraction over the nsample
        # axis can consume the (C_out, M) operand directly.
        out = out_cf.reshape(c_out, m_pad)[:, :m]
        return out.reshape((c_out,) + lead)

    # TODO(synk): fold this remaining un-transpose (one extra HBM pass over the
    # bf16 output) into the kernel with an XLU repack, or fuse the downstream
    # PointConv matmul so the weight tensor never round-trips HBM.
    out = out_cf.reshape(c_out, m_pad).T[:m]
    return out.reshape(lead + (c_out,))


def init_weightnet_params(key, in_channel, out_channel, hidden_unit=(8, 8)):
    """Synthetic init. Linear weight stored (out_features, in_features) like
    torch; LayerNorm gamma ~ 1 + noise, beta small (affine path exercised)."""
    dims = [in_channel, *hidden_unit, out_channel]
    params = []
    for i in range(len(dims) - 1):
        fan_in, fan_out = dims[i], dims[i + 1]
        key, kw, kb, kg, kbe = jax.random.split(key, 5)
        bound = 1.0 / (fan_in ** 0.5)
        w = jax.random.uniform(kw, (fan_out, fan_in), jnp.float32, -bound, bound)
        b = jax.random.uniform(kb, (fan_out,), jnp.float32, -bound, bound)
        gamma = 1.0 + 0.1 * jax.random.normal(kg, (fan_out,), jnp.float32)
        beta = 0.1 * jax.random.normal(kbe, (fan_out,), jnp.float32)
        params.append((w, b, gamma, beta))
    return params


def weightnet_reference(x, params):
    """Pure-JAX mirror of the PyTorch forward, for validation."""
    h = x.astype(jnp.float32)
    for (w, b, gamma, beta) in params:
        h = jnp.dot(h, w.T) + b
        mean = jnp.mean(h, axis=-1, keepdims=True)
        var = jnp.mean((h - mean) ** 2, axis=-1, keepdims=True)
        h = (h - mean) / jnp.sqrt(var + LN_EPS) * gamma + beta
        h = jnp.where(h >= 0.0, h, LRELU_SLOPE * h)
    return h


if __name__ == "__main__":
    key = jax.random.PRNGKey(0)
    kx, kp = jax.random.split(key)

    # PointConv-style input: (B, npoint, nsample, in_channel) = relative xyz.
    B, N, K, C_IN, C_OUT = 2, 16, 8, 3, 16
    x = jax.random.normal(kx, (B, N, K, C_IN), jnp.float32)
    params = init_weightnet_params(kp, C_IN, C_OUT, hidden_unit=(8, 8))

    ref = weightnet_reference(x, params)

    # 1) f32-output path: must match torch semantics tightly.
    out_f32 = jax.block_until_ready(
        weightnet_forward(x, params, out_dtype=jnp.float32))
    assert out_f32.shape == (B, N, K, C_OUT)
    assert jnp.allclose(out_f32, ref, atol=1e-4, rtol=1e-4), "f32 path mismatch"

    # 2) Default perf path: bf16 output (half the output HBM traffic).
    out_bf16 = jax.block_until_ready(weightnet_forward(x, params))
    assert out_bf16.dtype == jnp.bfloat16
    assert jnp.allclose(out_bf16.astype(jnp.float32), ref,
                        atol=5e-2, rtol=5e-2), "bf16 path mismatch"

    # 3) Channels-first output (no wrapper transpose) for fused consumers.
    out_cf = jax.block_until_ready(
        weightnet_forward(x, params, out_dtype=jnp.float32,
                          channels_first_output=True))
    assert out_cf.shape == (C_OUT, B, N, K)
    assert jnp.allclose(jnp.moveaxis(out_cf, 0, -1), ref,
                        atol=1e-4, rtol=1e-4), "channels-first path mismatch"

    print("KERNEL_OK")
</pallas_src>

<mosaic_0001>
module attributes {stable_mosaic.version = 11 : i64} {
  func.func @weightnet_kernel(%arg0: i32, %arg1: memref<312x8x128xf32, #tpu.memory_space<vmem>>, %arg2: memref<3x8x128xf32, #tpu.memory_space<vmem>>, %arg3: memref<16x8x128xf32, #tpu.memory_space<vmem>>) attributes {dimension_semantics = [#tpu.dimension_semantics<parallel>], iteration_bounds = array<i64: 1>, scalar_prefetch = 0 : i64, scratch_operands = 0 : i64, tpu.core_type = #tpu.core_type<tc>, window_params = [{pipeline_mode = #tpu.pipeline_mode<synchronous>, transform_indices = @transform_0, window_bounds = array<i64: 312, 8, 128>}, {transform_indices = @transform_1, window_bounds = array<i64: 3, 8, 128>}, {transform_indices = @transform_2, window_bounds = array<i64: 16, 8, 128>}]} {
    %c0_i32 = arith.constant 0 : i32
    %c8_i32 = arith.constant 8 : i32
    %0 = arith.muli %c0_i32, %c8_i32 : i32
    %1 = tpu.assume_multiple %0, 8 : i32
    %c0 = arith.constant 0 : index
    %2 = arith.index_cast %1 : i32 to index
    %c0_0 = arith.constant 0 : index
    %3 = vector.load %arg2[%c0, %2, %c0_0] : memref<3x8x128xf32, #tpu.memory_space<vmem>>, vector<1x8x128xf32>
    %4 = vector.shape_cast %3 : vector<1x8x128xf32> to vector<8x128xf32>
    %c1 = arith.constant 1 : index
    %5 = arith.index_cast %1 : i32 to index
    %c0_1 = arith.constant 0 : index
    %6 = vector.load %arg2[%c1, %5, %c0_1] : memref<3x8x128xf32, #tpu.memory_space<vmem>>, vector<1x8x128xf32>
    %7 = vector.shape_cast %6 : vector<1x8x128xf32> to vector<8x128xf32>
    %c2 = arith.constant 2 : index
    %8 = arith.index_cast %1 : i32 to index
    %c0_2 = arith.constant 0 : index
    %9 = vector.load %arg2[%c2, %8, %c0_2] : memref<3x8x128xf32, #tpu.memory_space<vmem>>, vector<1x8x128xf32>
    %10 = vector.shape_cast %9 : vector<1x8x128xf32> to vector<8x128xf32>
    %c0_3 = arith.constant 0 : index
    %c0_4 = arith.constant 0 : index
    %c0_5 = arith.constant 0 : index
    %11 = vector.load %arg1[%c0_3, %c0_4, %c0_5] : memref<312x8x128xf32, #tpu.memory_space<vmem>>, vector<1x8x128xf32>
    %12 = vector.shape_cast %11 : vector<1x8x128xf32> to vector<8x128xf32>
    %13 = arith.mulf %12, %4 : vector<8x128xf32>
    %c1_6 = arith.constant 1 : index
    %c0_7 = arith.constant 0 : index
    %c0_8 = arith.constant 0 : index
    %14 = vector.load %arg1[%c1_6, %c0_7, %c0_8] : memref<312x8x128xf32, #tpu.memory_space<vmem>>, vector<1x8x128xf32>
    %15 = vector.shape_cast %14 : vector<1x8x128xf32> to vector<8x128xf32>
    %16 = arith.mulf %15, %7 : vector<8x128xf32>
    %17 = arith.addf %13, %16 : vector<8x128xf32>
    %c2_9 = arith.constant 2 : index
    %c0_10 = arith.constant 0 : index
    %c0_11 = arith.constant 0 : index
    %18 = vector.load %arg1[%c2_9, %c0_10, %c0_11] : memref<312x8x128xf32, #tpu.memory_space<vmem>>, vector<1x8x128xf32>
    %19 = vector.shape_cast %18 : vector<1x8x128xf32> to vector<8x128xf32>
    %20 = arith.mulf %19, %10 : vector<8x128xf32>
    %21 = arith.addf %17, %20 : vector<8x128xf32>
    %c24 = arith.constant 24 : index
    %c0_12 = arith.constant 0 : index
    %c0_13 = arith.constant 0 : index
    %22 = vector.load %arg1[%c24, %c0_12, %c0_13] : memref<312x8x128xf32, #tpu.memory_space<vmem>>, vector<1x8x128xf32>
    %23 = vector.shape_cast %22 : vector<1x8x128xf32> to vector<8x128xf32>
    %24 = arith.addf %21, %23 : vector<8x128xf32>
    %c3 = arith.constant 3 : index
    %c0_14 = arith.constant 0 : index
    %c0_15 = arith.constant 0 : index
    %25 = vector.load %arg1[%c3, %c0_14, %c0_15] : memref<312x8x128xf32, #tpu.memory_space<vmem>>, vector<1x8x128xf32>
    %26 = vector.shape_cast %25 : vector<1x8x128xf32> to vector<8x128xf32>
    %27 = arith.mulf %26, %4 : vector<8x128xf32>
    %c4 = arith.constant 4 : index
    %c0_16 = arith.constant 0 : index
    %c0_17 = arith.constant 0 : index
    %28 = vector.load %arg1[%c4, %c0_16, %c0_17] : memref<312x8x128xf32, #tpu.memory_space<vmem>>, vector<1x8x128xf32>
    %29 = vector.shape_cast %28 : vector<1x8x128xf32> to vector<8x128xf32>
    %30 = arith.mulf %29, %7 : vector<8x128xf32>
    %31 = arith.addf %27, %30 : vector<8x128xf32>
    %c5 = arith.constant 5 : index
    %c0_18 = arith.constant 0 : index
    %c0_19 = arith.constant 0 : index
    %32 = vector.load %arg1[%c5, %c0_18, %c0_19] : memref<312x8x128xf32, #tpu.memory_space<vmem>>, vector<1x8x128xf32>
    %33 = vector.shape_cast %32 : vector<1x8x128xf32> to vector<8x128xf32>
    %34 = arith.mulf %33, %10 : vector<8x128xf32>
    %35 = arith.addf %31, %34 : vector<8x128xf32>
    %c25 = arith.constant 25 : index
    %c0_20 = arith.constant 0 : index
    %c0_21 = arith.constant 0 : index
    %36 = vector.load %arg1[%c25, %c0_20, %c0_21] : memref<312x8x128xf32, #tpu.memory_space<vmem>>, vector<1x8x128xf32>
    %37 = vector.shape_cast %36 : vector<1x8x128xf32> to vector<8x128xf32>
    %38 = arith.addf %35, %37 : vector<8x128xf32>
    %c6 = arith.constant 6 : index
    %c0_22 = arith.constant 0 : index
    %c0_23 = arith.constant 0 : index
    %39 = vector.load %arg1[%c6, %c0_22, %c0_23] : memref<312x8x128xf32, #tpu.memory_space<vmem>>, vector<1x8x128xf32>
    %40 = vector.shape_cast %39 : vector<1x8x128xf32> to vector<8x128xf32>
    %41 = arith.mulf %40, %4 : vector<8x128xf32>
    %c7 = arith.constant 7 : index
    %c0_24 = arith.constant 0 : index
    %c0_25 = arith.constant 0 : index
    %42 = vector.load %arg1[%c7, %c0_24, %c0_25] : memref<312x8x128xf32, #tpu.memory_space<vmem>>, vector<1x8x128xf32>
    %43 = vector.shape_cast %42 : vector<1x8x128xf32> to vector<8x128xf32>
    %44 = arith.mulf %43, %7 : vector<8x128xf32>
    %45 = arith.addf %41, %44 : vector<8x128xf32>
    %c8 = arith.constant 8 : index
    %c0_26 = arith.constant 0 : index
    %c0_27 = arith.constant 0 : index
    %46 = vector.load %arg1[%c8, %c0_26, %c0_27] : memref<312x8x128xf32, #tpu.memory_space<vmem>>, vector<1x8x128xf32>
    %47 = vector.shape_cast %46 : vector<1x8x128xf32> to vector<8x128xf32>
    %48 = arith.mulf %47, %10 : vector<8x128xf32>
    %49 = arith.addf %45, %48 : vector<8x128xf32>
    %c26 = arith.constant 26 : index
    %c0_28 = arith.constant 0 : index
    %c0_29 = arith.constant 0 : index
    %50 = vector.load %arg1[%c26, %c0_28, %c0_29] : memref<312x8x128xf32, #tpu.memory_space<vmem>>, vector<1x8x128xf32>
    %51 = vector.shape_cast %50 : vector<1x8x128xf32> to vector<8x128xf32>
    %52 = arith.addf %49, %51 : vector<8x128xf32>
    %c9 = arith.constant 9 : index
    %c0_30 = arith.constant 0 : index
    %c0_31 = arith.constant 0 : index
    %53 = vector.load %arg1[%c9, %c0_30, %c0_31] : memref<312x8x128xf32, #tpu.memory_space<vmem>>, vector<1x8x128xf32>
    %54 = vector.shape_cast %53 : vector<1x8x128xf32> to vector<8x128xf32>
    %55 = arith.mulf %54, %4 : vector<8x128xf32>
    %c10 = arith.constant 10 : index
    %c0_32 = arith.constant 0 : index
    %c0_33 = arith.constant 0 : index
    %56 = vector.load %arg1[%c10, %c0_32, %c0_33] : memref<312x8x128xf32, #tpu.memory_space<vmem>>, vector<1x8x128xf32>
    %57 = vector.shape_cast %56 : vector<1x8x128xf32> to vector<8x128xf32>
    %58 = arith.mulf %57, %7 : vector<8x128xf32>
    %59 = arith.addf %55, %58 : vector<8x128xf32>
    %c11 = arith.constant 11 : index
    %c0_34 = arith.constant 0 : index
    %c0_35 = arith.constant 0 : index
    %60 = vector.load %arg1[%c11, %c0_34, %c0_35] : memref<312x8x128xf32, #tpu.memory_space<vmem>>, vector<1x8x128xf32>
    %61 = vector.shape_cast %60 : vector<1x8x128xf32> to vector<8x128xf32>
    %62 = arith.mulf %61, %10 : vector<8x128xf32>
    %63 = arith.addf %59, %62 : vector<8x128xf32>
    %c27 = arith.constant 27 : index
    %c0_36 = arith.constant 0 : index
    %c0_37 = arith.constant 0 : index
    %64 = vector.load %arg1[%c27, %c0_36, %c0_37] : memref<312x8x128xf32, #tpu.memory_space<vmem>>, vector<1x8x128xf32>
    %65 = vector.shape_cast %64 : vector<1x8x128xf32> to vector<8x128xf32>
    %66 = arith.addf %63, %65 : vector<8x128xf32>
    %c12 = arith.constant 12 : index
    %c0_38 = arith.constant 0 : index
    %c0_39 = arith.constant 0 : index
    %67 = vector.load %arg1[%c12, %c0_38, %c0_39] : memref<312x8x128xf32, #tpu.memory_space<vmem>>, vector<1x8x128xf32>
    %68 = vector.shape_cast %67 : vector<1x8x128xf32> to vector<8x128xf32>
    %69 = arith.mulf %68, %4 : vector<8x128xf32>
    %c13 = arith.constant 13 : index
    %c0_40 = arith.constant 0 : index
    %c0_41 = arith.constant 0 : index
    %70 = vector.load %arg1[%c13, %c0_40, %c0_41] : memref<312x8x128xf32, #tpu.memory_space<vmem>>, vector<1x8x128xf32>
    %71 = vector.shape_cast %70 : vector<1x8x128xf32> to vector<8x128xf32>
    %72 = arith.mulf %71, %7 : vector<8x128xf32>
    %73 = arith.addf %69, %72 : vector<8x128xf32>
    %c14 = arith.constant 14 : index
    %c0_42 = arith.constant 0 : index
    %c0_43 = arith.constant 0 : index
    %74 = vector.load %arg1[%c14, %c0_42, %c0_43] : memref<312x8x128xf32, #tpu.memory_space<vmem>>, vector<1x8x128xf32>
    %75 = vector.shape_cast %74 : vector<1x8x128xf32> to vector<8x128xf32>
    %76 = arith.mulf %75, %10 : vector<8x128xf32>
    %77 = arith.addf %73, %76 : vector<8x128xf32>
    %c28 = arith.constant 28 : index
    %c0_44 = arith.constant 0 : index
    %c0_45 = arith.constant 0 : index
    %78 = vector.load %arg1[%c28, %c0_44, %c0_45] : memref<312x8x128xf32, #tpu.memory_space<vmem>>, vector<1x8x128xf32>
    %79 = vector.shape_cast %78 : vector<1x8x128xf32> to vector<8x128xf32>
    %80 = arith.addf %77, %79 : vector<8x128xf32>
    %c15 = arith.constant 15 : index
    %c0_46 = arith.constant 0 : index
    %c0_47 = arith.constant 0 : index
    %81 = vector.load %arg1[%c15, %c0_46, %c0_47] : memref<312x8x128xf32, #tpu.memory_space<vmem>>, vector<1x8x128xf32>
    %82 = vector.shape_cast %81 : vector<1x8x128xf32> to vector<8x128xf32>
    %83 = arith.mulf %82, %4 : vector<8x128xf32>
    %c16 = arith.constant 16 : index
    %c0_48 = arith.constant 0 : index
    %c0_49 = arith.constant 0 : index
    %84 = vector.load %arg1[%c16, %c0_48, %c0_49] : memref<312x8x128xf32, #tpu.memory_space<vmem>>, vector<1x8x128xf32>
    %85 = vector.shape_cast %84 : vector<1x8x128xf32> to vector<8x128xf32>
    %86 = arith.mulf %85, %7 : vector<8x128xf32>
    %87 = arith.addf %83, %86 : vector<8x128xf32>
    %c17 = arith.constant 17 : index
    %c0_50 = arith.constant 0 : index
    %c0_51 = arith.constant 0 : index
    %88 = vector.load %arg1[%c17, %c0_50, %c0_51] : memref<312x8x128xf32, #tpu.memory_space<vmem>>, vector<1x8x128xf32>
    %89 = vector.shape_cast %88 : vector<1x8x128xf32> to vector<8x128xf32>
    %90 = arith.mulf %89, %10 : vector<8x128xf32>
    %91 = arith.addf %87, %90 : vector<8x128xf32>
    %c29 = arith.constant 29 : index
    %c0_52 = arith.constant 0 : index
    %c0_53 = arith.constant 0 : index
    %92 = vector.load %arg1[%c29, %c0_52, %c0_53] : memref<312x8x128xf32, #tpu.memory_space<vmem>>, vector<1x8x128xf32>
    %93 = vector.shape_cast %92 : vector<1x8x128xf32> to vector<8x128xf32>
    %94 = arith.addf %91, %93 : vector<8x128xf32>
    %c18 = arith.constant 18 : index
    %c0_54 = arith.constant 0 : index
    %c0_55 = arith.constant 0 : index
    %95 = vector.load %arg1[%c18, %c0_54, %c0_55] : memref<312x8x128xf32, #tpu.memory_space<vmem>>, vector<1x8x128xf32>
    %96 = vector.shape_cast %95 : vector<1x8x128xf32> to vector<8x128xf32>
    %97 = arith.mulf %96, %4 : vector<8x128xf32>
    %c19 = arith.constant 19 : index
    %c0_56 = arith.constant 0 : index
    %c0_57 = arith.constant 0 : index
    %98 = vector.load %arg1[%c19, %c0_56, %c0_57] : memref<312x8x128xf32, #tpu.memory_space<vmem>>, vector<1x8x128xf32>
    %99 = vector.shape_cast %98 : vector<1x8x128xf32> to vector<8x128xf32>
    %100 = arith.mulf %99, %7 : vector<8x128xf32>
    %101 = arith.addf %97, %100 : vector<8x128xf32>
    %c20 = arith.constant 20 : index
    %c0_58 = arith.constant 0 : index
    %c0_59 = arith.constant 0 : index
    %102 = vector.load %arg1[%c20, %c0_58, %c0_59] : memref<312x8x128xf32, #tpu.memory_space<vmem>>, vector<1x8x128xf32>
    %103 = vector.shape_cast %102 : vector<1x8x128xf32> to vector<8x128xf32>
    %104 = arith.mulf %103, %10 : vector<8x128xf32>
    %105 = arith.addf %101, %104 : vector<8x128xf32>
    %c30 = arith.constant 30 : index
    %c0_60 = arith.constant 0 : index
    %c0_61 = arith.constant 0 : index
    %106 = vector.load %arg1[%c30, %c0_60, %c0_61] : memref<312x8x128xf32, #tpu.memory_space<vmem>>, vector<1x8x128xf32>
    %107 = vector.shape_cast %106 : vector<1x8x128xf32> to vector<8x128xf32>
    %108 = arith.addf %105, %107 : vector<8x128xf32>
    %c21 = arith.constant 21 : index
    %c0_62 = arith.constant 0 : index
    %c0_63 = arith.constant 0 : index
    %109 = vector.load %arg1[%c21, %c0_62, %c0_63] : memref<312x8x128xf32, #tpu.memory_space<vmem>>, vector<1x8x128xf32>
    %110 = vector.shape_cast %109 : vector<1x8x128xf32> to vector<8x128xf32>
    %111 = arith.mulf %110, %4 : vector<8x128xf32>
    %c22 = arith.constant 22 : index
    %c0_64 = arith.constant 0 : index
    %c0_65 = arith.constant 0 : index
    %112 = vector.load %arg1[%c22, %c0_64, %c0_65] : memref<312x8x128xf32, #tpu.memory_space<vmem>>, vector<1x8x128xf32>
    %113 = vector.shape_cast %112 : vector<1x8x128xf32> to vector<8x128xf32>
    %114 = arith.mulf %113, %7 : vector<8x128xf32>
    %115 = arith.addf %111, %114 : vector<8x128xf32>
    %c23 = arith.constant 23 : index
    %c0_66 = arith.constant 0 : index
    %c0_67 = arith.constant 0 : index
    %116 = vector.load %arg1[%c23, %c0_66, %c0_67] : memref<312x8x128xf32, #tpu.memory_space<vmem>>, vector<1x8x128xf32>
    %117 = vector.shape_cast %116 : vector<1x8x128xf32> to vector<8x128xf32>
    %118 = arith.mulf %117, %10 : vector<8x128xf32>
    %119 = arith.addf %115, %118 : vector<8x128xf32>
    %c31 = arith.constant 31 : index
    %c0_68 = arith.constant 0 : index
    %c0_69 = arith.constant 0 : index
    %120 = vector.load %arg1[%c31, %c0_68, %c0_69] : memref<312x8x128xf32, #tpu.memory_space<vmem>>, vector<1x8x128xf32>
    %121 = vector.shape_cast %120 : vector<1x8x128xf32> to vector<8x128xf32>
    %122 = arith.addf %119, %121 : vector<8x128xf32>
    %123 = arith.mulf %24, %24 : vector<8x128xf32>
    %124 = arith.mulf %38, %38 : vector<8x128xf32>
    %125 = arith.addf %123, %124 : vector<8x128xf32>
    %126 = arith.mulf %52, %52 : vector<8x128xf32>
    %127 = arith.addf %125, %126 : vector<8x128xf32>
    %128 = arith.mulf %66, %66 : vector<8x128xf32>
    %129 = arith.addf %127, %128 : vector<8x128xf32>
    %130 = arith.mulf %80, %80 : vector<8x128xf32>
    %131 = arith.addf %129, %130 : vector<8x128xf32>
    %132 = arith.mulf %94, %94 : vector<8x128xf32>
    %133 = arith.addf %131, %132 : vector<8x128xf32>
    %134 = arith.mulf %108, %108 : vector<8x128xf32>
    %135 = arith.addf %133, %134 : vector<8x128xf32>
    %136 = arith.mulf %122, %122 : vector<8x128xf32>
    %137 = arith.addf %135, %136 : vector<8x128xf32>
    %cst = arith.constant 8.000000e-05 : f32
    %138 = vector.broadcast %cst : f32 to vector<8x128xf32>
    %139 = arith.addf %137, %138 : vector<8x128xf32>
    %140 = math.rsqrt %139 : vector<8x128xf32>
    %c32 = arith.constant 32 : index
    %c0_70 = arith.constant 0 : index
    %c0_71 = arith.constant 0 : index
    %141 = vector.load %arg1[%c32, %c0_70, %c0_71] : memref<312x8x128xf32, #tpu.memory_space<vmem>>, vector<1x8x128xf32>
    %142 = vector.shape_cast %141 : vector<1x8x128xf32> to vector<8x128xf32>
    %143 = arith.mulf %140, %142 : vector<8x128xf32>
    %144 = arith.mulf %24, %143 : vector<8x128xf32>
    %c40 = arith.constant 40 : index
    %c0_72 = arith.constant 0 : index
    %c0_73 = arith.constant 0 : index
    %145 = vector.load %arg1[%c40, %c0_72, %c0_73] : memref<312x8x128xf32, #tpu.memory_space<vmem>>, vector<1x8x128xf32>
    %146 = vector.shape_cast %145 : vector<1x8x128xf32> to vector<8x128xf32>
    %147 = arith.addf %144, %146 : vector<8x128xf32>
    %cst_74 = arith.constant 2.000000e-01 : f32
    %148 = vector.broadcast %cst_74 : f32 to vector<8x128xf32>
    %149 = arith.mulf %148, %147 : vector<8x128xf32>
    %150 = arith.maximumf %147, %149 : vector<8x128xf32>
    %c33 = arith.constant 33 : index
    %c0_75 = arith.constant 0 : index
    %c0_76 = arith.constant 0 : index
    %151 = vector.load %arg1[%c33, %c0_75, %c0_76] : memref<312x8x128xf32, #tpu.memory_space<vmem>>, vector<1x8x128xf32>
    %152 = vector.shape_cast %151 : vector<1x8x128xf32> to vector<8x128xf32>
    %153 = arith.mulf %140, %152 : vector<8x128xf32>
    %154 = arith.mulf %38, %153 : vector<8x128xf32>
    %c41 = arith.constant 41 : index
    %c0_77 = arith.constant 0 : index
    %c0_78 = arith.constant 0 : index
    %155 = vector.load %arg1[%c41, %c0_77, %c0_78] : memref<312x8x128xf32, #tpu.memory_space<vmem>>, vector<1x8x128xf32>
    %156 = vector.shape_cast %155 : vector<1x8x128xf32> to vector<8x128xf32>
    %157 = arith.addf %154, %156 : vector<8x128xf32>
    %cst_79 = arith.constant 2.000000e-01 : f32
    %158 = vector.broadcast %cst_79 : f32 to vector<8x128xf32>
    %159 = arith.mulf %158, %157 : vector<8x128xf32>
    %160 = arith.maximumf %157, %159 : vector<8x128xf32>
    %c34 = arith.constant 34 : index
    %c0_80 = arith.constant 0 : index
    %c0_81 = arith.constant 0 : index
    %161 = vector.load %arg1[%c34, %c0_80, %c0_81] : memref<312x8x128xf32, #tpu.memory_space<vmem>>, vector<1x8x128xf32>
    %162 = vector.shape_cast %161 : vector<1x8x128xf32> to vector<8x128xf32>
    %163 = arith.mulf %140, %162 : vector<8x128xf32>
    %164 = arith.mulf %52, %163 : vector<8x128xf32>
    %c42 = arith.constant 42 : index
    %c0_82 = arith.constant 0 : index
    %c0_83 = arith.constant 0 : index
    %165 = vector.load %arg1[%c42, %c0_82, %c0_83] : memref<312x8x128xf32, #tpu.memory_space<vmem>>, vector<1x8x128xf32>
    %166 = vector.shape_cast %165 : vector<1x8x128xf32> to vector<8x128xf32>
    %167 = arith.addf %164, %166 : vector<8x128xf32>
    %cst_84 = arith.constant 2.000000e-01 : f32
    %168 = vector.broadcast %cst_84 : f32 to vector<8x128xf32>
    %169 = arith.mulf %168, %167 : vector<8x128xf32>
    %170 = arith.maximumf %167, %169 : vector<8x128xf32>
    %c35 = arith.constant 35 : index
    %c0_85 = arith.constant 0 : index
    %c0_86 = arith.constant 0 : index
    %171 = vector.load %arg1[%c35, %c0_85, %c0_86] : memref<312x8x128xf32, #tpu.memory_space<vmem>>, vector<1x8x128xf32>
    %172 = vector.shape_cast %171 : vector<1x8x128xf32> to vector<8x128xf32>
    %173 = arith.mulf %140, %172 : vector<8x128xf32>
    %174 = arith.mulf %66, %173 : vector<8x128xf32>
    %c43 = arith.constant 43 : index
    %c0_87 = arith.constant 0 : index
    %c0_88 = arith.constant 0 : index
    %175 = vector.load %arg1[%c43, %c0_87, %c0_88] : memref<312x8x128xf32, #tpu.memory_space<vmem>>, vector<1x8x128xf32>
    %176 = vector.shape_cast %175 : vector<1x8x128xf32> to vector<8x128xf32>
    %177 = arith.addf %174, %176 : vector<8x128xf32>
    %cst_89 = arith.constant 2.000000e-01 : f32
    %178 = vector.broadcast %cst_89 : f32 to vector<8x128xf32>
    %179 = arith.mulf %178, %177 : vector<8x128xf32>
    %180 = arith.maximumf %177, %179 : vector<8x128xf32>
    %c36 = arith.constant 36 : index
    %c0_90 = arith.constant 0 : index
    %c0_91 = arith.constant 0 : index
    %181 = vector.load %arg1[%c36, %c0_90, %c0_91] : memref<312x8x128xf32, #tpu.memory_space<vmem>>, vector<1x8x128xf32>
    %182 = vector.shape_cast %181 : vector<1x8x128xf32> to vector<8x128xf32>
    %183 = arith.mulf %140, %182 : vector<8x128xf32>
    %184 = arith.mulf %80, %183 : vector<8x128xf32>
    %c44 = arith.constant 44 : index
    %c0_92 = arith.constant 0 : index
    %c0_93 = arith.constant 0 : index
    %185 = vector.load %arg1[%c44, %c0_92, %c0_93] : memref<312x8x128xf32, #tpu.memory_space<vmem>>, vector<1x8x128xf32>
    %186 = vector.shape_cast %185 : vector<1x8x128xf32> to vector<8x128xf32>
    %187 = arith.addf %184, %186 : vector<8x128xf32>
    %cst_94 = arith.constant 2.000000e-01 : f32
    %188 = vector.broadcast %cst_94 : f32 to vector<8x128xf32>
    %189 = arith.mulf %188, %187 : vector<8x128xf32>
    %190 = arith.maximumf %187, %189 : vector<8x128xf32>
    %c37 = arith.constant 37 : index
    %c0_95 = arith.constant 0 : index
    %c0_96 = arith.constant 0 : index
    %191 = vector.load %arg1[%c37, %c0_95, %c0_96] : memref<312x8x128xf32, #tpu.memory_space<vmem>>, vector<1x8x128xf32>
    %192 = vector.shape_cast %191 : vector<1x8x128xf32> to vector<8x128xf32>
    %193 = arith.mulf %140, %192 : vector<8x128xf32>
    %194 = arith.mulf %94, %193 : vector<8x128xf32>
    %c45 = arith.constant 45 : index
    %c0_97 = arith.constant 0 : index
    %c0_98 = arith.constant 0 : index
    %195 = vector.load %arg1[%c45, %c0_97, %c0_98] : memref<312x8x128xf32, #tpu.memory_space<vmem>>, vector<1x8x128xf32>
    %196 = vector.shape_cast %195 : vector<1x8x128xf32> to vector<8x128xf32>
    %197 = arith.addf %194, %196 : vector<8x128xf32>
    %cst_99 = arith.constant 2.000000e-01 : f32
    %198 = vector.broadcast %cst_99 : f32 to vector<8x128xf32>
    %199 = arith.mulf %198, %197 : vector<8x128xf32>
    %200 = arith.maximumf %197, %199 : vector<8x128xf32>
    %c38 = arith.constant 38 : index
    %c0_100 = arith.constant 0 : index
    %c0_101 = arith.constant 0 : index
    %201 = vector.load %arg1[%c38, %c0_100, %c0_101] : memref<312x8x128xf32, #tpu.memory_space<vmem>>, vector<1x8x128xf32>
    %202 = vector.shape_cast %201 : vector<1x8x128xf32> to vector<8x128xf32>
    %203 = arith.mulf %140, %202 : vector<8x128xf32>
    %204 = arith.mulf %108, %203 : vector<8x128xf32>
    %c46 = arith.constant 46 : index
    %c0_102 = arith.constant 0 : index
    %c0_103 = arith.constant 0 : index
    %205 = vector.load %arg1[%c46, %c0_102, %c0_103] : memref<312x8x128xf32, #tpu.memory_space<vmem>>, vector<1x8x128xf32>
    %206 = vector.shape_cast %205 : vector<1x8x128xf32> to vector<8x128xf32>
    %207 = arith.addf %204, %206 : vector<8x128xf32>
    %cst_104 = arith.constant 2.000000e-01 : f32
    %208 = vector.broadcast %cst_104 : f32 to vector<8x128xf32>
    %209 = arith.mulf %208, %207 : vector<8x128xf32>
    %210 = arith.maximumf %207, %209 : vector<8x128xf32>
    %c39 = arith.constant 39 : index
    %c0_105 = arith.constant 0 : index
    %c0_106 = arith.constant 0 : index
    %211 = vector.load %arg1[%c39, %c0_105, %c0_106] : memref<312x8x128xf32, #tpu.memory_space<vmem>>, vector<1x8x128xf32>
    %212 = vector.shape_cast %211 : vector<1x8x128xf32> to vector<8x128xf32>
    %213 = arith.mulf %140, %212 : vector<8x128xf32>
    %214 = arith.mulf %122, %213 : vector<8x128xf32>
    %c47 = arith.constant 47 : index
    %c0_107 = arith.constant 0 : index
    %c0_108 = arith.constant 0 : index
    %215 = vector.load %arg1[%c47, %c0_107, %c0_108] : memref<312x8x128xf32, #tpu.memory_space<vmem>>, vector<1x8x128xf32>
    %216 = vector.shape_cast %215 : vector<1x8x128xf32> to vector<8x128xf32>
    %217 = arith.addf %214, %216 : vector<8x128xf32>
    %cst_109 = arith.constant 2.000000e-01 : f32
    %218 = vector.broadcast %cst_109 : f32 to vector<8x128xf32>
    %219 = arith.mulf %218, %217 : vector<8x128xf32>
    %220 = arith.maximumf %217, %219 : vector<8x128xf32>
    %c48 = arith.constant 48 : index
    %c0_110 = arith.constant 0 : index
    %c0_111 = arith.constant 0 : index
    %221 = vector.load %arg1[%c48, %c0_110, %c0_111] : memref<312x8x128xf32, #tpu.memory_space<vmem>>, vector<1x8x128xf32>
    %222 = vector.shape_cast %221 : vector<1x8x128xf32> to vector<8x128xf32>
    %223 = arith.mulf %222, %150 : vector<8x128xf32>
    %c49 = arith.constant 49 : index
    %c0_112 = arith.constant 0 : index
    %c0_113 = arith.constant 0 : index
    %224 = vector.load %arg1[%c49, %c0_112, %c0_113] : memref<312x8x128xf32, #tpu.memory_space<vmem>>, vector<1x8x128xf32>
    %225 = vector.shape_cast %224 : vector<1x8x128xf32> to vector<8x128xf32>
    %226 = arith.mulf %225, %160 : vector<8x128xf32>
    %227 = arith.addf %223, %226 : vector<8x128xf32>
    %c50 = arith.constant 50 : index
    %c0_114 = arith.constant 0 : index
    %c0_115 = arith.constant 0 : index
    %228 = vector.load %arg1[%c50, %c0_114, %c0_115] : memref<312x8x128xf32, #tpu.memory_space<vmem>>, vector<1x8x128xf32>
    %229 = vector.shape_cast %228 : vector<1x8x128xf32> to vector<8x128xf32>
    %230 = arith.mulf %229, %170 : vector<8x128xf32>
    %231 = arith.addf %227, %230 : vector<8x128xf32>
    %c51 = arith.constant 51 : index
    %c0_116 = arith.constant 0 : index
    %c0_117 = arith.constant 0 : index
    %232 = vector.load %arg1[%c51, %c0_116, %c0_117] : memref<312x8x128xf32, #tpu.memory_space<vmem>>, vector<1x8x128xf32>
    %233 = vector.shape_cast %232 : vector<1x8x128xf32> to vector<8x128xf32>
    %234 = arith.mulf %233, %180 : vector<8x128xf32>
    %235 = arith.addf %231, %234 : vector<8x128xf32>
    %c52 = arith.constant 52 : index
    %c0_118 = arith.constant 0 : index
    %c0_119 = arith.constant 0 : index
    %236 = vector.load %arg1[%c52, %c0_118, %c0_119] : memref<312x8x128xf32, #tpu.memory_space<vmem>>, vector<1x8x128xf32>
    %237 = vector.shape_cast %236 : vector<1x8x128xf32> to vector<8x128xf32>
    %238 = arith.mulf %237, %190 : vector<8x128xf32>
    %239 = arith.addf %235, %238 : vector<8x128xf32>
    %c53 = arith.constant 53 : index
    %c0_120 = arith.constant 0 : index
    %c0_121 = arith.constant 0 : index
    %240 = vector.load %arg1[%c53, %c0_120, %c0_121] : memref<312x8x128xf32, #tpu.memory_space<vmem>>, vector<1x8x128xf32>
    %241 = vector.shape_cast %240 : vector<1x8x128xf32> to vector<8x128xf32>
    %242 = arith.mulf %241, %200 : vector<8x128xf32>
    %243 = arith.addf %239, %242 : vector<8x128xf32>
    %c54 = arith.constant 54 : index
    %c0_122 = arith.constant 0 : index
    %c0_123 = arith.constant 0 : index
    %244 = vector.load %arg1[%c54, %c0_122, %c0_123] : memref<312x8x128xf32, #tpu.memory_space<vmem>>, vector<1x8x128xf32>
    %245 = vector.shape_cast %244 : vector<1x8x128xf32> to vector<8x128xf32>
    %246 = arith.mulf %245, %210 : vector<8x128xf32>
    %247 = arith.addf %243, %246 : vector<8x128xf32>
    %c55 = arith.constant 55 : index
    %c0_124 = arith.constant 0 : index
    %c0_125 = arith.constant 0 : index
    %248 = vector.load %arg1[%c55, %c0_124, %c0_125] : memref<312x8x128xf32, #tpu.memory_space<vmem>>, vector<1x8x128xf32>
    %249 = vector.shape_cast %248 : vector<1x8x128xf32> to vector<8x128xf32>
    %250 = arith.mulf %249, %220 : vector<8x128xf32>
    %251 = arith.addf %247, %250 : vector<8x128xf32>
    %c112 = arith.constant 112 : index
    %c0_126 = arith.constant 0 : index
    %c0_127 = arith.constant 0 : index
    %252 = vector.load %arg1[%c112, %c0_126, %c0_127] : memref<312x8x128xf32, #tpu.memory_space<vmem>>, vector<1x8x128xf32>
    %253 = vector.shape_cast %252 : vector<1x8x128xf32> to vector<8x128xf32>
    %254 = arith.addf %251, %253 : vector<8x128xf32>
    %c56 = arith.constant 56 : index
    %c0_128 = arith.constant 0 : index
    %c0_129 = arith.constant 0 : index
    %255 = vector.load %arg1[%c56, %c0_128, %c0_129] : memref<312x8x128xf32, #tpu.memory_space<vmem>>, vector<1x8x128xf32>
    %256 = vector.shape_cast %255 : vector<1x8x128xf32> to vector<8x128xf32>
    %257 = arith.mulf %256, %150 : vector<8x128xf32>
    %c57 = arith.constant 57 : index
    %c0_130 = arith.constant 0 : index
    %c0_131 = arith.constant 0 : index
    %258 = vector.load %arg1[%c57, %c0_130, %c0_131] : memref<312x8x128xf32, #tpu.memory_space<vmem>>, vector<1x8x128xf32>
    %259 = vector.shape_cast %258 : vector<1x8x128xf32> to vector<8x128xf32>
    %260 = arith.mulf %259, %160 : vector<8x128xf32>
    %261 = arith.addf %257, %260 : vector<8x128xf32>
    %c58 = arith.constant 58 : index
    %c0_132 = arith.constant 0 : index
    %c0_133 = arith.constant 0 : index
    %262 = vector.load %arg1[%c58, %c0_132, %c0_133] : memref<312x8x128xf32, #tpu.memory_space<vmem>>, vector<1x8x128xf32>
    %263 = vector.shape_cast %262 : vector<1x8x128xf32> to vector<8x128xf32>
    %264 = arith.mulf %263, %170 : vector<8x128xf32>
    %265 = arith.addf %261, %264 : vector<8x128xf32>
    %c59 = arith.constant 59 : index
    %c0_134 = arith.constant 0 : index
    %c0_135 = arith.constant 0 : index
    %266 = vector.load %arg1[%c59, %c0_134, %c0_135] : memref<312x8x128xf32, #tpu.memory_space<vmem>>, vector<1x8x128xf32>
    %267 = vector.shape_cast %266 : vector<1x8x128xf32> to vector<8x128xf32>
    %268 = arith.mulf %267, %180 : vector<8x128xf32>
    %269 = arith.addf %265, %268 : vector<8x128xf32>
    %c60 = arith.constant 60 : index
    %c0_136 = arith.constant 0 : index
    %c0_137 = arith.constant 0 : index
    %270 = vector.load %arg1[%c60, %c0_136, %c0_137] : memref<312x8x128xf32, #tpu.memory_space<vmem>>, vector<1x8x128xf32>
    %271 = vector.shape_cast %270 : vector<1x8x128xf32> to vector<8x128xf32>
    %272 = arith.mulf %271, %190 : vector<8x128xf32>
    %273 = arith.addf %269, %272 : vector<8x128xf32>
    %c61 = arith.constant 61 : index
    %c0_138 = arith.constant 0 : index
    %c0_139 = arith.constant 0 : index
    %274 = vector.load %arg1[%c61, %c0_138, %c0_139] : memref<312x8x128xf32, #tpu.memory_space<vmem>>, vector<1x8x128xf32>
    %275 = vector.shape_cast %274 : vector<1x8x128xf32> to vector<8x128xf32>
    %276 = arith.mulf %275, %200 : vector<8x128xf32>
    %277 = arith.addf %273, %276 : vector<8x128xf32>
    %c62 = arith.constant 62 : index
    %c0_140 = arith.constant 0 : index
    %c0_141 = arith.constant 0 : index
    %278 = vector.load %arg1[%c62, %c0_140, %c0_141] : memref<312x8x128xf32, #tpu.memory_space<vmem>>, vector<1x8x128xf32>
    %279 = vector.shape_cast %278 : vector<1x8x128xf32> to vector<8x128xf32>
    %280 = arith.mulf %279, %210 : vector<8x128xf32>
    %281 = arith.addf %277, %280 : vector<8x128xf32>
    %c63 = arith.constant 63 : index
    %c0_142 = arith.constant 0 : index
    %c0_143 = arith.constant 0 : index
    %282 = vector.load %arg1[%c63, %c0_142, %c0_143] : memref<312x8x128xf32, #tpu.memory_space<vmem>>, vector<1x8x128xf32>
    %283 = vector.shape_cast %282 : vector<1x8x128xf32> to vector<8x128xf32>
    %284 = arith.mulf %283, %220 : vector<8x128xf32>
    %285 = arith.addf %281, %284 : vector<8x128xf32>
    %c113 = arith.constant 113 : index
    %c0_144 = arith.constant 0 : index
    %c0_145 = arith.constant 0 : index
    %286 = vector.load %arg1[%c113, %c0_144, %c0_145] : memref<312x8x128xf32, #tpu.memory_space<vmem>>, vector<1x8x128xf32>
    %287 = vector.shape_cast %286 : vector<1x8x128xf32> to vector<8x128xf32>
    %288 = arith.addf %285, %287 : vector<8x128xf32>
    %c64 = arith.constant 64 : index
    %c0_146 = arith.constant 0 : index
    %c0_147 = arith.constant 0 : index
    %289 = vector.load %arg1[%c64, %c0_146, %c0_147] : memref<312x8x128xf32, #tpu.memory_space<vmem>>, vector<1x8x128xf32>
    %290 = vector.shape_cast %289 : vector<1x8x128xf32> to vector<8x128xf32>
    %291 = arith.mulf %290, %150 : vector<8x128xf32>
    %c65 = arith.constant 65 : index
    %c0_148 = arith.constant 0 : index
    %c0_149 = arith.constant 0 : index
    %292 = vector.load %arg1[%c65, %c0_148, %c0_149] : memref<312x8x128xf32, #tpu.memory_space<vmem>>, vector<1x8x128xf32>
    %293 = vector.shape_cast %292 : vector<1x8x128xf32> to vector<8x128xf32>
    %294 = arith.mulf %293, %160 : vector<8x128xf32>
    %295 = arith.addf %291, %294 : vector<8x128xf32>
    %c66 = arith.constant 66 : index
    %c0_150 = arith.constant 0 : index
    %c0_151 = arith.constant 0 : index
    %296 = vector.load %arg1[%c66, %c0_150, %c0_151] : memref<312x8x128xf32, #tpu.memory_space<vmem>>, vector<1x8x128xf32>
    %297 = vector.shape_cast %296 : vector<1x8x128xf32> to vector<8x128xf32>
    %298 = arith.mulf %297, %170 : vector<8x128xf32>
    %299 = arith.addf %295, %298 : vector<8x128xf32>
    %c67 = arith.constant 67 : index
    %c0_152 = arith.constant 0 : index
    %c0_153 = arith.constant 0 : index
    %300 = vector.load %arg1[%c67, %c0_152, %c0_153] : memref<312x8x128xf32, #tpu.memory_space<vmem>>, vector<1x8x128xf32>
    %301 = vector.shape_cast %300 : vector<1x8x128xf32> to vector<8x128xf32>
    %302 = arith.mulf %301, %180 : vector<8x128xf32>
    %303 = arith.addf %299, %302 : vector<8x128xf32>
    %c68 = arith.constant 68 : index
    %c0_154 = arith.constant 0 : index
    %c0_155 = arith.constant 0 : index
    %304 = vector.load %arg1[%c68, %c0_154, %c0_155] : memref<312x8x128xf32, #tpu.memory_space<vmem>>, vector<1x8x128xf32>
    %305 = vector.shape_cast %304 : vector<1x8x128xf32> to vector<8x128xf32>
    %306 = arith.mulf %305, %190 : vector<8x128xf32>
    %307 = arith.addf %303, %306 : vector<8x128xf32>
    %c69 = arith.constant 69 : index
    %c0_156 = arith.constant 0 : index
    %c0_157 = arith.constant 0 : index
    %308 = vector.load %arg1[%c69, %c0_156, %c0_157] : memref<312x8x128xf32, #tpu.memory_space<vmem>>, vector<1x8x128xf32>
    %309 = vector.shape_cast %308 : vector<1x8x128xf32> to vector<8x128xf32>
    %310 = arith.mulf %309, %200 : vector<8x128xf32>
    %311 = arith.addf %307, %310 : vector<8x128xf32>
    %c70 = arith.constant 70 : index
    %c0_158 = arith.constant 0 : index
    %c0_159 = arith.constant 0 : index
    %312 = vector.load %arg1[%c70, %c0_158, %c0_159] : memref<312x8x128xf32, #tpu.memory_space<vmem>>, vector<1x8x128xf32>
    %313 = vector.shape_cast %312 : vector<1x8x128xf32> to vector<8x128xf32>
    %314 = arith.mulf %313, %210 : vector<8x128xf32>
    %315 = arith.addf %311, %314 : vector<8x128xf32>
    %c71 = arith.constant 71 : index
    %c0_160 = arith.constant 0 : index
    %c0_161 = arith.constant 0 : index
    %316 = vector.load %arg1[%c71, %c0_160, %c0_161] : memref<312x8x128xf32, #tpu.memory_space<vmem>>, vector<1x8x128xf32>
    %317 = vector.shape_cast %316 : vector<1x8x128xf32> to vector<8x128xf32>
    %318 = arith.mulf %317, %220 : vector<8x128xf32>
    %319 = arith.addf %315, %318 : vector<8x128xf32>
    %c114 = arith.constant 114 : index
    %c0_162 = arith.constant 0 : index
    %c0_163 = arith.constant 0 : index
    %320 = vector.load %arg1[%c114, %c0_162, %c0_163] : memref<312x8x128xf32, #tpu.memory_space<vmem>>, vector<1x8x128xf32>
    %321 = vector.shape_cast %320 : vector<1x8x128xf32> to vector<8x128xf32>
    %322 = arith.addf %319, %321 : vector<8x128xf32>
    %c72 = arith.constant 72 : index
    %c0_164 = arith.constant 0 : index
    %c0_165 = arith.constant 0 : index
    %323 = vector.load %arg1[%c72, %c0_164, %c0_165] : memref<312x8x128xf32, #tpu.memory_space<vmem>>, vector<1x8x128xf32>
    %324 = vector.shape_cast %323 : vector<1x8x128xf32> to vector<8x128xf32>
    %325 = arith.mulf %324, %150 : vector<8x128xf32>
    %c73 = arith.constant 73 : index
    %c0_166 = arith.constant 0 : index
    %c0_167 = arith.constant 0 : index
    %326 = vector.load %arg1[%c73, %c0_166, %c0_167] : memref<312x8x128xf32, #tpu.memory_space<vmem>>, vector<1x8x128xf32>
    %327 = vector.shape_cast %326 : vector<1x8x128xf32> to vector<8x128xf32>
    %328 = arith.mulf %327, %160 : vector<8x128xf32>
    %329 = arith.addf %325, %328 : vector<8x128xf32>
    %c74 = arith.constant 74 : index
    %c0_168 = arith.constant 0 : index
    %c0_169 = arith.constant 0 : index
    %330 = vector.load %arg1[%c74, %c0_168, %c0_169] : memref<312x8x128xf32, #tpu.memory_space<vmem>>, vector<1x8x128xf32>
    %331 = vector.shape_cast %330 : vector<1x8x128xf32> to vector<8x128xf32>
    %332 = arith.mulf %331, %170 : vector<8x128xf32>
    %333 = arith.addf %329, %332 : vector<8x128xf32>
    %c75 = arith.constant 75 : index
    %c0_170 = arith.constant 0 : index
    %c0_171 = arith.constant 0 : index
    %334 = vector.load %arg1[%c75, %c0_170, %c0_171] : memref<312x8x128xf32, #tpu.memory_space<vmem>>, vector<1x8x128xf32>
    %335 = vector.shape_cast %334 : vector<1x8x128xf32> to vector<8x128xf32>
    %336 = arith.mulf %335, %180 : vector<8x128xf32>
    %337 = arith.addf %333, %336 : vector<8x128xf32>
    %c76 = arith.constant 76 : index
    %c0_172 = arith.constant 0 : index
    %c0_173 = arith.constant 0 : index
    %338 = vector.load %arg1[%c76, %c0_172, %c0_173] : memref<312x8x128xf32, #tpu.memory_space<vmem>>, vector<1x8x128xf32>
    %339 = vector.shape_cast %338 : vector<1x8x128xf32> to vector<8x128xf32>
    %340 = arith.mulf %339, %190 : vector<8x128xf32>
    %341 = arith.addf %337, %340 : vector<8x128xf32>
    %c77 = arith.constant 77 : index
    %c0_174 = arith.constant 0 : index
    %c0_175 = arith.constant 0 : index
    %342 = vector.load %arg1[%c77, %c0_174, %c0_175] : memref<312x8x128xf32, #tpu.memory_space<vmem>>, vector<1x8x128xf32>
    %343 = vector.shape_cast %342 : vector<1x8x128xf32> to vector<8x128xf32>
    %344 = arith.mulf %343, %200 : vector<8x128xf32>
    %345 = arith.addf %341, %344 : vector<8x128xf32>
    %c78 = arith.constant 78 : index
    %c0_176 = arith.constant 0 : index
    %c0_177 = arith.constant 0 : index
    %346 = vector.load %arg1[%c78, %c0_176, %c0_177] : memref<312x8x128xf32, #tpu.memory_space<vmem>>, vector<1x8x128xf32>
    %347 = vector.shape_cast %346 : vector<1x8x128xf32> to vector<8x128xf32>
    %348 = arith.mulf %347, %210 : vector<8x128xf32>
    %349 = arith.addf %345, %348 : vector<8x128xf32>
    %c79 = arith.constant 79 : index
    %c0_178 = arith.constant 0 : index
    %c0_179 = arith.constant 0 : index
    %350 = vector.load %arg1[%c79, %c0_178, %c0_179] : memref<312x8x128xf32, #tpu.memory_space<vmem>>, vector<1x8x128xf32>
    %351 = vector.shape_cast %350 : vector<1x8x128xf32> to vector<8x128xf32>
    %352 = arith.mulf %351, %220 : vector<8x128xf32>
    %353 = arith.addf %349, %352 : vector<8x128xf32>
    %c115 = arith.constant 115 : index
    %c0_180 = arith.constant 0 : index
    %c0_181 = arith.constant 0 : index
    %354 = vector.load %arg1[%c115, %c0_180, %c0_181] : memref<312x8x128xf32, #tpu.memory_space<vmem>>, vector<1x8x128xf32>
    %355 = vector.shape_cast %354 : vector<1x8x128xf32> to vector<8x128xf32>
    %356 = arith.addf %353, %355 : vector<8x128xf32>
    %c80 = arith.constant 80 : index
    %c0_182 = arith.constant 0 : index
    %c0_183 = arith.constant 0 : index
    %357 = vector.load %arg1[%c80, %c0_182, %c0_183] : memref<312x8x128xf32, #tpu.memory_space<vmem>>, vector<1x8x128xf32>
    %358 = vector.shape_cast %357 : vector<1x8x128xf32> to vector<8x128xf32>
    %359 = arith.mulf %358, %150 : vector<8x128xf32>
    %c81 = arith.constant 81 : index
    %c0_184 = arith.constant 0 : index
    %c0_185 = arith.constant 0 : index
    %360 = vector.load %arg1[%c81, %c0_184, %c0_185] : memref<312x8x128xf32, #tpu.memory_space<vmem>>, vector<1x8x128xf32>
    %361 = vector.shape_cast %360 : vector<1x8x128xf32> to vector<8x128xf32>
    %362 = arith.mulf %361, %160 : vector<8x128xf32>
    %363 = arith.addf %359, %362 : vector<8x128xf32>
    %c82 = arith.constant 82 : index
    %c0_186 = arith.constant 0 : index
    %c0_187 = arith.constant 0 : index
    %364 = vector.load %arg1[%c82, %c0_186, %c0_187] : memref<312x8x128xf32, #tpu.memory_space<vmem>>, vector<1x8x128xf32>
    %365 = vector.shape_cast %364 : vector<1x8x128xf32> to vector<8x128xf32>
    %366 = arith.mulf %365, %170 : vector<8x128xf32>
    %367 = arith.addf %363, %366 : vector<8x128xf32>
    %c83 = arith.constant 83 : index
    %c0_188 = arith.constant 0 : index
    %c0_189 = arith.constant 0 : index
    %368 = vector.load %arg1[%c83, %c0_188, %c0_189] : memref<312x8x128xf32, #tpu.memory_space<vmem>>, vector<1x8x128xf32>
    %369 = vector.shape_cast %368 : vector<1x8x128xf32> to vector<8x128xf32>
    %370 = arith.mulf %369, %180 : vector<8x128xf32>
    %371 = arith.addf %367, %370 : vector<8x128xf32>
    %c84 = arith.constant 84 : index
    %c0_190 = arith.constant 0 : index
    %c0_191 = arith.constant 0 : index
    %372 = vector.load %arg1[%c84, %c0_190, %c0_191] : memref<312x8x128xf32, #tpu.memory_space<vmem>>, vector<1x8x128xf32>
    %373 = vector.shape_cast %372 : vector<1x8x128xf32> to vector<8x128xf32>
    %374 = arith.mulf %373, %190 : vector<8x128xf32>
    %375 = arith.addf %371, %374 : vector<8x128xf32>
    %c85 = arith.constant 85 : index
    %c0_192 = arith.constant 0 : index
    %c0_193 = arith.constant 0 : index
    %376 = vector.load %arg1[%c85, %c0_192, %c0_193] : memref<312x8x128xf32, #tpu.memory_space<vmem>>, vector<1x8x128xf32>
    %377 = vector.shape_cast %376 : vector<1x8x128xf32> to vector<8x128xf32>
    %378 = arith.mulf %377, %200 : vector<8x128xf32>
    %379 = arith.addf %375, %378 : vector<8x128xf32>
    %c86 = arith.constant 86 : index
    %c0_194 = arith.constant 0 : index
    %c0_195 = arith.constant 0 : index
    %380 = vector.load %arg1[%c86, %c0_194, %c0_195] : memref<312x8x128xf32, #tpu.memory_space<vmem>>, vector<1x8x128xf32>
    %381 = vector.shape_cast %380 : vector<1x8x128xf32> to vector<8x128xf32>
    %382 = arith.mulf %381, %210 : vector<8x128xf32>
    %383 = arith.addf %379, %382 : vector<8x128xf32>
    %c87 = arith.constant 87 : index
    %c0_196 = arith.constant 0 : index
    %c0_197 = arith.constant 0 : index
    %384 = vector.load %arg1[%c87, %c0_196, %c0_197] : memref<312x8x128xf32, #tpu.memory_space<vmem>>, vector<1x8x128xf32>
    %385 = vector.shape_cast %384 : vector<1x8x128xf32> to vector<8x128xf32>
    %386 = arith.mulf %385, %220 : vector<8x128xf32>
    %387 = arith.addf %383, %386 : vector<8x128xf32>
    %c116 = arith.constant 116 : index
    %c0_198 = arith.constant 0 : index
    %c0_199 = arith.constant 0 : index
    %388 = vector.load %arg1[%c116, %c0_198, %c0_199] : memref<312x8x128xf32, #tpu.memory_space<vmem>>, vector<1x8x128xf32>
    %389 = vector.shape_cast %388 : vector<1x8x128xf32> to vector<8x128xf32>
    %390 = arith.addf %387, %389 : vector<8x128xf32>
    %c88 = arith.constant 88 : index
    %c0_200 = arith.constant 0 : index
    %c0_201 = arith.constant 0 : index
    %391 = vector.load %arg1[%c88, %c0_200, %c0_201] : memref<312x8x128xf32, #tpu.memory_space<vmem>>, vector<1x8x128xf32>
    %392 = vector.shape_cast %391 : vector<1x8x128xf32> to vector<8x128xf32>
    %393 = arith.mulf %392, %150 : vector<8x128xf32>
    %c89 = arith.constant 89 : index
    %c0_202 = arith.constant 0 : index
    %c0_203 = arith.constant 0 : index
    %394 = vector.load %arg1[%c89, %c0_202, %c0_203] : memref<312x8x128xf32, #tpu.memory_space<vmem>>, vector<1x8x128xf32>
    %395 = vector.shape_cast %394 : vector<1x8x128xf32> to vector<8x128xf32>
    %396 = arith.mulf %395, %160 : vector<8x128xf32>
    %397 = arith.addf %393, %396 : vector<8x128xf32>
    %c90 = arith.constant 90 : index
    %c0_204 = arith.constant 0 : index
    %c0_205 = arith.constant 0 : index
    %398 = vector.load %arg1[%c90, %c0_204, %c0_205] : memref<312x8x128xf32, #tpu.memory_space<vmem>>, vector<1x8x128xf32>
    %399 = vector.shape_cast %398 : vector<1x8x128xf32> to vector<8x128xf32>
    %400 = arith.mulf %399, %170 : vector<8x128xf32>
    %401 = arith.addf %397, %400 : vector<8x128xf32>
    %c91 = arith.constant 91 : index
    %c0_206 = arith.constant 0 : index
    %c0_207 = arith.constant 0 : index
    %402 = vector.load %arg1[%c91, %c0_206, %c0_207] : memref<312x8x128xf32, #tpu.memory_space<vmem>>, vector<1x8x128xf32>
    %403 = vector.shape_cast %402 : vector<1x8x128xf32> to vector<8x128xf32>
    %404 = arith.mulf %403, %180 : vector<8x128xf32>
    %405 = arith.addf %401, %404 : vector<8x128xf32>
    %c92 = arith.constant 92 : index
    %c0_208 = arith.constant 0 : index
    %c0_209 = arith.constant 0 : index
    %406 = vector.load %arg1[%c92, %c0_208, %c0_209] : memref<312x8x128xf32, #tpu.memory_space<vmem>>, vector<1x8x128xf32>
    %407 = vector.shape_cast %406 : vector<1x8x128xf32> to vector<8x128xf32>
    %408 = arith.mulf %407, %190 : vector<8x128xf32>
    %409 = arith.addf %405, %408 : vector<8x128xf32>
    %c93 = arith.constant 93 : index
    %c0_210 = arith.constant 0 : index
    %c0_211 = arith.constant 0 : index
    %410 = vector.load %arg1[%c93, %c0_210, %c0_211] : memref<312x8x128xf32, #tpu.memory_space<vmem>>, vector<1x8x128xf32>
    %411 = vector.shape_cast %410 : vector<1x8x128xf32> to vector<8x128xf32>
    %412 = arith.mulf %411, %200 : vector<8x128xf32>
    %413 = arith.addf %409, %412 : vector<8x128xf32>
    %c94 = arith.constant 94 : index
    %c0_212 = arith.constant 0 : index
    %c0_213 = arith.constant 0 : index
    %414 = vector.load %arg1[%c94, %c0_212, %c0_213] : memref<312x8x128xf32, #tpu.memory_space<vmem>>, vector<1x8x128xf32>
    %415 = vector.shape_cast %414 : vector<1x8x128xf32> to vector<8x128xf32>
    %416 = arith.mulf %415, %210 : vector<8x128xf32>
    %417 = arith.addf %413, %416 : vector<8x128xf32>
    %c95 = arith.constant 95 : index
    %c0_214 = arith.constant 0 : index
    %c0_215 = arith.constant 0 : index
    %418 = vector.load %arg1[%c95, %c0_214, %c0_215] : memref<312x8x128xf32, #tpu.memory_space<vmem>>, vector<1x8x128xf32>
    %419 = vector.shape_cast %418 : vector<1x8x128xf32> to vector<8x128xf32>
    %420 = arith.mulf %419, %220 : vector<8x128xf32>
    %421 = arith.addf %417, %420 : vector<8x128xf32>
    %c117 = arith.constant 117 : index
    %c0_216 = arith.constant 0 : index
    %c0_217 = arith.constant 0 : index
    %422 = vector.load %arg1[%c117, %c0_216, %c0_217] : memref<312x8x128xf32, #tpu.memory_space<vmem>>, vector<1x8x128xf32>
    %423 = vector.shape_cast %422 : vector<1x8x128xf32> to vector<8x128xf32>
    %424 = arith.addf %421, %423 : vector<8x128xf32>
    %c96 = arith.constant 96 : index
    %c0_218 = arith.constant 0 : index
    %c0_219 = arith.constant 0 : index
    %425 = vector.load %arg1[%c96, %c0_218, %c0_219] : memref<312x8x128xf32, #tpu.memory_space<vmem>>, vector<1x8x128xf32>
    %426 = vector.shape_cast %425 : vector<1x8x128xf32> to vector<8x128xf32>
    %427 = arith.mulf %426, %150 : vector<8x128xf32>
    %c97 = arith.constant 97 : index
    %c0_220 = arith.constant 0 : index
    %c0_221 = arith.constant 0 : index
    %428 = vector.load %arg1[%c97, %c0_220, %c0_221] : memref<312x8x128xf32, #tpu.memory_space<vmem>>, vector<1x8x128xf32>
    %429 = vector.shape_cast %428 : vector<1x8x128xf32> to vector<8x128xf32>
    %430 = arith.mulf %429, %160 : vector<8x128xf32>
    %431 = arith.addf %427, %430 : vector<8x128xf32>
    %c98 = arith.constant 98 : index
    %c0_222 = arith.constant 0 : index
    %c0_223 = arith.constant 0 : index
    %432 = vector.load %arg1[%c98, %c0_222, %c0_223] : memref<312x8x128xf32, #tpu.memory_space<vmem>>, vector<1x8x128xf32>
    %433 = vector.shape_cast %432 : vector<1x8x128xf32> to vector<8x128xf32>
    %434 = arith.mulf %433, %170 : vector<8x128xf32>
    %435 = arith.addf %431, %434 : vector<8x128xf32>
    %c99 = arith.constant 99 : index
    %c0_224 = arith.constant 0 : index
    %c0_225 = arith.constant 0 : index
    %436 = vector.load %arg1[%c99, %c0_224, %c0_225] : memref<312x8x128xf32, #tpu.memory_space<vmem>>, vector<1x8x128xf32>
    %437 = vector.shape_cast %436 : vector<1x8x128xf32> to vector<8x128xf32>
    %438 = arith.mulf %437, %180 : vector<8x128xf32>
    %439 = arith.addf %435, %438 : vector<8x128xf32>
    %c100 = arith.constant 100 : index
    %c0_226 = arith.constant 0 : index
    %c0_227 = arith.constant 0 : index
    %440 = vector.load %arg1[%c100, %c0_226, %c0_227] : memref<312x8x128xf32, #tpu.memory_space<vmem>>, vector<1x8x128xf32>
    %441 = vector.shape_cast %440 : vector<1x8x128xf32> to vector<8x128xf32>
    %442 = arith.mulf %441, %190 : vector<8x128xf32>
    %443 = arith.addf %439, %442 : vector<8x128xf32>
    %c101 = arith.constant 101 : index
    %c0_228 = arith.constant 0 : index
    %c0_229 = arith.constant 0 : index
    %444 = vector.load %arg1[%c101, %c0_228, %c0_229] : memref<312x8x128xf32, #tpu.memory_space<vmem>>, vector<1x8x128xf32>
    %445 = vector.shape_cast %444 : vector<1x8x128xf32> to vector<8x128xf32>
    %446 = arith.mulf %445, %200 : vector<8x128xf32>
    %447 = arith.addf %443, %446 : vector<8x128xf32>
    %c102 = arith.constant 102 : index
    %c0_230 = arith.constant 0 : index
    %c0_231 = arith.constant 0 : index
    %448 = vector.load %arg1[%c102, %c0_230, %c0_231] : memref<312x8x128xf32, #tpu.memory_space<vmem>>, vector<1x8x128xf32>
    %449 = vector.shape_cast %448 : vector<1x8x128xf32> to vector<8x128xf32>
    %450 = arith.mulf %449, %210 : vector<8x128xf32>
    %451 = arith.addf %447, %450 : vector<8x128xf32>
    %c103 = arith.constant 103 : index
    %c0_232 = arith.constant 0 : index
    %c0_233 = arith.constant 0 : index
    %452 = vector.load %arg1[%c103, %c0_232, %c0_233] : memref<312x8x128xf32, #tpu.memory_space<vmem>>, vector<1x8x128xf32>
    %453 = vector.shape_cast %452 : vector<1x8x128xf32> to vector<8x128xf32>
    %454 = arith.mulf %453, %220 : vector<8x128xf32>
    %455 = arith.addf %451, %454 : vector<8x128xf32>
    %c118 = arith.constant 118 : index
    %c0_234 = arith.constant 0 : index
    %c0_235 = arith.constant 0 : index
    %456 = vector.load %arg1[%c118, %c0_234, %c0_235] : memref<312x8x128xf32, #tpu.memory_space<vmem>>, vector<1x8x128xf32>
    %457 = vector.shape_cast %456 : vector<1x8x128xf32> to vector<8x128xf32>
    %458 = arith.addf %455, %457 : vector<8x128xf32>
    %c104 = arith.constant 104 : index
    %c0_236 = arith.constant 0 : index
    %c0_237 = arith.constant 0 : index
    %459 = vector.load %arg1[%c104, %c0_236, %c0_237] : memref<312x8x128xf32, #tpu.memory_space<vmem>>, vector<1x8x128xf32>
    %460 = vector.shape_cast %459 : vector<1x8x128xf32> to vector<8x128xf32>
    %461 = arith.mulf %460, %150 : vector<8x128xf32>
    %c105 = arith.constant 105 : index
    %c0_238 = arith.constant 0 : index
    %c0_239 = arith.constant 0 : index
    %462 = vector.load %arg1[%c105, %c0_238, %c0_239] : memref<312x8x128xf32, #tpu.memory_space<vmem>>, vector<1x8x128xf32>
    %463 = vector.shape_cast %462 : vector<1x8x128xf32> to vector<8x128xf32>
    %464 = arith.mulf %463, %160 : vector<8x128xf32>
    %465 = arith.addf %461, %464 : vector<8x128xf32>
    %c106 = arith.constant 106 : index
    %c0_240 = arith.constant 0 : index
    %c0_241 = arith.constant 0 : index
    %466 = vector.load %arg1[%c106, %c0_240, %c0_241] : memref<312x8x128xf32, #tpu.memory_space<vmem>>, vector<1x8x128xf32>
    %467 = vector.shape_cast %466 : vector<1x8x128xf32> to vector<8x128xf32>
    %468 = arith.mulf %467, %170 : vector<8x128xf32>
    %469 = arith.addf %465, %468 : vector<8x128xf32>
    %c107 = arith.constant 107 : index
    %c0_242 = arith.constant 0 : index
    %c0_243 = arith.constant 0 : index
    %470 = vector.load %arg1[%c107, %c0_242, %c0_243] : memref<312x8x128xf32, #tpu.memory_space<vmem>>, vector<1x8x128xf32>
    %471 = vector.shape_cast %470 : vector<1x8x128xf32> to vector<8x128xf32>
    %472 = arith.mulf %471, %180 : vector<8x128xf32>
    %473 = arith.addf %469, %472 : vector<8x128xf32>
    %c108 = arith.constant 108 : index
    %c0_244 = arith.constant 0 : index
    %c0_245 = arith.constant 0 : index
    %474 = vector.load %arg1[%c108, %c0_244, %c0_245] : memref<312x8x128xf32, #tpu.memory_space<vmem>>, vector<1x8x128xf32>
    %475 = vector.shape_cast %474 : vector<1x8x128xf32> to vector<8x128xf32>
    %476 = arith.mulf %475, %190 : vector<8x128xf32>
    %477 = arith.addf %473, %476 : vector<8x128xf32>
    %c109 = arith.constant 109 : index
    %c0_246 = arith.constant 0 : index
    %c0_247 = arith.constant 0 : index
    %478 = vector.load %arg1[%c109, %c0_246, %c0_247] : memref<312x8x128xf32, #tpu.memory_space<vmem>>, vector<1x8x128xf32>
    %479 = vector.shape_cast %478 : vector<1x8x128xf32> to vector<8x128xf32>
    %480 = arith.mulf %479, %200 : vector<8x128xf32>
    %481 = arith.addf %477, %480 : vector<8x128xf32>
    %c110 = arith.constant 110 : index
    %c0_248 = arith.constant 0 : index
    %c0_249 = arith.constant 0 : index
    %482 = vector.load %arg1[%c110, %c0_248, %c0_249] : memref<312x8x128xf32, #tpu.memory_space<vmem>>, vector<1x8x128xf32>
    %483 = vector.shape_cast %482 : vector<1x8x128xf32> to vector<8x128xf32>
    %484 = arith.mulf %483, %210 : vector<8x128xf32>
    %485 = arith.addf %481, %484 : vector<8x128xf32>
    %c111 = arith.constant 111 : index
    %c0_250 = arith.constant 0 : index
    %c0_251 = arith.constant 0 : index
    %486 = vector.load %arg1[%c111, %c0_250, %c0_251] : memref<312x8x128xf32, #tpu.memory_space<vmem>>, vector<1x8x128xf32>
    %487 = vector.shape_cast %486 : vector<1x8x128xf32> to vector<8x128xf32>
    %488 = arith.mulf %487, %220 : vector<8x128xf32>
    %489 = arith.addf %485, %488 : vector<8x128xf32>
    %c119 = arith.constant 119 : index
    %c0_252 = arith.constant 0 : index
    %c0_253 = arith.constant 0 : index
    %490 = vector.load %arg1[%c119, %c0_252, %c0_253] : memref<312x8x128xf32, #tpu.memory_space<vmem>>, vector<1x8x128xf32>
    %491 = vector.shape_cast %490 : vector<1x8x128xf32> to vector<8x128xf32>
    %492 = arith.addf %489, %491 : vector<8x128xf32>
    %493 = arith.mulf %254, %254 : vector<8x128xf32>
    %494 = arith.mulf %288, %288 : vector<8x128xf32>
    %495 = arith.addf %493, %494 : vector<8x128xf32>
    %496 = arith.mulf %322, %322 : vector<8x128xf32>
    %497 = arith.addf %495, %496 : vector<8x128xf32>
    %498 = arith.mulf %356, %356 : vector<8x128xf32>
    %499 = arith.addf %497, %498 : vector<8x128xf32>
    %500 = arith.mulf %390, %390 : vector<8x128xf32>
    %501 = arith.addf %499, %500 : vector<8x128xf32>
    %502 = arith.mulf %424, %424 : vector<8x128xf32>
    %503 = arith.addf %501, %502 : vector<8x128xf32>
    %504 = arith.mulf %458, %458 : vector<8x128xf32>
    %505 = arith.addf %503, %504 : vector<8x128xf32>
    %506 = arith.mulf %492, %492 : vector<8x128xf32>
    %507 = arith.addf %505, %506 : vector<8x128xf32>
    %cst_254 = arith.constant 8.000000e-05 : f32
    %508 = vector.broadcast %cst_254 : f32 to vector<8x128xf32>
    %509 = arith.addf %507, %508 : vector<8x128xf32>
    %510 = math.rsqrt %509 : vector<8x128xf32>
    %c120 = arith.constant 120 : index
    %c0_255 = arith.constant 0 : index
    %c0_256 = arith.constant 0 : index
    %511 = vector.load %arg1[%c120, %c0_255, %c0_256] : memref<312x8x128xf32, #tpu.memory_space<vmem>>, vector<1x8x128xf32>
    %512 = vector.shape_cast %511 : vector<1x8x128xf32> to vector<8x128xf32>
    %513 = arith.mulf %510, %512 : vector<8x128xf32>
    %514 = arith.mulf %254, %513 : vector<8x128xf32>
    %c128 = arith.constant 128 : index
    %c0_257 = arith.constant 0 : index
    %c0_258 = arith.constant 0 : index
    %515 = vector.load %arg1[%c128, %c0_257, %c0_258] : memref<312x8x128xf32, #tpu.memory_space<vmem>>, vector<1x8x128xf32>
    %516 = vector.shape_cast %515 : vector<1x8x128xf32> to vector<8x128xf32>
    %517 = arith.addf %514, %516 : vector<8x128xf32>
    %cst_259 = arith.constant 2.000000e-01 : f32
    %518 = vector.broadcast %cst_259 : f32 to vector<8x128xf32>
    %519 = arith.mulf %518, %517 : vector<8x128xf32>
    %520 = arith.maximumf %517, %519 : vector<8x128xf32>
    %c121 = arith.constant 121 : index
    %c0_260 = arith.constant 0 : index
    %c0_261 = arith.constant 0 : index
    %521 = vector.load %arg1[%c121, %c0_260, %c0_261] : memref<312x8x128xf32, #tpu.memory_space<vmem>>, vector<1x8x128xf32>
    %522 = vector.shape_cast %521 : vector<1x8x128xf32> to vector<8x128xf32>
    %523 = arith.mulf %510, %522 : vector<8x128xf32>
    %524 = arith.mulf %288, %523 : vector<8x128xf32>
    %c129 = arith.constant 129 : index
    %c0_262 = arith.constant 0 : index
    %c0_263 = arith.constant 0 : index
    %525 = vector.load %arg1[%c129, %c0_262, %c0_263] : memref<312x8x128xf32, #tpu.memory_space<vmem>>, vector<1x8x128xf32>
    %526 = vector.shape_cast %525 : vector<1x8x128xf32> to vector<8x128xf32>
    %527 = arith.addf %524, %526 : vector<8x128xf32>
    %cst_264 = arith.constant 2.000000e-01 : f32
    %528 = vector.broadcast %cst_264 : f32 to vector<8x128xf32>
    %529 = arith.mulf %528, %527 : vector<8x128xf32>
    %530 = arith.maximumf %527, %529 : vector<8x128xf32>
    %c122 = arith.constant 122 : index
    %c0_265 = arith.constant 0 : index
    %c0_266 = arith.constant 0 : index
    %531 = vector.load %arg1[%c122, %c0_265, %c0_266] : memref<312x8x128xf32, #tpu.memory_space<vmem>>, vector<1x8x128xf32>
    %532 = vector.shape_cast %531 : vector<1x8x128xf32> to vector<8x128xf32>
    %533 = arith.mulf %510, %532 : vector<8x128xf32>
    %534 = arith.mulf %322, %533 : vector<8x128xf32>
    %c130 = arith.constant 130 : index
    %c0_267 = arith.constant 0 : index
    %c0_268 = arith.constant 0 : index
    %535 = vector.load %arg1[%c130, %c0_267, %c0_268] : memref<312x8x128xf32, #tpu.memory_space<vmem>>, vector<1x8x128xf32>
    %536 = vector.shape_cast %535 : vector<1x8x128xf32> to vector<8x128xf32>
    %537 = arith.addf %534, %536 : vector<8x128xf32>
    %cst_269 = arith.constant 2.000000e-01 : f32
    %538 = vector.broadcast %cst_269 : f32 to vector<8x128xf32>
    %539 = arith.mulf %538, %537 : vector<8x128xf32>
    %540 = arith.maximumf %537, %539 : vector<8x128xf32>
    %c123 = arith.constant 123 : index
    %c0_270 = arith.constant 0 : index
    %c0_271 = arith.constant 0 : index
    %541 = vector.load %arg1[%c123, %c0_270, %c0_271] : memref<312x8x128xf32, #tpu.memory_space<vmem>>, vector<1x8x128xf32>
    %542 = vector.shape_cast %541 : vector<1x8x128xf32> to vector<8x128xf32>
    %543 = arith.mulf %510, %542 : vector<8x128xf32>
    %544 = arith.mulf %356, %543 : vector<8x128xf32>
    %c131 = arith.constant 131 : index
    %c0_272 = arith.constant 0 : index
    %c0_273 = arith.constant 0 : index
    %545 = vector.load %arg1[%c131, %c0_272, %c0_273] : memref<312x8x128xf32, #tpu.memory_space<vmem>>, vector<1x8x128xf32>
    %546 = vector.shape_cast %545 : vector<1x8x128xf32> to vector<8x128xf32>
    %547 = arith.addf %544, %546 : vector<8x128xf32>
    %cst_274 = arith.constant 2.000000e-01 : f32
    %548 = vector.broadcast %cst_274 : f32 to vector<8x128xf32>
    %549 = arith.mulf %548, %547 : vector<8x128xf32>
    %550 = arith.maximumf %547, %549 : vector<8x128xf32>
    %c124 = arith.constant 124 : index
    %c0_275 = arith.constant 0 : index
    %c0_276 = arith.constant 0 : index
    %551 = vector.load %arg1[%c124, %c0_275, %c0_276] : memref<312x8x128xf32, #tpu.memory_space<vmem>>, vector<1x8x128xf32>
    %552 = vector.shape_cast %551 : vector<1x8x128xf32> to vector<8x128xf32>
    %553 = arith.mulf %510, %552 : vector<8x128xf32>
    %554 = arith.mulf %390, %553 : vector<8x128xf32>
    %c132 = arith.constant 132 : index
    %c0_277 = arith.constant 0 : index
    %c0_278 = arith.constant 0 : index
    %555 = vector.load %arg1[%c132, %c0_277, %c0_278] : memref<312x8x128xf32, #tpu.memory_space<vmem>>, vector<1x8x128xf32>
    %556 = vector.shape_cast %555 : vector<1x8x128xf32> to vector<8x128xf32>
    %557 = arith.addf %554, %556 : vector<8x128xf32>
    %cst_279 = arith.constant 2.000000e-01 : f32
    %558 = vector.broadcast %cst_279 : f32 to vector<8x128xf32>
    %559 = arith.mulf %558, %557 : vector<8x128xf32>
    %560 = arith.maximumf %557, %559 : vector<8x128xf32>
    %c125 = arith.constant 125 : index
    %c0_280 = arith.constant 0 : index
    %c0_281 = arith.constant 0 : index
    %561 = vector.load %arg1[%c125, %c0_280, %c0_281] : memref<312x8x128xf32, #tpu.memory_space<vmem>>, vector<1x8x128xf32>
    %562 = vector.shape_cast %561 : vector<1x8x128xf32> to vector<8x128xf32>
    %563 = arith.mulf %510, %562 : vector<8x128xf32>
    %564 = arith.mulf %424, %563 : vector<8x128xf32>
    %c133 = arith.constant 133 : index
    %c0_282 = arith.constant 0 : index
    %c0_283 = arith.constant 0 : index
    %565 = vector.load %arg1[%c133, %c0_282, %c0_283] : memref<312x8x128xf32, #tpu.memory_space<vmem>>, vector<1x8x128xf32>
    %566 = vector.shape_cast %565 : vector<1x8x128xf32> to vector<8x128xf32>
    %567 = arith.addf %564, %566 : vector<8x128xf32>
    %cst_284 = arith.constant 2.000000e-01 : f32
    %568 = vector.broadcast %cst_284 : f32 to vector<8x128xf32>
    %569 = arith.mulf %568, %567 : vector<8x128xf32>
    %570 = arith.maximumf %567, %569 : vector<8x128xf32>
    %c126 = arith.constant 126 : index
    %c0_285 = arith.constant 0 : index
    %c0_286 = arith.constant 0 : index
    %571 = vector.load %arg1[%c126, %c0_285, %c0_286] : memref<312x8x128xf32, #tpu.memory_space<vmem>>, vector<1x8x128xf32>
    %572 = vector.shape_cast %571 : vector<1x8x128xf32> to vector<8x128xf32>
    %573 = arith.mulf %510, %572 : vector<8x128xf32>
    %574 = arith.mulf %458, %573 : vector<8x128xf32>
    %c134 = arith.constant 134 : index
    %c0_287 = arith.constant 0 : index
    %c0_288 = arith.constant 0 : index
    %575 = vector.load %arg1[%c134, %c0_287, %c0_288] : memref<312x8x128xf32, #tpu.memory_space<vmem>>, vector<1x8x128xf32>
    %576 = vector.shape_cast %575 : vector<1x8x128xf32> to vector<8x128xf32>
    %577 = arith.addf %574, %576 : vector<8x128xf32>
    %cst_289 = arith.constant 2.000000e-01 : f32
    %578 = vector.broadcast %cst_289 : f32 to vector<8x128xf32>
    %579 = arith.mulf %578, %577 : vector<8x128xf32>
    %580 = arith.maximumf %577, %579 : vector<8x128xf32>
    %c127 = arith.constant 127 : index
    %c0_290 = arith.constant 0 : index
    %c0_291 = arith.constant 0 : index
    %581 = vector.load %arg1[%c127, %c0_290, %c0_291] : memref<312x8x128xf32, #tpu.memory_space<vmem>>, vector<1x8x128xf32>
    %582 = vector.shape_cast %581 : vector<1x8x128xf32> to vector<8x128xf32>
    %583 = arith.mulf %510, %582 : vector<8x128xf32>
    %584 = arith.mulf %492, %583 : vector<8x128xf32>
    %c135 = arith.constant 135 : index
    %c0_292 = arith.constant 0 : index
    %c0_293 = arith.constant 0 : index
    %585 = vector.load %arg1[%c135, %c0_292, %c0_293] : memref<312x8x128xf32, #tpu.memory_space<vmem>>, vector<1x8x128xf32>
    %586 = vector.shape_cast %585 : vector<1x8x128xf32> to vector<8x128xf32>
    %587 = arith.addf %584, %586 : vector<8x128xf32>
    %cst_294 = arith.constant 2.000000e-01 : f32
    %588 = vector.broadcast %cst_294 : f32 to vector<8x128xf32>
    %589 = arith.mulf %588, %587 : vector<8x128xf32>
    %590 = arith.maximumf %587, %589 : vector<8x128xf32>
    %c136 = arith.constant 136 : index
    %c0_295 = arith.constant 0 : index
    %c0_296 = arith.constant 0 : index
    %591 = vector.load %arg1[%c136, %c0_295, %c0_296] : memref<312x8x128xf32, #tpu.memory_space<vmem>>, vector<1x8x128xf32>
    %592 = vector.shape_cast %591 : vector<1x8x128xf32> to vector<8x128xf32>
    %593 = arith.mulf %592, %520 : vector<8x128xf32>
    %c137 = arith.constant 137 : index
    %c0_297 = arith.constant 0 : index
    %c0_298 = arith.constant 0 : index
    %594 = vector.load %arg1[%c137, %c0_297, %c0_298] : memref<312x8x128xf32, #tpu.memory_space<vmem>>, vector<1x8x128xf32>
    %595 = vector.shape_cast %594 : vector<1x8x128xf32> to vector<8x128xf32>
    %596 = arith.mulf %595, %530 : vector<8x128xf32>
    %597 = arith.addf %593, %596 : vector<8x128xf32>
    %c138 = arith.constant 138 : index
    %c0_299 = arith.constant 0 : index
    %c0_300 = arith.constant 0 : index
    %598 = vector.load %arg1[%c138, %c0_299, %c0_300] : memref<312x8x128xf32, #tpu.memory_space<vmem>>, vector<1x8x128xf32>
    %599 = vector.shape_cast %598 : vector<1x8x128xf32> to vector<8x128xf32>
    %600 = arith.mulf %599, %540 : vector<8x128xf32>
    %601 = arith.addf %597, %600 : vector<8x128xf32>
    %c139 = arith.constant 139 : index
    %c0_301 = arith.constant 0 : index
    %c0_302 = arith.constant 0 : index
    %602 = vector.load %arg1[%c139, %c0_301, %c0_302] : memref<312x8x128xf32, #tpu.memory_space<vmem>>, vector<1x8x128xf32>
    %603 = vector.shape_cast %602 : vector<1x8x128xf32> to vector<8x128xf32>
    %604 = arith.mulf %603, %550 : vector<8x128xf32>
    %605 = arith.addf %601, %604 : vector<8x128xf32>
    %c140 = arith.constant 140 : index
    %c0_303 = arith.constant 0 : index
    %c0_304 = arith.constant 0 : index
    %606 = vector.load %arg1[%c140, %c0_303, %c0_304] : memref<312x8x128xf32, #tpu.memory_space<vmem>>, vector<1x8x128xf32>
    %607 = vector.shape_cast %606 : vector<1x8x128xf32> to vector<8x128xf32>
    %608 = arith.mulf %607, %560 : vector<8x128xf32>
    %609 = arith.addf %605, %608 : vector<8x128xf32>
    %c141 = arith.constant 141 : index
    %c0_305 = arith.constant 0 : index
    %c0_306 = arith.constant 0 : index
    %610 = vector.load %arg1[%c141, %c0_305, %c0_306] : memref<312x8x128xf32, #tpu.memory_space<vmem>>, vector<1x8x128xf32>
    %611 = vector.shape_cast %610 : vector<1x8x128xf32> to vector<8x128xf32>
    %612 = arith.mulf %611, %570 : vector<8x128xf32>
    %613 = arith.addf %609, %612 : vector<8x128xf32>
    %c142 = arith.constant 142 : index
    %c0_307 = arith.constant 0 : index
    %c0_308 = arith.constant 0 : index
    %614 = vector.load %arg1[%c142, %c0_307, %c0_308] : memref<312x8x128xf32, #tpu.memory_space<vmem>>, vector<1x8x128xf32>
    %615 = vector.shape_cast %614 : vector<1x8x128xf32> to vector<8x128xf32>
    %616 = arith.mulf %615, %580 : vector<8x128xf32>
    %617 = arith.addf %613, %616 : vector<8x128xf32>
    %c143 = arith.constant 143 : index
    %c0_309 = arith.constant 0 : index
    %c0_310 = arith.constant 0 : index
    %618 = vector.load %arg1[%c143, %c0_309, %c0_310] : memref<312x8x128xf32, #tpu.memory_space<vmem>>, vector<1x8x128xf32>
    %619 = vector.shape_cast %618 : vector<1x8x128xf32> to vector<8x128xf32>
    %620 = arith.mulf %619, %590 : vector<8x128xf32>
    %621 = arith.addf %617, %620 : vector<8x128xf32>
    %c264 = arith.constant 264 : index
    %c0_311 = arith.constant 0 : index
    %c0_312 = arith.constant 0 : index
    %622 = vector.load %arg1[%c264, %c0_311, %c0_312] : memref<312x8x128xf32, #tpu.memory_space<vmem>>, vector<1x8x128xf32>
    %623 = vector.shape_cast %622 : vector<1x8x128xf32> to vector<8x128xf32>
    %624 = arith.addf %621, %623 : vector<8x128xf32>
    %c144 = arith.constant 144 : index
    %c0_313 = arith.constant 0 : index
    %c0_314 = arith.constant 0 : index
    %625 = vector.load %arg1[%c144, %c0_313, %c0_314] : memref<312x8x128xf32, #tpu.memory_space<vmem>>, vector<1x8x128xf32>
    %626 = vector.shape_cast %625 : vector<1x8x128xf32> to vector<8x128xf32>
    %627 = arith.mulf %626, %520 : vector<8x128xf32>
    %c145 = arith.constant 145 : index
    %c0_315 = arith.constant 0 : index
    %c0_316 = arith.constant 0 : index
    %628 = vector.load %arg1[%c145, %c0_315, %c0_316] : memref<312x8x128xf32, #tpu.memory_space<vmem>>, vector<1x8x128xf32>
    %629 = vector.shape_cast %628 : vector<1x8x128xf32> to vector<8x128xf32>
    %630 = arith.mulf %629, %530 : vector<8x128xf32>
    %631 = arith.addf %627, %630 : vector<8x128xf32>
    %c146 = arith.constant 146 : index
    %c0_317 = arith.constant 0 : index
    %c0_318 = arith.constant 0 : index
    %632 = vector.load %arg1[%c146, %c0_317, %c0_318] : memref<312x8x128xf32, #tpu.memory_space<vmem>>, vector<1x8x128xf32>
    %633 = vector.shape_cast %632 : vector<1x8x128xf32> to vector<8x128xf32>
    %634 = arith.mulf %633, %540 : vector<8x128xf32>
    %635 = arith.addf %631, %634 : vector<8x128xf32>
    %c147 = arith.constant 147 : index
    %c0_319 = arith.constant 0 : index
    %c0_320 = arith.constant 0 : index
    %636 = vector.load %arg1[%c147, %c0_319, %c0_320] : memref<312x8x128xf32, #tpu.memory_space<vmem>>, vector<1x8x128xf32>
    %637 = vector.shape_cast %636 : vector<1x8x128xf32> to vector<8x128xf32>
    %638 = arith.mulf %637, %550 : vector<8x128xf32>
    %639 = arith.addf %635, %638 : vector<8x128xf32>
    %c148 = arith.constant 148 : index
    %c0_321 = arith.constant 0 : index
    %c0_322 = arith.constant 0 : index
    %640 = vector.load %arg1[%c148, %c0_321, %c0_322] : memref<312x8x128xf32, #tpu.memory_space<vmem>>, vector<1x8x128xf32>
    %641 = vector.shape_cast %640 : vector<1x8x128xf32> to vector<8x128xf32>
    %642 = arith.mulf %641, %560 : vector<8x128xf32>
    %643 = arith.addf %639, %642 : vector<8x128xf32>
    %c149 = arith.constant 149 : index
    %c0_323 = arith.constant 0 : index
    %c0_324 = arith.constant 0 : index
    %644 = vector.load %arg1[%c149, %c0_323, %c0_324] : memref<312x8x128xf32, #tpu.memory_space<vmem>>, vector<1x8x128xf32>
    %645 = vector.shape_cast %644 : vector<1x8x128xf32> to vector<8x128xf32>
    %646 = arith.mulf %645, %570 : vector<8x128xf32>
    %647 = arith.addf %643, %646 : vector<8x128xf32>
    %c150 = arith.constant 150 : index
    %c0_325 = arith.constant 0 : index
    %c0_326 = arith.constant 0 : index
    %648 = vector.load %arg1[%c150, %c0_325, %c0_326] : memref<312x8x128xf32, #tpu.memory_space<vmem>>, vector<1x8x128xf32>
    %649 = vector.shape_cast %648 : vector<1x8x128xf32> to vector<8x128xf32>
    %650 = arith.mulf %649, %580 : vector<8x128xf32>
    %651 = arith.addf %647, %650 : vector<8x128xf32>
    %c151 = arith.constant 151 : index
    %c0_327 = arith.constant 0 : index
    %c0_328 = arith.constant 0 : index
    %652 = vector.load %arg1[%c151, %c0_327, %c0_328] : memref<312x8x128xf32, #tpu.memory_space<vmem>>, vector<1x8x128xf32>
    %653 = vector.shape_cast %652 : vector<1x8x128xf32> to vector<8x128xf32>
    %654 = arith.mulf %653, %590 : vector<8x128xf32>
    %655 = arith.addf %651, %654 : vector<8x128xf32>
    %c265 = arith.constant 265 : index
    %c0_329 = arith.constant 0 : index
    %c0_330 = arith.constant 0 : index
    %656 = vector.load %arg1[%c265, %c0_329, %c0_330] : memref<312x8x128xf32, #tpu.memory_space<vmem>>, vector<1x8x128xf32>
    %657 = vector.shape_cast %656 : vector<1x8x128xf32> to vector<8x128xf32>
    %658 = arith.addf %655, %657 : vector<8x128xf32>
    %c152 = arith.constant 152 : index
    %c0_331 = arith.constant 0 : index
    %c0_332 = arith.constant 0 : index
    %659 = vector.load %arg1[%c152, %c0_331, %c0_332] : memref<312x8x128xf32, #tpu.memory_space<vmem>>, vector<1x8x128xf32>
    %660 = vector.shape_cast %659 : vector<1x8x128xf32> to vector<8x128xf32>
    %661 = arith.mulf %660, %520 : vector<8x128xf32>
    %c153 = arith.constant 153 : index
    %c0_333 = arith.constant 0 : index
    %c0_334 = arith.constant 0 : index
    %662 = vector.load %arg1[%c153, %c0_333, %c0_334] : memref<312x8x128xf32, #tpu.memory_space<vmem>>, vector<1x8x128xf32>
    %663 = vector.shape_cast %662 : vector<1x8x128xf32> to vector<8x128xf32>
    %664 = arith.mulf %663, %530 : vector<8x128xf32>
    %665 = arith.addf %661, %664 : vector<8x128xf32>
    %c154 = arith.constant 154 : index
    %c0_335 = arith.constant 0 : index
    %c0_336 = arith.constant 0 : index
    %666 = vector.load %arg1[%c154, %c0_335, %c0_336] : memref<312x8x128xf32, #tpu.memory_space<vmem>>, vector<1x8x128xf32>
    %667 = vector.shape_cast %666 : vector<1x8x128xf32> to vector<8x128xf32>
    %668 = arith.mulf %667, %540 : vector<8x128xf32>
    %669 = arith.addf %665, %668 : vector<8x128xf32>
    %c155 = arith.constant 155 : index
    %c0_337 = arith.constant 0 : index
    %c0_338 = arith.constant 0 : index
    %670 = vector.load %arg1[%c155, %c0_337, %c0_338] : memref<312x8x128xf32, #tpu.memory_space<vmem>>, vector<1x8x128xf32>
    %671 = vector.shape_cast %670 : vector<1x8x128xf32> to vector<8x128xf32>
    %672 = arith.mulf %671, %550 : vector<8x128xf32>
    %673 = arith.addf %669, %672 : vector<8x128xf32>
    %c156 = arith.constant 156 : index
    %c0_339 = arith.constant 0 : index
    %c0_340 = arith.constant 0 : index
    %674 = vector.load %arg1[%c156, %c0_339, %c0_340] : memref<312x8x128xf32, #tpu.memory_space<vmem>>, vector<1x8x128xf32>
    %675 = vector.shape_cast %674 : vector<1x8x128xf32> to vector<8x128xf32>
    %676 = arith.mulf %675, %560 : vector<8x128xf32>
    %677 = arith.addf %673, %676 : vector<8x128xf32>
    %c157 = arith.constant 157 : index
    %c0_341 = arith.constant 0 : index
    %c0_342 = arith.constant 0 : index
    %678 = vector.load %arg1[%c157, %c0_341, %c0_342] : memref<312x8x128xf32, #tpu.memory_space<vmem>>, vector<1x8x128xf32>
    %679 = vector.shape_cast %678 : vector<1x8x128xf32> to vector<8x128xf32>
    %680 = arith.mulf %679, %570 : vector<8x128xf32>
    %681 = arith.addf %677, %680 : vector<8x128xf32>
    %c158 = arith.constant 158 : index
    %c0_343 = arith.constant 0 : index
    %c0_344 = arith.constant 0 : index
    %682 = vector.load %arg1[%c158, %c0_343, %c0_344] : memref<312x8x128xf32, #tpu.memory_space<vmem>>, vector<1x8x128xf32>
    %683 = vector.shape_cast %682 : vector<1x8x128xf32> to vector<8x128xf32>
    %684 = arith.mulf %683, %580 : vector<8x128xf32>
    %685 = arith.addf %681, %684 : vector<8x128xf32>
    %c159 = arith.constant 159 : index
    %c0_345 = arith.constant 0 : index
    %c0_346 = arith.constant 0 : index
    %686 = vector.load %arg1[%c159, %c0_345, %c0_346] : memref<312x8x128xf32, #tpu.memory_space<vmem>>, vector<1x8x128xf32>
    %687 = vector.shape_cast %686 : vector<1x8x128xf32> to vector<8x128xf32>
    %688 = arith.mulf %687, %590 : vector<8x128xf32>
    %689 = arith.addf %685, %688 : vector<8x128xf32>
    %c266 = arith.constant 266 : index
    %c0_347 = arith.constant 0 : index
    %c0_348 = arith.constant 0 : index
    %690 = vector.load %arg1[%c266, %c0_347, %c0_348] : memref<312x8x128xf32, #tpu.memory_space<vmem>>, vector<1x8x128xf32>
    %691 = vector.shape_cast %690 : vector<1x8x128xf32> to vector<8x128xf32>
    %692 = arith.addf %689, %691 : vector<8x128xf32>
    %c160 = arith.constant 160 : index
    %c0_349 = arith.constant 0 : index
    %c0_350 = arith.constant 0 : index
    %693 = vector.load %arg1[%c160, %c0_349, %c0_350] : memref<312x8x128xf32, #tpu.memory_space<vmem>>, vector<1x8x128xf32>
    %694 = vector.shape_cast %693 : vector<1x8x128xf32> to vector<8x128xf32>
    %695 = arith.mulf %694, %520 : vector<8x128xf32>
    %c161 = arith.constant 161 : index
    %c0_351 = arith.constant 0 : index
    %c0_352 = arith.constant 0 : index
    %696 = vector.load %arg1[%c161, %c0_351, %c0_352] : memref<312x8x128xf32, #tpu.memory_space<vmem>>, vector<1x8x128xf32>
    %697 = vector.shape_cast %696 : vector<1x8x128xf32> to vector<8x128xf32>
    %698 = arith.mulf %697, %530 : vector<8x128xf32>
    %699 = arith.addf %695, %698 : vector<8x128xf32>
    %c162 = arith.constant 162 : index
    %c0_353 = arith.constant 0 : index
    %c0_354 = arith.constant 0 : index
    %700 = vector.load %arg1[%c162, %c0_353, %c0_354] : memref<312x8x128xf32, #tpu.memory_space<vmem>>, vector<1x8x128xf32>
    %701 = vector.shape_cast %700 : vector<1x8x128xf32> to vector<8x128xf32>
    %702 = arith.mulf %701, %540 : vector<8x128xf32>
    %703 = arith.addf %699, %702 : vector<8x128xf32>
    %c163 = arith.constant 163 : index
    %c0_355 = arith.constant 0 : index
    %c0_356 = arith.constant 0 : index
    %704 = vector.load %arg1[%c163, %c0_355, %c0_356] : memref<312x8x128xf32, #tpu.memory_space<vmem>>, vector<1x8x128xf32>
    %705 = vector.shape_cast %704 : vector<1x8x128xf32> to vector<8x128xf32>
    %706 = arith.mulf %705, %550 : vector<8x128xf32>
    %707 = arith.addf %703, %706 : vector<8x128xf32>
    %c164 = arith.constant 164 : index
    %c0_357 = arith.constant 0 : index
    %c0_358 = arith.constant 0 : index
    %708 = vector.load %arg1[%c164, %c0_357, %c0_358] : memref<312x8x128xf32, #tpu.memory_space<vmem>>, vector<1x8x128xf32>
    %709 = vector.shape_cast %708 : vector<1x8x128xf32> to vector<8x128xf32>
    %710 = arith.mulf %709, %560 : vector<8x128xf32>
    %711 = arith.addf %707, %710 : vector<8x128xf32>
    %c165 = arith.constant 165 : index
    %c0_359 = arith.constant 0 : index
    %c0_360 = arith.constant 0 : index
    %712 = vector.load %arg1[%c165, %c0_359, %c0_360] : memref<312x8x128xf32, #tpu.memory_space<vmem>>, vector<1x8x128xf32>
    %713 = vector.shape_cast %712 : vector<1x8x128xf32> to vector<8x128xf32>
    %714 = arith.mulf %713, %570 : vector<8x128xf32>
    %715 = arith.addf %711, %714 : vector<8x128xf32>
    %c166 = arith.constant 166 : index
    %c0_361 = arith.constant 0 : index
    %c0_362 = arith.constant 0 : index
    %716 = vector.load %arg1[%c166, %c0_361, %c0_362] : memref<312x8x128xf32, #tpu.memory_space<vmem>>, vector<1x8x128xf32>
    %717 = vector.shape_cast %716 : vector<1x8x128xf32> to vector<8x128xf32>
    %718 = arith.mulf %717, %580 : vector<8x128xf32>
    %719 = arith.addf %715, %718 : vector<8x128xf32>
    %c167 = arith.constant 167 : index
    %c0_363 = arith.constant 0 : index
    %c0_364 = arith.constant 0 : index
    %720 = vector.load %arg1[%c167, %c0_363, %c0_364] : memref<312x8x128xf32, #tpu.memory_space<vmem>>, vector<1x8x128xf32>
    %721 = vector.shape_cast %720 : vector<1x8x128xf32> to vector<8x128xf32>
    %722 = arith.mulf %721, %590 : vector<8x128xf32>
    %723 = arith.addf %719, %722 : vector<8x128xf32>
    %c267 = arith.constant 267 : index
    %c0_365 = arith.constant 0 : index
    %c0_366 = arith.constant 0 : index
    %724 = vector.load %arg1[%c267, %c0_365, %c0_366] : memref<312x8x128xf32, #tpu.memory_space<vmem>>, vector<1x8x128xf32>
    %725 = vector.shape_cast %724 : vector<1x8x128xf32> to vector<8x128xf32>
    %726 = arith.addf %723, %725 : vector<8x128xf32>
    %c168 = arith.constant 168 : index
    %c0_367 = arith.constant 0 : index
    %c0_368 = arith.constant 0 : index
    %727 = vector.load %arg1[%c168, %c0_367, %c0_368] : memref<312x8x128xf32, #tpu.memory_space<vmem>>, vector<1x8x128xf32>
    %728 = vector.shape_cast %727 : vector<1x8x128xf32> to vector<8x128xf32>
    %729 = arith.mulf %728, %520 : vector<8x128xf32>
    %c169 = arith.constant 169 : index
    %c0_369 = arith.constant 0 : index
    %c0_370 = arith.constant 0 : index
    %730 = vector.load %arg1[%c169, %c0_369, %c0_370] : memref<312x8x128xf32, #tpu.memory_space<vmem>>, vector<1x8x128xf32>
    %731 = vector.shape_cast %730 : vector<1x8x128xf32> to vector<8x128xf32>
    %732 = arith.mulf %731, %530 : vector<8x128xf32>
    %733 = arith.addf %729, %732 : vector<8x128xf32>
    %c170 = arith.constant 170 : index
    %c0_371 = arith.constant 0 : index
    %c0_372 = arith.constant 0 : index
    %734 = vector.load %arg1[%c170, %c0_371, %c0_372] : memref<312x8x128xf32, #tpu.memory_space<vmem>>, vector<1x8x128xf32>
    %735 = vector.shape_cast %734 : vector<1x8x128xf32> to vector<8x128xf32>
    %736 = arith.mulf %735, %540 : vector<8x128xf32>
    %737 = arith.addf %733, %736 : vector<8x128xf32>
    %c171 = arith.constant 171 : index
    %c0_373 = arith.constant 0 : index
    %c0_374 = arith.constant 0 : index
    %738 = vector.load %arg1[%c171, %c0_373, %c0_374] : memref<312x8x128xf32, #tpu.memory_space<vmem>>, vector<1x8x128xf32>
    %739 = vector.shape_cast %738 : vector<1x8x128xf32> to vector<8x128xf32>
    %740 = arith.mulf %739, %550 : vector<8x128xf32>
    %741 = arith.addf %737, %740 : vector<8x128xf32>
    %c172 = arith.constant 172 : index
    %c0_375 = arith.constant 0 : index
    %c0_376 = arith.constant 0 : index
    %742 = vector.load %arg1[%c172, %c0_375, %c0_376] : memref<312x8x128xf32, #tpu.memory_space<vmem>>, vector<1x8x128xf32>
    %743 = vector.shape_cast %742 : vector<1x8x128xf32> to vector<8x128xf32>
    %744 = arith.mulf %743, %560 : vector<8x128xf32>
    %745 = arith.addf %741, %744 : vector<8x128xf32>
    %c173 = arith.constant 173 : index
    %c0_377 = arith.constant 0 : index
    %c0_378 = arith.constant 0 : index
    %746 = vector.load %arg1[%c173, %c0_377, %c0_378] : memref<312x8x128xf32, #tpu.memory_space<vmem>>, vector<1x8x128xf32>
    %747 = vector.shape_cast %746 : vector<1x8x128xf32> to vector<8x128xf32>
    %748 = arith.mulf %747, %570 : vector<8x128xf32>
    %749 = arith.addf %745, %748 : vector<8x128xf32>
    %c174 = arith.constant 174 : index
    %c0_379 = arith.constant 0 : index
    %c0_380 = arith.constant 0 : index
    %750 = vector.load %arg1[%c174, %c0_379, %c0_380] : memref<312x8x128xf32, #tpu.memory_space<vmem>>, vector<1x8x128xf32>
    %751 = vector.shape_cast %750 : vector<1x8x128xf32> to vector<8x128xf32>
    %752 = arith.mulf %751, %580 : vector<8x128xf32>
    %753 = arith.addf %749, %752 : vector<8x128xf32>
    %c175 = arith.constant 175 : index
    %c0_381 = arith.constant 0 : index
    %c0_382 = arith.constant 0 : index
    %754 = vector.load %arg1[%c175, %c0_381, %c0_382] : memref<312x8x128xf32, #tpu.memory_space<vmem>>, vector<1x8x128xf32>
    %755 = vector.shape_cast %754 : vector<1x8x128xf32> to vector<8x128xf32>
    %756 = arith.mulf %755, %590 : vector<8x128xf32>
    %757 = arith.addf %753, %756 : vector<8x128xf32>
    %c268 = arith.constant 268 : index
    %c0_383 = arith.constant 0 : index
    %c0_384 = arith.constant 0 : index
    %758 = vector.load %arg1[%c268, %c0_383, %c0_384] : memref<312x8x128xf32, #tpu.memory_space<vmem>>, vector<1x8x128xf32>
    %759 = vector.shape_cast %758 : vector<1x8x128xf32> to vector<8x128xf32>
    %760 = arith.addf %757, %759 : vector<8x128xf32>
    %c176 = arith.constant 176 : index
    %c0_385 = arith.constant 0 : index
    %c0_386 = arith.constant 0 : index
    %761 = vector.load %arg1[%c176, %c0_385, %c0_386] : memref<312x8x128xf32, #tpu.memory_space<vmem>>, vector<1x8x128xf32>
    %762 = vector.shape_cast %761 : vector<1x8x128xf32> to vector<8x128xf32>
    %763 = arith.mulf %762, %520 : vector<8x128xf32>
    %c177 = arith.constant 177 : index
    %c0_387 = arith.constant 0 : index
    %c0_388 = arith.constant 0 : index
    %764 = vector.load %arg1[%c177, %c0_387, %c0_388] : memref<312x8x128xf32, #tpu.memory_space<vmem>>, vector<1x8x128xf32>
    %765 = vector.shape_cast %764 : vector<1x8x128xf32> to vector<8x128xf32>
    %766 = arith.mulf %765, %530 : vector<8x128xf32>
    %767 = arith.addf %763, %766 : vector<8x128xf32>
    %c178 = arith.constant 178 : index
    %c0_389 = arith.constant 0 : index
    %c0_390 = arith.constant 0 : index
    %768 = vector.load %arg1[%c178, %c0_389, %c0_390] : memref<312x8x128xf32, #tpu.memory_space<vmem>>, vector<1x8x128xf32>
    %769 = vector.shape_cast %768 : vector<1x8x128xf32> to vector<8x128xf32>
    %770 = arith.mulf %769, %540 : vector<8x128xf32>
    %771 = arith.addf %767, %770 : vector<8x128xf32>
    %c179 = arith.constant 179 : index
    %c0_391 = arith.constant 0 : index
    %c0_392 = arith.constant 0 : index
    %772 = vector.load %arg1[%c179, %c0_391, %c0_392] : memref<312x8x128xf32, #tpu.memory_space<vmem>>, vector<1x8x128xf32>
    %773 = vector.shape_cast %772 : vector<1x8x128xf32> to vector<8x128xf32>
    %774 = arith.mulf %773, %550 : vector<8x128xf32>
    %775 = arith.addf %771, %774 : vector<8x128xf32>
    %c180 = arith.constant 180 : index
    %c0_393 = arith.constant 0 : index
    %c0_394 = arith.constant 0 : index
    %776 = vector.load %arg1[%c180, %c0_393, %c0_394] : memref<312x8x128xf32, #tpu.memory_space<vmem>>, vector<1x8x128xf32>
    %777 = vector.shape_cast %776 : vector<1x8x128xf32> to vector<8x128xf32>
    %778 = arith.mulf %777, %560 : vector<8x128xf32>
    %779 = arith.addf %775, %778 : vector<8x128xf32>
    %c181 = arith.constant 181 : index
    %c0_395 = arith.constant 0 : index
    %c0_396 = arith.constant 0 : index
    %780 = vector.load %arg1[%c181, %c0_395, %c0_396] : memref<312x8x128xf32, #tpu.memory_space<vmem>>, vector<1x8x128xf32>
    %781 = vector.shape_cast %780 : vector<1x8x128xf32> to vector<8x128xf32>
    %782 = arith.mulf %781, %570 : vector<8x128xf32>
    %783 = arith.addf %779, %782 : vector<8x128xf32>
    %c182 = arith.constant 182 : index
    %c0_397 = arith.constant 0 : index
    %c0_398 = arith.constant 0 : index
    %784 = vector.load %arg1[%c182, %c0_397, %c0_398] : memref<312x8x128xf32, #tpu.memory_space<vmem>>, vector<1x8x128xf32>
    %785 = vector.shape_cast %784 : vector<1x8x128xf32> to vector<8x128xf32>
    %786 = arith.mulf %785, %580 : vector<8x128xf32>
    %787 = arith.addf %783, %786 : vector<8x128xf32>
    %c183 = arith.constant 183 : index
    %c0_399 = arith.constant 0 : index
    %c0_400 = arith.constant 0 : index
    %788 = vector.load %arg1[%c183, %c0_399, %c0_400] : memref<312x8x128xf32, #tpu.memory_space<vmem>>, vector<1x8x128xf32>
    %789 = vector.shape_cast %788 : vector<1x8x128xf32> to vector<8x128xf32>
    %790 = arith.mulf %789, %590 : vector<8x128xf32>
    %791 = arith.addf %787, %790 : vector<8x128xf32>
    %c269 = arith.constant 269 : index
    %c0_401 = arith.constant 0 : index
    %c0_402 = arith.constant 0 : index
    %792 = vector.load %arg1[%c269, %c0_401, %c0_402] : memref<312x8x128xf32, #tpu.memory_space<vmem>>, vector<1x8x128xf32>
    %793 = vector.shape_cast %792 : vector<1x8x128xf32> to vector<8x128xf32>
    %794 = arith.addf %791, %793 : vector<8x128xf32>
    %c184 = arith.constant 184 : index
    %c0_403 = arith.constant 0 : index
    %c0_404 = arith.constant 0 : index
    %795 = vector.load %arg1[%c184, %c0_403, %c0_404] : memref<312x8x128xf32, #tpu.memory_space<vmem>>, vector<1x8x128xf32>
    %796 = vector.shape_cast %795 : vector<1x8x128xf32> to vector<8x128xf32>
    %797 = arith.mulf %796, %520 : vector<8x128xf32>
    %c185 = arith.constant 185 : index
    %c0_405 = arith.constant 0 : index
    %c0_406 = arith.constant 0 : index
    %798 = vector.load %arg1[%c185, %c0_405, %c0_406] : memref<312x8x128xf32, #tpu.memory_space<vmem>>, vector<1x8x128xf32>
    %799 = vector.shape_cast %798 : vector<1x8x128xf32> to vector<8x128xf32>
    %800 = arith.mulf %799, %530 : vector<8x128xf32>
    %801 = arith.addf %797, %800 : vector<8x128xf32>
    %c186 = arith.constant 186 : index
    %c0_407 = arith.constant 0 : index
    %c0_408 = arith.constant 0 : index
    %802 = vector.load %arg1[%c186, %c0_407, %c0_408] : memref<312x8x128xf32, #tpu.memory_space<vmem>>, vector<1x8x128xf32>
    %803 = vector.shape_cast %802 : vector<1x8x128xf32> to vector<8x128xf32>
    %804 = arith.mulf %803, %540 : vector<8x128xf32>
    %805 = arith.addf %801, %804 : vector<8x128xf32>
    %c187 = arith.constant 187 : index
    %c0_409 = arith.constant 0 : index
    %c0_410 = arith.constant 0 : index
    %806 = vector.load %arg1[%c187, %c0_409, %c0_410] : memref<312x8x128xf32, #tpu.memory_space<vmem>>, vector<1x8x128xf32>
    %807 = vector.shape_cast %806 : vector<1x8x128xf32> to vector<8x128xf32>
    %808 = arith.mulf %807, %550 : vector<8x128xf32>
    %809 = arith.addf %805, %808 : vector<8x128xf32>
    %c188 = arith.constant 188 : index
    %c0_411 = arith.constant 0 : index
    %c0_412 = arith.constant 0 : index
    %810 = vector.load %arg1[%c188, %c0_411, %c0_412] : memref<312x8x128xf32, #tpu.memory_space<vmem>>, vector<1x8x128xf32>
    %811 = vector.shape_cast %810 : vector<1x8x128xf32> to vector<8x128xf32>
    %812 = arith.mulf %811, %560 : vector<8x128xf32>
    %813 = arith.addf %809, %812 : vector<8x128xf32>
    %c189 = arith.constant 189 : index
    %c0_413 = arith.constant 0 : index
    %c0_414 = arith.constant 0 : index
    %814 = vector.load %arg1[%c189, %c0_413, %c0_414] : memref<312x8x128xf32, #tpu.memory_space<vmem>>, vector<1x8x128xf32>
    %815 = vector.shape_cast %814 : vector<1x8x128xf32> to vector<8x128xf32>
    %816 = arith.mulf %815, %570 : vector<8x128xf32>
    %817 = arith.addf %813, %816 : vector<8x128xf32>
    %c190 = arith.constant 190 : index
    %c0_415 = arith.constant 0 : index
    %c0_416 = arith.constant 0 : index
    %818 = vector.load %arg1[%c190, %c0_415, %c0_416] : memref<312x8x128xf32, #tpu.memory_space<vmem>>, vector<1x8x128xf32>
    %819 = vector.shape_cast %818 : vector<1x8x128xf32> to vector<8x128xf32>
    %820 = arith.mulf %819, %580 : vector<8x128xf32>
    %821 = arith.addf %817, %820 : vector<8x128xf32>
    %c191 = arith.constant 191 : index
    %c0_417 = arith.constant 0 : index
    %c0_418 = arith.constant 0 : index
    %822 = vector.load %arg1[%c191, %c0_417, %c0_418] : memref<312x8x128xf32, #tpu.memory_space<vmem>>, vector<1x8x128xf32>
    %823 = vector.shape_cast %822 : vector<1x8x128xf32> to vector<8x128xf32>
    %824 = arith.mulf %823, %590 : vector<8x128xf32>
    %825 = arith.addf %821, %824 : vector<8x128xf32>
    %c270 = arith.constant 270 : index
    %c0_419 = arith.constant 0 : index
    %c0_420 = arith.constant 0 : index
    %826 = vector.load %arg1[%c270, %c0_419, %c0_420] : memref<312x8x128xf32, #tpu.memory_space<vmem>>, vector<1x8x128xf32>
    %827 = vector.shape_cast %826 : vector<1x8x128xf32> to vector<8x128xf32>
    %828 = arith.addf %825, %827 : vector<8x128xf32>
    %c192 = arith.constant 192 : index
    %c0_421 = arith.constant 0 : index
    %c0_422 = arith.constant 0 : index
    %829 = vector.load %arg1[%c192, %c0_421, %c0_422] : memref<312x8x128xf32, #tpu.memory_space<vmem>>, vector<1x8x128xf32>
    %830 = vector.shape_cast %829 : vector<1x8x128xf32> to vector<8x128xf32>
    %831 = arith.mulf %830, %520 : vector<8x128xf32>
    %c193 = arith.constant 193 : index
    %c0_423 = arith.constant 0 : index
    %c0_424 = arith.constant 0 : index
    %832 = vector.load %arg1[%c193, %c0_423, %c0_424] : memref<312x8x128xf32, #tpu.memory_space<vmem>>, vector<1x8x128xf32>
    %833 = vector.shape_cast %832 : vector<1x8x128xf32> to vector<8x128xf32>
    %834 = arith.mulf %833, %530 : vector<8x128xf32>
    %835 = arith.addf %831, %834 : vector<8x128xf32>
    %c194 = arith.constant 194 : index
    %c0_425 = arith.constant 0 : index
    %c0_426 = arith.constant 0 : index
    %836 = vector.load %arg1[%c194, %c0_425, %c0_426] : memref<312x8x128xf32, #tpu.memory_space<vmem>>, vector<1x8x128xf32>
    %837 = vector.shape_cast %836 : vector<1x8x128xf32> to vector<8x128xf32>
    %838 = arith.mulf %837, %540 : vector<8x128xf32>
    %839 = arith.addf %835, %838 : vector<8x128xf32>
    %c195 = arith.constant 195 : index
    %c0_427 = arith.constant 0 : index
    %c0_428 = arith.constant 0 : index
    %840 = vector.load %arg1[%c195, %c0_427, %c0_428] : memref<312x8x128xf32, #tpu.memory_space<vmem>>, vector<1x8x128xf32>
    %841 = vector.shape_cast %840 : vector<1x8x128xf32> to vector<8x128xf32>
    %842 = arith.mulf %841, %550 : vector<8x128xf32>
    %843 = arith.addf %839, %842 : vector<8x128xf32>
    %c196 = arith.constant 196 : index
    %c0_429 = arith.constant 0 : index
    %c0_430 = arith.constant 0 : index
    %844 = vector.load %arg1[%c196, %c0_429, %c0_430] : memref<312x8x128xf32, #tpu.memory_space<vmem>>, vector<1x8x128xf32>
    %845 = vector.shape_cast %844 : vector<1x8x128xf32> to vector<8x128xf32>
    %846 = arith.mulf %845, %560 : vector<8x128xf32>
    %847 = arith.addf %843, %846 : vector<8x128xf32>
    %c197 = arith.constant 197 : index
    %c0_431 = arith.constant 0 : index
    %c0_432 = arith.constant 0 : index
    %848 = vector.load %arg1[%c197, %c0_431, %c0_432] : memref<312x8x128xf32, #tpu.memory_space<vmem>>, vector<1x8x128xf32>
    %849 = vector.shape_cast %848 : vector<1x8x128xf32> to vector<8x128xf32>
    %850 = arith.mulf %849, %570 : vector<8x128xf32>
    %851 = arith.addf %847, %850 : vector<8x128xf32>
    %c198 = arith.constant 198 : index
    %c0_433 = arith.constant 0 : index
    %c0_434 = arith.constant 0 : index
    %852 = vector.load %arg1[%c198, %c0_433, %c0_434] : memref<312x8x128xf32, #tpu.memory_space<vmem>>, vector<1x8x128xf32>
    %853 = vector.shape_cast %852 : vector<1x8x128xf32> to vector<8x128xf32>
    %854 = arith.mulf %853, %580 : vector<8x128xf32>
    %855 = arith.addf %851, %854 : vector<8x128xf32>
    %c199 = arith.constant 199 : index
    %c0_435 = arith.constant 0 : index
    %c0_436 = arith.constant 0 : index
    %856 = vector.load %arg1[%c199, %c0_435, %c0_436] : memref<312x8x128xf32, #tpu.memory_space<vmem>>, vector<1x8x128xf32>
    %857 = vector.shape_cast %856 : vector<1x8x128xf32> to vector<8x128xf32>
    %858 = arith.mulf %857, %590 : vector<8x128xf32>
    %859 = arith.addf %855, %858 : vector<8x128xf32>
    %c271 = arith.constant 271 : index
    %c0_437 = arith.constant 0 : index
    %c0_438 = arith.constant 0 : index
    %860 = vector.load %arg1[%c271, %c0_437, %c0_438] : memref<312x8x128xf32, #tpu.memory_space<vmem>>, vector<1x8x128xf32>
    %861 = vector.shape_cast %860 : vector<1x8x128xf32> to vector<8x128xf32>
    %862 = arith.addf %859, %861 : vector<8x128xf32>
    %c200 = arith.constant 200 : index
    %c0_439 = arith.constant 0 : index
    %c0_440 = arith.constant 0 : index
    %863 = vector.load %arg1[%c200, %c0_439, %c0_440] : memref<312x8x128xf32, #tpu.memory_space<vmem>>, vector<1x8x128xf32>
    %864 = vector.shape_cast %863 : vector<1x8x128xf32> to vector<8x128xf32>
    %865 = arith.mulf %864, %520 : vector<8x128xf32>
    %c201 = arith.constant 201 : index
    %c0_441 = arith.constant 0 : index
    %c0_442 = arith.constant 0 : index
    %866 = vector.load %arg1[%c201, %c0_441, %c0_442] : memref<312x8x128xf32, #tpu.memory_space<vmem>>, vector<1x8x128xf32>
    %867 = vector.shape_cast %866 : vector<1x8x128xf32> to vector<8x128xf32>
    %868 = arith.mulf %867, %530 : vector<8x128xf32>
    %869 = arith.addf %865, %868 : vector<8x128xf32>
    %c202 = arith.constant 202 : index
    %c0_443 = arith.constant 0 : index
    %c0_444 = arith.constant 0 : index
    %870 = vector.load %arg1[%c202, %c0_443, %c0_444] : memref<312x8x128xf32, #tpu.memory_space<vmem>>, vector<1x8x128xf32>
    %871 = vector.shape_cast %870 : vector<1x8x128xf32> to vector<8x128xf32>
    %872 = arith.mulf %871, %540 : vector<8x128xf32>
    %873 = arith.addf %869, %872 : vector<8x128xf32>
    %c203 = arith.constant 203 : index
    %c0_445 = arith.constant 0 : index
    %c0_446 = arith.constant 0 : index
    %874 = vector.load %arg1[%c203, %c0_445, %c0_446] : memref<312x8x128xf32, #tpu.memory_space<vmem>>, vector<1x8x128xf32>
    %875 = vector.shape_cast %874 : vector<1x8x128xf32> to vector<8x128xf32>
    %876 = arith.mulf %875, %550 : vector<8x128xf32>
    %877 = arith.addf %873, %876 : vector<8x128xf32>
    %c204 = arith.constant 204 : index
    %c0_447 = arith.constant 0 : index
    %c0_448 = arith.constant 0 : index
    %878 = vector.load %arg1[%c204, %c0_447, %c0_448] : memref<312x8x128xf32, #tpu.memory_space<vmem>>, vector<1x8x128xf32>
    %879 = vector.shape_cast %878 : vector<1x8x128xf32> to vector<8x128xf32>
    %880 = arith.mulf %879, %560 : vector<8x128xf32>
    %881 = arith.addf %877, %880 : vector<8x128xf32>
    %c205 = arith.constant 205 : index
    %c0_449 = arith.constant 0 : index
    %c0_450 = arith.constant 0 : index
    %882 = vector.load %arg1[%c205, %c0_449, %c0_450] : memref<312x8x128xf32, #tpu.memory_space<vmem>>, vector<1x8x128xf32>
    %883 = vector.shape_cast %882 : vector<1x8x128xf32> to vector<8x128xf32>
    %884 = arith.mulf %883, %570 : vector<8x128xf32>
    %885 = arith.addf %881, %884 : vector<8x128xf32>
    %c206 = arith.constant 206 : index
    %c0_451 = arith.constant 0 : index
    %c0_452 = arith.constant 0 : index
    %886 = vector.load %arg1[%c206, %c0_451, %c0_452] : memref<312x8x128xf32, #tpu.memory_space<vmem>>, vector<1x8x128xf32>
    %887 = vector.shape_cast %886 : vector<1x8x128xf32> to vector<8x128xf32>
    %888 = arith.mulf %887, %580 : vector<8x128xf32>
    %889 = arith.addf %885, %888 : vector<8x128xf32>
    %c207 = arith.constant 207 : index
    %c0_453 = arith.constant 0 : index
    %c0_454 = arith.constant 0 : index
    %890 = vector.load %arg1[%c207, %c0_453, %c0_454] : memref<312x8x128xf32, #tpu.memory_space<vmem>>, vector<1x8x128xf32>
    %891 = vector.shape_cast %890 : vector<1x8x128xf32> to vector<8x128xf32>
    %892 = arith.mulf %891, %590 : vector<8x128xf32>
    %893 = arith.addf %889, %892 : vector<8x128xf32>
    %c272 = arith.constant 272 : index
    %c0_455 = arith.constant 0 : index
    %c0_456 = arith.constant 0 : index
    %894 = vector.load %arg1[%c272, %c0_455, %c0_456] : memref<312x8x128xf32, #tpu.memory_space<vmem>>, vector<1x8x128xf32>
    %895 = vector.shape_cast %894 : vector<1x8x128xf32> to vector<8x128xf32>
    %896 = arith.addf %893, %895 : vector<8x128xf32>
    %c208 = arith.constant 208 : index
    %c0_457 = arith.constant 0 : index
    %c0_458 = arith.constant 0 : index
    %897 = vector.load %arg1[%c208, %c0_457, %c0_458] : memref<312x8x128xf32, #tpu.memory_space<vmem>>, vector<1x8x128xf32>
    %898 = vector.shape_cast %897 : vector<1x8x128xf32> to vector<8x128xf32>
    %899 = arith.mulf %898, %520 : vector<8x128xf32>
    %c209 = arith.constant 209 : index
    %c0_459 = arith.constant 0 : index
    %c0_460 = arith.constant 0 : index
    %900 = vector.load %arg1[%c209, %c0_459, %c0_460] : memref<312x8x128xf32, #tpu.memory_space<vmem>>, vector<1x8x128xf32>
    %901 = vector.shape_cast %900 : vector<1x8x128xf32> to vector<8x128xf32>
    %902 = arith.mulf %901, %530 : vector<8x128xf32>
    %903 = arith.addf %899, %902 : vector<8x128xf32>
    %c210 = arith.constant 210 : index
    %c0_461 = arith.constant 0 : index
    %c0_462 = arith.constant 0 : index
    %904 = vector.load %arg1[%c210, %c0_461, %c0_462] : memref<312x8x128xf32, #tpu.memory_space<vmem>>, vector<1x8x128xf32>
    %905 = vector.shape_cast %904 : vector<1x8x128xf32> to vector<8x128xf32>
    %906 = arith.mulf %905, %540 : vector<8x128xf32>
    %907 = arith.addf %903, %906 : vector<8x128xf32>
    %c211 = arith.constant 211 : index
    %c0_463 = arith.constant 0 : index
    %c0_464 = arith.constant 0 : index
    %908 = vector.load %arg1[%c211, %c0_463, %c0_464] : memref<312x8x128xf32, #tpu.memory_space<vmem>>, vector<1x8x128xf32>
    %909 = vector.shape_cast %908 : vector<1x8x128xf32> to vector<8x128xf32>
    %910 = arith.mulf %909, %550 : vector<8x128xf32>
    %911 = arith.addf %907, %910 : vector<8x128xf32>
    %c212 = arith.constant 212 : index
    %c0_465 = arith.constant 0 : index
    %c0_466 = arith.constant 0 : index
    %912 = vector.load %arg1[%c212, %c0_465, %c0_466] : memref<312x8x128xf32, #tpu.memory_space<vmem>>, vector<1x8x128xf32>
    %913 = vector.shape_cast %912 : vector<1x8x128xf32> to vector<8x128xf32>
    %914 = arith.mulf %913, %560 : vector<8x128xf32>
    %915 = arith.addf %911, %914 : vector<8x128xf32>
    %c213 = arith.constant 213 : index
    %c0_467 = arith.constant 0 : index
    %c0_468 = arith.constant 0 : index
    %916 = vector.load %arg1[%c213, %c0_467, %c0_468] : memref<312x8x128xf32, #tpu.memory_space<vmem>>, vector<1x8x128xf32>
    %917 = vector.shape_cast %916 : vector<1x8x128xf32> to vector<8x128xf32>
    %918 = arith.mulf %917, %570 : vector<8x128xf32>
    %919 = arith.addf %915, %918 : vector<8x128xf32>
    %c214 = arith.constant 214 : index
    %c0_469 = arith.constant 0 : index
    %c0_470 = arith.constant 0 : index
    %920 = vector.load %arg1[%c214, %c0_469, %c0_470] : memref<312x8x128xf32, #tpu.memory_space<vmem>>, vector<1x8x128xf32>
    %921 = vector.shape_cast %920 : vector<1x8x128xf32> to vector<8x128xf32>
    %922 = arith.mulf %921, %580 : vector<8x128xf32>
    %923 = arith.addf %919, %922 : vector<8x128xf32>
    %c215 = arith.constant 215 : index
    %c0_471 = arith.constant 0 : index
    %c0_472 = arith.constant 0 : index
    %924 = vector.load %arg1[%c215, %c0_471, %c0_472] : memref<312x8x128xf32, #tpu.memory_space<vmem>>, vector<1x8x128xf32>
    %925 = vector.shape_cast %924 : vector<1x8x128xf32> to vector<8x128xf32>
    %926 = arith.mulf %925, %590 : vector<8x128xf32>
    %927 = arith.addf %923, %926 : vector<8x128xf32>
    %c273 = arith.constant 273 : index
    %c0_473 = arith.constant 0 : index
    %c0_474 = arith.constant 0 : index
    %928 = vector.load %arg1[%c273, %c0_473, %c0_474] : memref<312x8x128xf32, #tpu.memory_space<vmem>>, vector<1x8x128xf32>
    %929 = vector.shape_cast %928 : vector<1x8x128xf32> to vector<8x128xf32>
    %930 = arith.addf %927, %929 : vector<8x128xf32>
    %c216 = arith.constant 216 : index
    %c0_475 = arith.constant 0 : index
    %c0_476 = arith.constant 0 : index
    %931 = vector.load %arg1[%c216, %c0_475, %c0_476] : memref<312x8x128xf32, #tpu.memory_space<vmem>>, vector<1x8x128xf32>
    %932 = vector.shape_cast %931 : vector<1x8x128xf32> to vector<8x128xf32>
    %933 = arith.mulf %932, %520 : vector<8x128xf32>
    %c217 = arith.constant 217 : index
    %c0_477 = arith.constant 0 : index
    %c0_478 = arith.constant 0 : index
    %934 = vector.load %arg1[%c217, %c0_477, %c0_478] : memref<312x8x128xf32, #tpu.memory_space<vmem>>, vector<1x8x128xf32>
    %935 = vector.shape_cast %934 : vector<1x8x128xf32> to vector<8x128xf32>
    %936 = arith.mulf %935, %530 : vector<8x128xf32>
    %937 = arith.addf %933, %936 : vector<8x128xf32>
    %c218 = arith.constant 218 : index
    %c0_479 = arith.constant 0 : index
    %c0_480 = arith.constant 0 : index
    %938 = vector.load %arg1[%c218, %c0_479, %c0_480] : memref<312x8x128xf32, #tpu.memory_space<vmem>>, vector<1x8x128xf32>
    %939 = vector.shape_cast %938 : vector<1x8x128xf32> to vector<8x128xf32>
    %940 = arith.mulf %939, %540 : vector<8x128xf32>
    %941 = arith.addf %937, %940 : vector<8x128xf32>
    %c219 = arith.constant 219 : index
    %c0_481 = arith.constant 0 : index
    %c0_482 = arith.constant 0 : index
    %942 = vector.load %arg1[%c219, %c0_481, %c0_482] : memref<312x8x128xf32, #tpu.memory_space<vmem>>, vector<1x8x128xf32>
    %943 = vector.shape_cast %942 : vector<1x8x128xf32> to vector<8x128xf32>
    %944 = arith.mulf %943, %550 : vector<8x128xf32>
    %945 = arith.addf %941, %944 : vector<8x128xf32>
    %c220 = arith.constant 220 : index
    %c0_483 = arith.constant 0 : index
    %c0_484 = arith.constant 0 : index
    %946 = vector.load %arg1[%c220, %c0_483, %c0_484] : memref<312x8x128xf32, #tpu.memory_space<vmem>>, vector<1x8x128xf32>
    %947 = vector.shape_cast %946 : vector<1x8x128xf32> to vector<8x128xf32>
    %948 = arith.mulf %947, %560 : vector<8x128xf32>
    %949 = arith.addf %945, %948 : vector<8x128xf32>
    %c221 = arith.constant 221 : index
    %c0_485 = arith.constant 0 : index
    %c0_486 = arith.constant 0 : index
    %950 = vector.load %arg1[%c221, %c0_485, %c0_486] : memref<312x8x128xf32, #tpu.memory_space<vmem>>, vector<1x8x128xf32>
    %951 = vector.shape_cast %950 : vector<1x8x128xf32> to vector<8x128xf32>
    %952 = arith.mulf %951, %570 : vector<8x128xf32>
    %953 = arith.addf %949, %952 : vector<8x128xf32>
    %c222 = arith.constant 222 : index
    %c0_487 = arith.constant 0 : index
    %c0_488 = arith.constant 0 : index
    %954 = vector.load %arg1[%c222, %c0_487, %c0_488] : memref<312x8x128xf32, #tpu.memory_space<vmem>>, vector<1x8x128xf32>
    %955 = vector.shape_cast %954 : vector<1x8x128xf32> to vector<8x128xf32>
    %956 = arith.mulf %955, %580 : vector<8x128xf32>
    %957 = arith.addf %953, %956 : vector<8x128xf32>
    %c223 = arith.constant 223 : index
    %c0_489 = arith.constant 0 : index
    %c0_490 = arith.constant 0 : index
    %958 = vector.load %arg1[%c223, %c0_489, %c0_490] : memref<312x8x128xf32, #tpu.memory_space<vmem>>, vector<1x8x128xf32>
    %959 = vector.shape_cast %958 : vector<1x8x128xf32> to vector<8x128xf32>
    %960 = arith.mulf %959, %590 : vector<8x128xf32>
    %961 = arith.addf %957, %960 : vector<8x128xf32>
    %c274 = arith.constant 274 : index
    %c0_491 = arith.constant 0 : index
    %c0_492 = arith.constant 0 : index
    %962 = vector.load %arg1[%c274, %c0_491, %c0_492] : memref<312x8x128xf32, #tpu.memory_space<vmem>>, vector<1x8x128xf32>
    %963 = vector.shape_cast %962 : vector<1x8x128xf32> to vector<8x128xf32>
    %964 = arith.addf %961, %963 : vector<8x128xf32>
    %c224 = arith.constant 224 : index
    %c0_493 = arith.constant 0 : index
    %c0_494 = arith.constant 0 : index
    %965 = vector.load %arg1[%c224, %c0_493, %c0_494] : memref<312x8x128xf32, #tpu.memory_space<vmem>>, vector<1x8x128xf32>
    %966 = vector.shape_cast %965 : vector<1x8x128xf32> to vector<8x128xf32>
    %967 = arith.mulf %966, %520 : vector<8x128xf32>
    %c225 = arith.constant 225 : index
    %c0_495 = arith.constant 0 : index
    %c0_496 = arith.constant 0 : index
    %968 = vector.load %arg1[%c225, %c0_495, %c0_496] : memref<312x8x128xf32, #tpu.memory_space<vmem>>, vector<1x8x128xf32>
    %969 = vector.shape_cast %968 : vector<1x8x128xf32> to vector<8x128xf32>
    %970 = arith.mulf %969, %530 : vector<8x128xf32>
    %971 = arith.addf %967, %970 : vector<8x128xf32>
    %c226 = arith.constant 226 : index
    %c0_497 = arith.constant 0 : index
    %c0_498 = arith.constant 0 : index
    %972 = vector.load %arg1[%c226, %c0_497, %c0_498] : memref<312x8x128xf32, #tpu.memory_space<vmem>>, vector<1x8x128xf32>
    %973 = vector.shape_cast %972 : vector<1x8x128xf32> to vector<8x128xf32>
    %974 = arith.mulf %973, %540 : vector<8x128xf32>
    %975 = arith.addf %971, %974 : vector<8x128xf32>
    %c227 = arith.constant 227 : index
    %c0_499 = arith.constant 0 : index
    %c0_500 = arith.constant 0 : index
    %976 = vector.load %arg1[%c227, %c0_499, %c0_500] : memref<312x8x128xf32, #tpu.memory_space<vmem>>, vector<1x8x128xf32>
    %977 = vector.shape_cast %976 : vector<1x8x128xf32> to vector<8x128xf32>
    %978 = arith.mulf %977, %550 : vector<8x128xf32>
    %979 = arith.addf %975, %978 : vector<8x128xf32>
    %c228 = arith.constant 228 : index
    %c0_501 = arith.constant 0 : index
    %c0_502 = arith.constant 0 : index
    %980 = vector.load %arg1[%c228, %c0_501, %c0_502] : memref<312x8x128xf32, #tpu.memory_space<vmem>>, vector<1x8x128xf32>
    %981 = vector.shape_cast %980 : vector<1x8x128xf32> to vector<8x128xf32>
    %982 = arith.mulf %981, %560 : vector<8x128xf32>
    %983 = arith.addf %979, %982 : vector<8x128xf32>
    %c229 = arith.constant 229 : index
    %c0_503 = arith.constant 0 : index
    %c0_504 = arith.constant 0 : index
    %984 = vector.load %arg1[%c229, %c0_503, %c0_504] : memref<312x8x128xf32, #tpu.memory_space<vmem>>, vector<1x8x128xf32>
    %985 = vector.shape_cast %984 : vector<1x8x128xf32> to vector<8x128xf32>
    %986 = arith.mulf %985, %570 : vector<8x128xf32>
    %987 = arith.addf %983, %986 : vector<8x128xf32>
    %c230 = arith.constant 230 : index
    %c0_505 = arith.constant 0 : index
    %c0_506 = arith.constant 0 : index
    %988 = vector.load %arg1[%c230, %c0_505, %c0_506] : memref<312x8x128xf32, #tpu.memory_space<vmem>>, vector<1x8x128xf32>
    %989 = vector.shape_cast %988 : vector<1x8x128xf32> to vector<8x128xf32>
    %990 = arith.mulf %989, %580 : vector<8x128xf32>
    %991 = arith.addf %987, %990 : vector<8x128xf32>
    %c231 = arith.constant 231 : index
    %c0_507 = arith.constant 0 : index
    %c0_508 = arith.constant 0 : index
    %992 = vector.load %arg1[%c231, %c0_507, %c0_508] : memref<312x8x128xf32, #tpu.memory_space<vmem>>, vector<1x8x128xf32>
    %993 = vector.shape_cast %992 : vector<1x8x128xf32> to vector<8x128xf32>
    %994 = arith.mulf %993, %590 : vector<8x128xf32>
    %995 = arith.addf %991, %994 : vector<8x128xf32>
    %c275 = arith.constant 275 : index
    %c0_509 = arith.constant 0 : index
    %c0_510 = arith.constant 0 : index
    %996 = vector.load %arg1[%c275, %c0_509, %c0_510] : memref<312x8x128xf32, #tpu.memory_space<vmem>>, vector<1x8x128xf32>
    %997 = vector.shape_cast %996 : vector<1x8x128xf32> to vector<8x128xf32>
    %998 = arith.addf %995, %997 : vector<8x128xf32>
    %c232 = arith.constant 232 : index
    %c0_511 = arith.constant 0 : index
    %c0_512 = arith.constant 0 : index
    %999 = vector.load %arg1[%c232, %c0_511, %c0_512] : memref<312x8x128xf32, #tpu.memory_space<vmem>>, vector<1x8x128xf32>
    %1000 = vector.shape_cast %999 : vector<1x8x128xf32> to vector<8x128xf32>
    %1001 = arith.mulf %1000, %520 : vector<8x128xf32>
    %c233 = arith.constant 233 : index
    %c0_513 = arith.constant 0 : index
    %c0_514 = arith.constant 0 : index
    %1002 = vector.load %arg1[%c233, %c0_513, %c0_514] : memref<312x8x128xf32, #tpu.memory_space<vmem>>, vector<1x8x128xf32>
    %1003 = vector.shape_cast %1002 : vector<1x8x128xf32> to vector<8x128xf32>
    %1004 = arith.mulf %1003, %530 : vector<8x128xf32>
    %1005 = arith.addf %1001, %1004 : vector<8x128xf32>
    %c234 = arith.constant 234 : index
    %c0_515 = arith.constant 0 : index
    %c0_516 = arith.constant 0 : index
    %1006 = vector.load %arg1[%c234, %c0_515, %c0_516] : memref<312x8x128xf32, #tpu.memory_space<vmem>>, vector<1x8x128xf32>
    %1007 = vector.shape_cast %1006 : vector<1x8x128xf32> to vector<8x128xf32>
    %1008 = arith.mulf %1007, %540 : vector<8x128xf32>
    %1009 = arith.addf %1005, %1008 : vector<8x128xf32>
    %c235 = arith.constant 235 : index
    %c0_517 = arith.constant 0 : index
    %c0_518 = arith.constant 0 : index
    %1010 = vector.load %arg1[%c235, %c0_517, %c0_518] : memref<312x8x128xf32, #tpu.memory_space<vmem>>, vector<1x8x128xf32>
    %1011 = vector.shape_cast %1010 : vector<1x8x128xf32> to vector<8x128xf32>
    %1012 = arith.mulf %1011, %550 : vector<8x128xf32>
    %1013 = arith.addf %1009, %1012 : vector<8x128xf32>
    %c236 = arith.constant 236 : index
    %c0_519 = arith.constant 0 : index
    %c0_520 = arith.constant 0 : index
    %1014 = vector.load %arg1[%c236, %c0_519, %c0_520] : memref<312x8x128xf32, #tpu.memory_space<vmem>>, vector<1x8x128xf32>
    %1015 = vector.shape_cast %1014 : vector<1x8x128xf32> to vector<8x128xf32>
    %1016 = arith.mulf %1015, %560 : vector<8x128xf32>
    %1017 = arith.addf %1013, %1016 : vector<8x128xf32>
    %c237 = arith.constant 237 : index
    %c0_521 = arith.constant 0 : index
    %c0_522 = arith.constant 0 : index
    %1018 = vector.load %arg1[%c237, %c0_521, %c0_522] : memref<312x8x128xf32, #tpu.memory_space<vmem>>, vector<1x8x128xf32>
    %1019 = vector.shape_cast %1018 : vector<1x8x128xf32> to vector<8x128xf32>
    %1020 = arith.mulf %1019, %570 : vector<8x128xf32>
    %1021 = arith.addf %1017, %1020 : vector<8x128xf32>
    %c238 = arith.constant 238 : index
    %c0_523 = arith.constant 0 : index
    %c0_524 = arith.constant 0 : index
    %1022 = vector.load %arg1[%c238, %c0_523, %c0_524] : memref<312x8x128xf32, #tpu.memory_space<vmem>>, vector<1x8x128xf32>
    %1023 = vector.shape_cast %1022 : vector<1x8x128xf32> to vector<8x128xf32>
    %1024 = arith.mulf %1023, %580 : vector<8x128xf32>
    %1025 = arith.addf %1021, %1024 : vector<8x128xf32>
    %c239 = arith.constant 239 : index
    %c0_525 = arith.constant 0 : index
    %c0_526 = arith.constant 0 : index
    %1026 = vector.load %arg1[%c239, %c0_525, %c0_526] : memref<312x8x128xf32, #tpu.memory_space<vmem>>, vector<1x8x128xf32>
    %1027 = vector.shape_cast %1026 : vector<1x8x128xf32> to vector<8x128xf32>
    %1028 = arith.mulf %1027, %590 : vector<8x128xf32>
    %1029 = arith.addf %1025, %1028 : vector<8x128xf32>
    %c276 = arith.constant 276 : index
    %c0_527 = arith.constant 0 : index
    %c0_528 = arith.constant 0 : index
    %1030 = vector.load %arg1[%c276, %c0_527, %c0_528] : memref<312x8x128xf32, #tpu.memory_space<vmem>>, vector<1x8x128xf32>
    %1031 = vector.shape_cast %1030 : vector<1x8x128xf32> to vector<8x128xf32>
    %1032 = arith.addf %1029, %1031 : vector<8x128xf32>
    %c240 = arith.constant 240 : index
    %c0_529 = arith.constant 0 : index
    %c0_530 = arith.constant 0 : index
    %1033 = vector.load %arg1[%c240, %c0_529, %c0_530] : memref<312x8x128xf32, #tpu.memory_space<vmem>>, vector<1x8x128xf32>
    %1034 = vector.shape_cast %1033 : vector<1x8x128xf32> to vector<8x128xf32>
    %1035 = arith.mulf %1034, %520 : vector<8x128xf32>
    %c241 = arith.constant 241 : index
    %c0_531 = arith.constant 0 : index
    %c0_532 = arith.constant 0 : index
    %1036 = vector.load %arg1[%c241, %c0_531, %c0_532] : memref<312x8x128xf32, #tpu.memory_space<vmem>>, vector<1x8x128xf32>
    %1037 = vector.shape_cast %1036 : vector<1x8x128xf32> to vector<8x128xf32>
    %1038 = arith.mulf %1037, %530 : vector<8x128xf32>
    %1039 = arith.addf %1035, %1038 : vector<8x128xf32>
    %c242 = arith.constant 242 : index
    %c0_533 = arith.constant 0 : index
    %c0_534 = arith.constant 0 : index
    %1040 = vector.load %arg1[%c242, %c0_533, %c0_534] : memref<312x8x128xf32, #tpu.memory_space<vmem>>, vector<1x8x128xf32>
    %1041 = vector.shape_cast %1040 : vector<1x8x128xf32> to vector<8x128xf32>
    %1042 = arith.mulf %1041, %540 : vector<8x128xf32>
    %1043 = arith.addf %1039, %1042 : vector<8x128xf32>
    %c243 = arith.constant 243 : index
    %c0_535 = arith.constant 0 : index
    %c0_536 = arith.constant 0 : index
    %1044 = vector.load %arg1[%c243, %c0_535, %c0_536] : memref<312x8x128xf32, #tpu.memory_space<vmem>>, vector<1x8x128xf32>
    %1045 = vector.shape_cast %1044 : vector<1x8x128xf32> to vector<8x128xf32>
    %1046 = arith.mulf %1045, %550 : vector<8x128xf32>
    %1047 = arith.addf %1043, %1046 : vector<8x128xf32>
    %c244 = arith.constant 244 : index
    %c0_537 = arith.constant 0 : index
    %c0_538 = arith.constant 0 : index
    %1048 = vector.load %arg1[%c244, %c0_537, %c0_538] : memref<312x8x128xf32, #tpu.memory_space<vmem>>, vector<1x8x128xf32>
    %1049 = vector.shape_cast %1048 : vector<1x8x128xf32> to vector<8x128xf32>
    %1050 = arith.mulf %1049, %560 : vector<8x128xf32>
    %1051 = arith.addf %1047, %1050 : vector<8x128xf32>
    %c245 = arith.constant 245 : index
    %c0_539 = arith.constant 0 : index
    %c0_540 = arith.constant 0 : index
    %1052 = vector.load %arg1[%c245, %c0_539, %c0_540] : memref<312x8x128xf32, #tpu.memory_space<vmem>>, vector<1x8x128xf32>
    %1053 = vector.shape_cast %1052 : vector<1x8x128xf32> to vector<8x128xf32>
    %1054 = arith.mulf %1053, %570 : vector<8x128xf32>
    %1055 = arith.addf %1051, %1054 : vector<8x128xf32>
    %c246 = arith.constant 246 : index
    %c0_541 = arith.constant 0 : index
    %c0_542 = arith.constant 0 : index
    %1056 = vector.load %arg1[%c246, %c0_541, %c0_542] : memref<312x8x128xf32, #tpu.memory_space<vmem>>, vector<1x8x128xf32>
    %1057 = vector.shape_cast %1056 : vector<1x8x128xf32> to vector<8x128xf32>
    %1058 = arith.mulf %1057, %580 : vector<8x128xf32>
    %1059 = arith.addf %1055, %1058 : vector<8x128xf32>
    %c247 = arith.constant 247 : index
    %c0_543 = arith.constant 0 : index
    %c0_544 = arith.constant 0 : index
    %1060 = vector.load %arg1[%c247, %c0_543, %c0_544] : memref<312x8x128xf32, #tpu.memory_space<vmem>>, vector<1x8x128xf32>
    %1061 = vector.shape_cast %1060 : vector<1x8x128xf32> to vector<8x128xf32>
    %1062 = arith.mulf %1061, %590 : vector<8x128xf32>
    %1063 = arith.addf %1059, %1062 : vector<8x128xf32>
    %c277 = arith.constant 277 : index
    %c0_545 = arith.constant 0 : index
    %c0_546 = arith.constant 0 : index
    %1064 = vector.load %arg1[%c277, %c0_545, %c0_546] : memref<312x8x128xf32, #tpu.memory_space<vmem>>, vector<1x8x128xf32>
    %1065 = vector.shape_cast %1064 : vector<1x8x128xf32> to vector<8x128xf32>
    %1066 = arith.addf %1063, %1065 : vector<8x128xf32>
    %c248 = arith.constant 248 : index
    %c0_547 = arith.constant 0 : index
    %c0_548 = arith.constant 0 : index
    %1067 = vector.load %arg1[%c248, %c0_547, %c0_548] : memref<312x8x128xf32, #tpu.memory_space<vmem>>, vector<1x8x128xf32>
    %1068 = vector.shape_cast %1067 : vector<1x8x128xf32> to vector<8x128xf32>
    %1069 = arith.mulf %1068, %520 : vector<8x128xf32>
    %c249 = arith.constant 249 : index
    %c0_549 = arith.constant 0 : index
    %c0_550 = arith.constant 0 : index
    %1070 = vector.load %arg1[%c249, %c0_549, %c0_550] : memref<312x8x128xf32, #tpu.memory_space<vmem>>, vector<1x8x128xf32>
    %1071 = vector.shape_cast %1070 : vector<1x8x128xf32> to vector<8x128xf32>
    %1072 = arith.mulf %1071, %530 : vector<8x128xf32>
    %1073 = arith.addf %1069, %1072 : vector<8x128xf32>
    %c250 = arith.constant 250 : index
    %c0_551 = arith.constant 0 : index
    %c0_552 = arith.constant 0 : index
    %1074 = vector.load %arg1[%c250, %c0_551, %c0_552] : memref<312x8x128xf32, #tpu.memory_space<vmem>>, vector<1x8x128xf32>
    %1075 = vector.shape_cast %1074 : vector<1x8x128xf32> to vector<8x128xf32>
    %1076 = arith.mulf %1075, %540 : vector<8x128xf32>
    %1077 = arith.addf %1073, %1076 : vector<8x128xf32>
    %c251 = arith.constant 251 : index
    %c0_553 = arith.constant 0 : index
    %c0_554 = arith.constant 0 : index
    %1078 = vector.load %arg1[%c251, %c0_553, %c0_554] : memref<312x8x128xf32, #tpu.memory_space<vmem>>, vector<1x8x128xf32>
    %1079 = vector.shape_cast %1078 : vector<1x8x128xf32> to vector<8x128xf32>
    %1080 = arith.mulf %1079, %550 : vector<8x128xf32>
    %1081 = arith.addf %1077, %1080 : vector<8x128xf32>
    %c252 = arith.constant 252 : index
    %c0_555 = arith.constant 0 : index
    %c0_556 = arith.constant 0 : index
    %1082 = vector.load %arg1[%c252, %c0_555, %c0_556] : memref<312x8x128xf32, #tpu.memory_space<vmem>>, vector<1x8x128xf32>
    %1083 = vector.shape_cast %1082 : vector<1x8x128xf32> to vector<8x128xf32>
    %1084 = arith.mulf %1083, %560 : vector<8x128xf32>
    %1085 = arith.addf %1081, %1084 : vector<8x128xf32>
    %c253 = arith.constant 253 : index
    %c0_557 = arith.constant 0 : index
    %c0_558 = arith.constant 0 : index
    %1086 = vector.load %arg1[%c253, %c0_557, %c0_558] : memref<312x8x128xf32, #tpu.memory_space<vmem>>, vector<1x8x128xf32>
    %1087 = vector.shape_cast %1086 : vector<1x8x128xf32> to vector<8x128xf32>
    %1088 = arith.mulf %1087, %570 : vector<8x128xf32>
    %1089 = arith.addf %1085, %1088 : vector<8x128xf32>
    %c254 = arith.constant 254 : index
    %c0_559 = arith.constant 0 : index
    %c0_560 = arith.constant 0 : index
    %1090 = vector.load %arg1[%c254, %c0_559, %c0_560] : memref<312x8x128xf32, #tpu.memory_space<vmem>>, vector<1x8x128xf32>
    %1091 = vector.shape_cast %1090 : vector<1x8x128xf32> to vector<8x128xf32>
    %1092 = arith.mulf %1091, %580 : vector<8x128xf32>
    %1093 = arith.addf %1089, %1092 : vector<8x128xf32>
    %c255 = arith.constant 255 : index
    %c0_561 = arith.constant 0 : index
    %c0_562 = arith.constant 0 : index
    %1094 = vector.load %arg1[%c255, %c0_561, %c0_562] : memref<312x8x128xf32, #tpu.memory_space<vmem>>, vector<1x8x128xf32>
    %1095 = vector.shape_cast %1094 : vector<1x8x128xf32> to vector<8x128xf32>
    %1096 = arith.mulf %1095, %590 : vector<8x128xf32>
    %1097 = arith.addf %1093, %1096 : vector<8x128xf32>
    %c278 = arith.constant 278 : index
    %c0_563 = arith.constant 0 : index
    %c0_564 = arith.constant 0 : index
    %1098 = vector.load %arg1[%c278, %c0_563, %c0_564] : memref<312x8x128xf32, #tpu.memory_space<vmem>>, vector<1x8x128xf32>
    %1099 = vector.shape_cast %1098 : vector<1x8x128xf32> to vector<8x128xf32>
    %1100 = arith.addf %1097, %1099 : vector<8x128xf32>
    %c256 = arith.constant 256 : index
    %c0_565 = arith.constant 0 : index
    %c0_566 = arith.constant 0 : index
    %1101 = vector.load %arg1[%c256, %c0_565, %c0_566] : memref<312x8x128xf32, #tpu.memory_space<vmem>>, vector<1x8x128xf32>
    %1102 = vector.shape_cast %1101 : vector<1x8x128xf32> to vector<8x128xf32>
    %1103 = arith.mulf %1102, %520 : vector<8x128xf32>
    %c257 = arith.constant 257 : index
    %c0_567 = arith.constant 0 : index
    %c0_568 = arith.constant 0 : index
    %1104 = vector.load %arg1[%c257, %c0_567, %c0_568] : memref<312x8x128xf32, #tpu.memory_space<vmem>>, vector<1x8x128xf32>
    %1105 = vector.shape_cast %1104 : vector<1x8x128xf32> to vector<8x128xf32>
    %1106 = arith.mulf %1105, %530 : vector<8x128xf32>
    %1107 = arith.addf %1103, %1106 : vector<8x128xf32>
    %c258 = arith.constant 258 : index
    %c0_569 = arith.constant 0 : index
    %c0_570 = arith.constant 0 : index
    %1108 = vector.load %arg1[%c258, %c0_569, %c0_570] : memref<312x8x128xf32, #tpu.memory_space<vmem>>, vector<1x8x128xf32>
    %1109 = vector.shape_cast %1108 : vector<1x8x128xf32> to vector<8x128xf32>
    %1110 = arith.mulf %1109, %540 : vector<8x128xf32>
    %1111 = arith.addf %1107, %1110 : vector<8x128xf32>
    %c259 = arith.constant 259 : index
    %c0_571 = arith.constant 0 : index
    %c0_572 = arith.constant 0 : index
    %1112 = vector.load %arg1[%c259, %c0_571, %c0_572] : memref<312x8x128xf32, #tpu.memory_space<vmem>>, vector<1x8x128xf32>
    %1113 = vector.shape_cast %1112 : vector<1x8x128xf32> to vector<8x128xf32>
    %1114 = arith.mulf %1113, %550 : vector<8x128xf32>
    %1115 = arith.addf %1111, %1114 : vector<8x128xf32>
    %c260 = arith.constant 260 : index
    %c0_573 = arith.constant 0 : index
    %c0_574 = arith.constant 0 : index
    %1116 = vector.load %arg1[%c260, %c0_573, %c0_574] : memref<312x8x128xf32, #tpu.memory_space<vmem>>, vector<1x8x128xf32>
    %1117 = vector.shape_cast %1116 : vector<1x8x128xf32> to vector<8x128xf32>
    %1118 = arith.mulf %1117, %560 : vector<8x128xf32>
    %1119 = arith.addf %1115, %1118 : vector<8x128xf32>
    %c261 = arith.constant 261 : index
    %c0_575 = arith.constant 0 : index
    %c0_576 = arith.constant 0 : index
    %1120 = vector.load %arg1[%c261, %c0_575, %c0_576] : memref<312x8x128xf32, #tpu.memory_space<vmem>>, vector<1x8x128xf32>
    %1121 = vector.shape_cast %1120 : vector<1x8x128xf32> to vector<8x128xf32>
    %1122 = arith.mulf %1121, %570 : vector<8x128xf32>
    %1123 = arith.addf %1119, %1122 : vector<8x128xf32>
    %c262 = arith.constant 262 : index
    %c0_577 = arith.constant 0 : index
    %c0_578 = arith.constant 0 : index
    %1124 = vector.load %arg1[%c262, %c0_577, %c0_578] : memref<312x8x128xf32, #tpu.memory_space<vmem>>, vector<1x8x128xf32>
    %1125 = vector.shape_cast %1124 : vector<1x8x128xf32> to vector<8x128xf32>
    %1126 = arith.mulf %1125, %580 : vector<8x128xf32>
    %1127 = arith.addf %1123, %1126 : vector<8x128xf32>
    %c263 = arith.constant 263 : index
    %c0_579 = arith.constant 0 : index
    %c0_580 = arith.constant 0 : index
    %1128 = vector.load %arg1[%c263, %c0_579, %c0_580] : memref<312x8x128xf32, #tpu.memory_space<vmem>>, vector<1x8x128xf32>
    %1129 = vector.shape_cast %1128 : vector<1x8x128xf32> to vector<8x128xf32>
    %1130 = arith.mulf %1129, %590 : vector<8x128xf32>
    %1131 = arith.addf %1127, %1130 : vector<8x128xf32>
    %c279 = arith.constant 279 : index
    %c0_581 = arith.constant 0 : index
    %c0_582 = arith.constant 0 : index
    %1132 = vector.load %arg1[%c279, %c0_581, %c0_582] : memref<312x8x128xf32, #tpu.memory_space<vmem>>, vector<1x8x128xf32>
    %1133 = vector.shape_cast %1132 : vector<1x8x128xf32> to vector<8x128xf32>
    %1134 = arith.addf %1131, %1133 : vector<8x128xf32>
    %1135 = arith.mulf %624, %624 : vector<8x128xf32>
    %1136 = arith.mulf %658, %658 : vector<8x128xf32>
    %1137 = arith.addf %1135, %1136 : vector<8x128xf32>
    %1138 = arith.mulf %692, %692 : vector<8x128xf32>
    %1139 = arith.addf %1137, %1138 : vector<8x128xf32>
    %1140 = arith.mulf %726, %726 : vector<8x128xf32>
    %1141 = arith.addf %1139, %1140 : vector<8x128xf32>
    %1142 = arith.mulf %760, %760 : vector<8x128xf32>
    %1143 = arith.addf %1141, %1142 : vector<8x128xf32>
    %1144 = arith.mulf %794, %794 : vector<8x128xf32>
    %1145 = arith.addf %1143, %1144 : vector<8x128xf32>
    %1146 = arith.mulf %828, %828 : vector<8x128xf32>
    %1147 = arith.addf %1145, %1146 : vector<8x128xf32>
    %1148 = arith.mulf %862, %862 : vector<8x128xf32>
    %1149 = arith.addf %1147, %1148 : vector<8x128xf32>
    %1150 = arith.mulf %896, %896 : vector<8x128xf32>
    %1151 = arith.addf %1149, %1150 : vector<8x128xf32>
    %1152 = arith.mulf %930, %930 : vector<8x128xf32>
    %1153 = arith.addf %1151, %1152 : vector<8x128xf32>
    %1154 = arith.mulf %964, %964 : vector<8x128xf32>
    %1155 = arith.addf %1153, %1154 : vector<8x128xf32>
    %1156 = arith.mulf %998, %998 : vector<8x128xf32>
    %1157 = arith.addf %1155, %1156 : vector<8x128xf32>
    %1158 = arith.mulf %1032, %1032 : vector<8x128xf32>
    %1159 = arith.addf %1157, %1158 : vector<8x128xf32>
    %1160 = arith.mulf %1066, %1066 : vector<8x128xf32>
    %1161 = arith.addf %1159, %1160 : vector<8x128xf32>
    %1162 = arith.mulf %1100, %1100 : vector<8x128xf32>
    %1163 = arith.addf %1161, %1162 : vector<8x128xf32>
    %1164 = arith.mulf %1134, %1134 : vector<8x128xf32>
    %1165 = arith.addf %1163, %1164 : vector<8x128xf32>
    %cst_583 = arith.constant 1.600000e-04 : f32
    %1166 = vector.broadcast %cst_583 : f32 to vector<8x128xf32>
    %1167 = arith.addf %1165, %1166 : vector<8x128xf32>
    %1168 = math.rsqrt %1167 : vector<8x128xf32>
    %c280 = arith.constant 280 : index
    %c0_584 = arith.constant 0 : index
    %c0_585 = arith.constant 0 : index
    %1169 = vector.load %arg1[%c280, %c0_584, %c0_585] : memref<312x8x128xf32, #tpu.memory_space<vmem>>, vector<1x8x128xf32>
    %1170 = vector.shape_cast %1169 : vector<1x8x128xf32> to vector<8x128xf32>
    %1171 = arith.mulf %1168, %1170 : vector<8x128xf32>
    %1172 = arith.mulf %624, %1171 : vector<8x128xf32>
    %c296 = arith.constant 296 : index
    %c0_586 = arith.constant 0 : index
    %c0_587 = arith.constant 0 : index
    %1173 = vector.load %arg1[%c296, %c0_586, %c0_587] : memref<312x8x128xf32, #tpu.memory_space<vmem>>, vector<1x8x128xf32>
    %1174 = vector.shape_cast %1173 : vector<1x8x128xf32> to vector<8x128xf32>
    %1175 = arith.addf %1172, %1174 : vector<8x128xf32>
    %cst_588 = arith.constant 2.000000e-01 : f32
    %1176 = vector.broadcast %cst_588 : f32 to vector<8x128xf32>
    %1177 = arith.mulf %1176, %1175 : vector<8x128xf32>
    %1178 = arith.maximumf %1175, %1177 : vector<8x128xf32>
    %c281 = arith.constant 281 : index
    %c0_589 = arith.constant 0 : index
    %c0_590 = arith.constant 0 : index
    %1179 = vector.load %arg1[%c281, %c0_589, %c0_590] : memref<312x8x128xf32, #tpu.memory_space<vmem>>, vector<1x8x128xf32>
    %1180 = vector.shape_cast %1179 : vector<1x8x128xf32> to vector<8x128xf32>
    %1181 = arith.mulf %1168, %1180 : vector<8x128xf32>
    %1182 = arith.mulf %658, %1181 : vector<8x128xf32>
    %c297 = arith.constant 297 : index
    %c0_591 = arith.constant 0 : index
    %c0_592 = arith.constant 0 : index
    %1183 = vector.load %arg1[%c297, %c0_591, %c0_592] : memref<312x8x128xf32, #tpu.memory_space<vmem>>, vector<1x8x128xf32>
    %1184 = vector.shape_cast %1183 : vector<1x8x128xf32> to vector<8x128xf32>
    %1185 = arith.addf %1182, %1184 : vector<8x128xf32>
    %cst_593 = arith.constant 2.000000e-01 : f32
    %1186 = vector.broadcast %cst_593 : f32 to vector<8x128xf32>
    %1187 = arith.mulf %1186, %1185 : vector<8x128xf32>
    %1188 = arith.maximumf %1185, %1187 : vector<8x128xf32>
    %c282 = arith.constant 282 : index
    %c0_594 = arith.constant 0 : index
    %c0_595 = arith.constant 0 : index
    %1189 = vector.load %arg1[%c282, %c0_594, %c0_595] : memref<312x8x128xf32, #tpu.memory_space<vmem>>, vector<1x8x128xf32>
    %1190 = vector.shape_cast %1189 : vector<1x8x128xf32> to vector<8x128xf32>
    %1191 = arith.mulf %1168, %1190 : vector<8x128xf32>
    %1192 = arith.mulf %692, %1191 : vector<8x128xf32>
    %c298 = arith.constant 298 : index
    %c0_596 = arith.constant 0 : index
    %c0_597 = arith.constant 0 : index
    %1193 = vector.load %arg1[%c298, %c0_596, %c0_597] : memref<312x8x128xf32, #tpu.memory_space<vmem>>, vector<1x8x128xf32>
    %1194 = vector.shape_cast %1193 : vector<1x8x128xf32> to vector<8x128xf32>
    %1195 = arith.addf %1192, %1194 : vector<8x128xf32>
    %cst_598 = arith.constant 2.000000e-01 : f32
    %1196 = vector.broadcast %cst_598 : f32 to vector<8x128xf32>
    %1197 = arith.mulf %1196, %1195 : vector<8x128xf32>
    %1198 = arith.maximumf %1195, %1197 : vector<8x128xf32>
    %c283 = arith.constant 283 : index
    %c0_599 = arith.constant 0 : index
    %c0_600 = arith.constant 0 : index
    %1199 = vector.load %arg1[%c283, %c0_599, %c0_600] : memref<312x8x128xf32, #tpu.memory_space<vmem>>, vector<1x8x128xf32>
    %1200 = vector.shape_cast %1199 : vector<1x8x128xf32> to vector<8x128xf32>
    %1201 = arith.mulf %1168, %1200 : vector<8x128xf32>
    %1202 = arith.mulf %726, %1201 : vector<8x128xf32>
    %c299 = arith.constant 299 : index
    %c0_601 = arith.constant 0 : index
    %c0_602 = arith.constant 0 : index
    %1203 = vector.load %arg1[%c299, %c0_601, %c0_602] : memref<312x8x128xf32, #tpu.memory_space<vmem>>, vector<1x8x128xf32>
    %1204 = vector.shape_cast %1203 : vector<1x8x128xf32> to vector<8x128xf32>
    %1205 = arith.addf %1202, %1204 : vector<8x128xf32>
    %cst_603 = arith.constant 2.000000e-01 : f32
    %1206 = vector.broadcast %cst_603 : f32 to vector<8x128xf32>
    %1207 = arith.mulf %1206, %1205 : vector<8x128xf32>
    %1208 = arith.maximumf %1205, %1207 : vector<8x128xf32>
    %c284 = arith.constant 284 : index
    %c0_604 = arith.constant 0 : index
    %c0_605 = arith.constant 0 : index
    %1209 = vector.load %arg1[%c284, %c0_604, %c0_605] : memref<312x8x128xf32, #tpu.memory_space<vmem>>, vector<1x8x128xf32>
    %1210 = vector.shape_cast %1209 : vector<1x8x128xf32> to vector<8x128xf32>
    %1211 = arith.mulf %1168, %1210 : vector<8x128xf32>
    %1212 = arith.mulf %760, %1211 : vector<8x128xf32>
    %c300 = arith.constant 300 : index
    %c0_606 = arith.constant 0 : index
    %c0_607 = arith.constant 0 : index
    %1213 = vector.load %arg1[%c300, %c0_606, %c0_607] : memref<312x8x128xf32, #tpu.memory_space<vmem>>, vector<1x8x128xf32>
    %1214 = vector.shape_cast %1213 : vector<1x8x128xf32> to vector<8x128xf32>
    %1215 = arith.addf %1212, %1214 : vector<8x128xf32>
    %cst_608 = arith.constant 2.000000e-01 : f32
    %1216 = vector.broadcast %cst_608 : f32 to vector<8x128xf32>
    %1217 = arith.mulf %1216, %1215 : vector<8x128xf32>
    %1218 = arith.maximumf %1215, %1217 : vector<8x128xf32>
    %c285 = arith.constant 285 : index
    %c0_609 = arith.constant 0 : index
    %c0_610 = arith.constant 0 : index
    %1219 = vector.load %arg1[%c285, %c0_609, %c0_610] : memref<312x8x128xf32, #tpu.memory_space<vmem>>, vector<1x8x128xf32>
    %1220 = vector.shape_cast %1219 : vector<1x8x128xf32> to vector<8x128xf32>
    %1221 = arith.mulf %1168, %1220 : vector<8x128xf32>
    %1222 = arith.mulf %794, %1221 : vector<8x128xf32>
    %c301 = arith.constant 301 : index
    %c0_611 = arith.constant 0 : index
    %c0_612 = arith.constant 0 : index
    %1223 = vector.load %arg1[%c301, %c0_611, %c0_612] : memref<312x8x128xf32, #tpu.memory_space<vmem>>, vector<1x8x128xf32>
    %1224 = vector.shape_cast %1223 : vector<1x8x128xf32> to vector<8x128xf32>
    %1225 = arith.addf %1222, %1224 : vector<8x128xf32>
    %cst_613 = arith.constant 2.000000e-01 : f32
    %1226 = vector.broadcast %cst_613 : f32 to vector<8x128xf32>
    %1227 = arith.mulf %1226, %1225 : vector<8x128xf32>
    %1228 = arith.maximumf %1225, %1227 : vector<8x128xf32>
    %c286 = arith.constant 286 : index
    %c0_614 = arith.constant 0 : index
    %c0_615 = arith.constant 0 : index
    %1229 = vector.load %arg1[%c286, %c0_614, %c0_615] : memref<312x8x128xf32, #tpu.memory_space<vmem>>, vector<1x8x128xf32>
    %1230 = vector.shape_cast %1229 : vector<1x8x128xf32> to vector<8x128xf32>
    %1231 = arith.mulf %1168, %1230 : vector<8x128xf32>
    %1232 = arith.mulf %828, %1231 : vector<8x128xf32>
    %c302 = arith.constant 302 : index
    %c0_616 = arith.constant 0 : index
    %c0_617 = arith.constant 0 : index
    %1233 = vector.load %arg1[%c302, %c0_616, %c0_617] : memref<312x8x128xf32, #tpu.memory_space<vmem>>, vector<1x8x128xf32>
    %1234 = vector.shape_cast %1233 : vector<1x8x128xf32> to vector<8x128xf32>
    %1235 = arith.addf %1232, %1234 : vector<8x128xf32>
    %cst_618 = arith.constant 2.000000e-01 : f32
    %1236 = vector.broadcast %cst_618 : f32 to vector<8x128xf32>
    %1237 = arith.mulf %1236, %1235 : vector<8x128xf32>
    %1238 = arith.maximumf %1235, %1237 : vector<8x128xf32>
    %c287 = arith.constant 287 : index
    %c0_619 = arith.constant 0 : index
    %c0_620 = arith.constant 0 : index
    %1239 = vector.load %arg1[%c287, %c0_619, %c0_620] : memref<312x8x128xf32, #tpu.memory_space<vmem>>, vector<1x8x128xf32>
    %1240 = vector.shape_cast %1239 : vector<1x8x128xf32> to vector<8x128xf32>
    %1241 = arith.mulf %1168, %1240 : vector<8x128xf32>
    %1242 = arith.mulf %862, %1241 : vector<8x128xf32>
    %c303 = arith.constant 303 : index
    %c0_621 = arith.constant 0 : index
    %c0_622 = arith.constant 0 : index
    %1243 = vector.load %arg1[%c303, %c0_621, %c0_622] : memref<312x8x128xf32, #tpu.memory_space<vmem>>, vector<1x8x128xf32>
    %1244 = vector.shape_cast %1243 : vector<1x8x128xf32> to vector<8x128xf32>
    %1245 = arith.addf %1242, %1244 : vector<8x128xf32>
    %cst_623 = arith.constant 2.000000e-01 : f32
    %1246 = vector.broadcast %cst_623 : f32 to vector<8x128xf32>
    %1247 = arith.mulf %1246, %1245 : vector<8x128xf32>
    %1248 = arith.maximumf %1245, %1247 : vector<8x128xf32>
    %c288 = arith.constant 288 : index
    %c0_624 = arith.constant 0 : index
    %c0_625 = arith.constant 0 : index
    %1249 = vector.load %arg1[%c288, %c0_624, %c0_625] : memref<312x8x128xf32, #tpu.memory_space<vmem>>, vector<1x8x128xf32>
    %1250 = vector.shape_cast %1249 : vector<1x8x128xf32> to vector<8x128xf32>
    %1251 = arith.mulf %1168, %1250 : vector<8x128xf32>
    %1252 = arith.mulf %896, %1251 : vector<8x128xf32>
    %c304 = arith.constant 304 : index
    %c0_626 = arith.constant 0 : index
    %c0_627 = arith.constant 0 : index
    %1253 = vector.load %arg1[%c304, %c0_626, %c0_627] : memref<312x8x128xf32, #tpu.memory_space<vmem>>, vector<1x8x128xf32>
    %1254 = vector.shape_cast %1253 : vector<1x8x128xf32> to vector<8x128xf32>
    %1255 = arith.addf %1252, %1254 : vector<8x128xf32>
    %cst_628 = arith.constant 2.000000e-01 : f32
    %1256 = vector.broadcast %cst_628 : f32 to vector<8x128xf32>
    %1257 = arith.mulf %1256, %1255 : vector<8x128xf32>
    %1258 = arith.maximumf %1255, %1257 : vector<8x128xf32>
    %c289 = arith.constant 289 : index
    %c0_629 = arith.constant 0 : index
    %c0_630 = arith.constant 0 : index
    %1259 = vector.load %arg1[%c289, %c0_629, %c0_630] : memref<312x8x128xf32, #tpu.memory_space<vmem>>, vector<1x8x128xf32>
    %1260 = vector.shape_cast %1259 : vector<1x8x128xf32> to vector<8x128xf32>
    %1261 = arith.mulf %1168, %1260 : vector<8x128xf32>
    %1262 = arith.mulf %930, %1261 : vector<8x128xf32>
    %c305 = arith.constant 305 : index
    %c0_631 = arith.constant 0 : index
    %c0_632 = arith.constant 0 : index
    %1263 = vector.load %arg1[%c305, %c0_631, %c0_632] : memref<312x8x128xf32, #tpu.memory_space<vmem>>, vector<1x8x128xf32>
    %1264 = vector.shape_cast %1263 : vector<1x8x128xf32> to vector<8x128xf32>
    %1265 = arith.addf %1262, %1264 : vector<8x128xf32>
    %cst_633 = arith.constant 2.000000e-01 : f32
    %1266 = vector.broadcast %cst_633 : f32 to vector<8x128xf32>
    %1267 = arith.mulf %1266, %1265 : vector<8x128xf32>
    %1268 = arith.maximumf %1265, %1267 : vector<8x128xf32>
    %c290 = arith.constant 290 : index
    %c0_634 = arith.constant 0 : index
    %c0_635 = arith.constant 0 : index
    %1269 = vector.load %arg1[%c290, %c0_634, %c0_635] : memref<312x8x128xf32, #tpu.memory_space<vmem>>, vector<1x8x128xf32>
    %1270 = vector.shape_cast %1269 : vector<1x8x128xf32> to vector<8x128xf32>
    %1271 = arith.mulf %1168, %1270 : vector<8x128xf32>
    %1272 = arith.mulf %964, %1271 : vector<8x128xf32>
    %c306 = arith.constant 306 : index
    %c0_636 = arith.constant 0 : index
    %c0_637 = arith.constant 0 : index
    %1273 = vector.load %arg1[%c306, %c0_636, %c0_637] : memref<312x8x128xf32, #tpu.memory_space<vmem>>, vector<1x8x128xf32>
    %1274 = vector.shape_cast %1273 : vector<1x8x128xf32> to vector<8x128xf32>
    %1275 = arith.addf %1272, %1274 : vector<8x128xf32>
    %cst_638 = arith.constant 2.000000e-01 : f32
    %1276 = vector.broadcast %cst_638 : f32 to vector<8x128xf32>
    %1277 = arith.mulf %1276, %1275 : vector<8x128xf32>
    %1278 = arith.maximumf %1275, %1277 : vector<8x128xf32>
    %c291 = arith.constant 291 : index
    %c0_639 = arith.constant 0 : index
    %c0_640 = arith.constant 0 : index
    %1279 = vector.load %arg1[%c291, %c0_639, %c0_640] : memref<312x8x128xf32, #tpu.memory_space<vmem>>, vector<1x8x128xf32>
    %1280 = vector.shape_cast %1279 : vector<1x8x128xf32> to vector<8x128xf32>
    %1281 = arith.mulf %1168, %1280 : vector<8x128xf32>
    %1282 = arith.mulf %998, %1281 : vector<8x128xf32>
    %c307 = arith.constant 307 : index
    %c0_641 = arith.constant 0 : index
    %c0_642 = arith.constant 0 : index
    %1283 = vector.load %arg1[%c307, %c0_641, %c0_642] : memref<312x8x128xf32, #tpu.memory_space<vmem>>, vector<1x8x128xf32>
    %1284 = vector.shape_cast %1283 : vector<1x8x128xf32> to vector<8x128xf32>
    %1285 = arith.addf %1282, %1284 : vector<8x128xf32>
    %cst_643 = arith.constant 2.000000e-01 : f32
    %1286 = vector.broadcast %cst_643 : f32 to vector<8x128xf32>
    %1287 = arith.mulf %1286, %1285 : vector<8x128xf32>
    %1288 = arith.maximumf %1285, %1287 : vector<8x128xf32>
    %c292 = arith.constant 292 : index
    %c0_644 = arith.constant 0 : index
    %c0_645 = arith.constant 0 : index
    %1289 = vector.load %arg1[%c292, %c0_644, %c0_645] : memref<312x8x128xf32, #tpu.memory_space<vmem>>, vector<1x8x128xf32>
    %1290 = vector.shape_cast %1289 : vector<1x8x128xf32> to vector<8x128xf32>
    %1291 = arith.mulf %1168, %1290 : vector<8x128xf32>
    %1292 = arith.mulf %1032, %1291 : vector<8x128xf32>
    %c308 = arith.constant 308 : index
    %c0_646 = arith.constant 0 : index
    %c0_647 = arith.constant 0 : index
    %1293 = vector.load %arg1[%c308, %c0_646, %c0_647] : memref<312x8x128xf32, #tpu.memory_space<vmem>>, vector<1x8x128xf32>
    %1294 = vector.shape_cast %1293 : vector<1x8x128xf32> to vector<8x128xf32>
    %1295 = arith.addf %1292, %1294 : vector<8x128xf32>
    %cst_648 = arith.constant 2.000000e-01 : f32
    %1296 = vector.broadcast %cst_648 : f32 to vector<8x128xf32>
    %1297 = arith.mulf %1296, %1295 : vector<8x128xf32>
    %1298 = arith.maximumf %1295, %1297 : vector<8x128xf32>
    %c293 = arith.constant 293 : index
    %c0_649 = arith.constant 0 : index
    %c0_650 = arith.constant 0 : index
    %1299 = vector.load %arg1[%c293, %c0_649, %c0_650] : memref<312x8x128xf32, #tpu.memory_space<vmem>>, vector<1x8x128xf32>
    %1300 = vector.shape_cast %1299 : vector<1x8x128xf32> to vector<8x128xf32>
    %1301 = arith.mulf %1168, %1300 : vector<8x128xf32>
    %1302 = arith.mulf %1066, %1301 : vector<8x128xf32>
    %c309 = arith.constant 309 : index
    %c0_651 = arith.constant 0 : index
    %c0_652 = arith.constant 0 : index
    %1303 = vector.load %arg1[%c309, %c0_651, %c0_652] : memref<312x8x128xf32, #tpu.memory_space<vmem>>, vector<1x8x128xf32>
    %1304 = vector.shape_cast %1303 : vector<1x8x128xf32> to vector<8x128xf32>
    %1305 = arith.addf %1302, %1304 : vector<8x128xf32>
    %cst_653 = arith.constant 2.000000e-01 : f32
    %1306 = vector.broadcast %cst_653 : f32 to vector<8x128xf32>
    %1307 = arith.mulf %1306, %1305 : vector<8x128xf32>
    %1308 = arith.maximumf %1305, %1307 : vector<8x128xf32>
    %c294 = arith.constant 294 : index
    %c0_654 = arith.constant 0 : index
    %c0_655 = arith.constant 0 : index
    %1309 = vector.load %arg1[%c294, %c0_654, %c0_655] : memref<312x8x128xf32, #tpu.memory_space<vmem>>, vector<1x8x128xf32>
    %1310 = vector.shape_cast %1309 : vector<1x8x128xf32> to vector<8x128xf32>
    %1311 = arith.mulf %1168, %1310 : vector<8x128xf32>
    %1312 = arith.mulf %1100, %1311 : vector<8x128xf32>
    %c310 = arith.constant 310 : index
    %c0_656 = arith.constant 0 : index
    %c0_657 = arith.constant 0 : index
    %1313 = vector.load %arg1[%c310, %c0_656, %c0_657] : memref<312x8x128xf32, #tpu.memory_space<vmem>>, vector<1x8x128xf32>
    %1314 = vector.shape_cast %1313 : vector<1x8x128xf32> to vector<8x128xf32>
    %1315 = arith.addf %1312, %1314 : vector<8x128xf32>
    %cst_658 = arith.constant 2.000000e-01 : f32
    %1316 = vector.broadcast %cst_658 : f32 to vector<8x128xf32>
    %1317 = arith.mulf %1316, %1315 : vector<8x128xf32>
    %1318 = arith.maximumf %1315, %1317 : vector<8x128xf32>
    %c295 = arith.constant 295 : index
    %c0_659 = arith.constant 0 : index
    %c0_660 = arith.constant 0 : index
    %1319 = vector.load %arg1[%c295, %c0_659, %c0_660] : memref<312x8x128xf32, #tpu.memory_space<vmem>>, vector<1x8x128xf32>
    %1320 = vector.shape_cast %1319 : vector<1x8x128xf32> to vector<8x128xf32>
    %1321 = arith.mulf %1168, %1320 : vector<8x128xf32>
    %1322 = arith.mulf %1134, %1321 : vector<8x128xf32>
    %c311 = arith.constant 311 : index
    %c0_661 = arith.constant 0 : index
    %c0_662 = arith.constant 0 : index
    %1323 = vector.load %arg1[%c311, %c0_661, %c0_662] : memref<312x8x128xf32, #tpu.memory_space<vmem>>, vector<1x8x128xf32>
    %1324 = vector.shape_cast %1323 : vector<1x8x128xf32> to vector<8x128xf32>
    %1325 = arith.addf %1322, %1324 : vector<8x128xf32>
    %cst_663 = arith.constant 2.000000e-01 : f32
    %1326 = vector.broadcast %cst_663 : f32 to vector<8x128xf32>
    %1327 = arith.mulf %1326, %1325 : vector<8x128xf32>
    %1328 = arith.maximumf %1325, %1327 : vector<8x128xf32>
    %c0_664 = arith.constant 0 : index
    %1329 = arith.index_cast %1 : i32 to index
    %c0_665 = arith.constant 0 : index
    %1330 = vector.load %arg3[%c0_664, %1329, %c0_665] : memref<16x8x128xf32, #tpu.memory_space<vmem>>, vector<1x8x128xf32>
    %1331 = vector.shape_cast %1330 : vector<1x8x128xf32> to vector<8x128xf32>
    %1332 = vector.shape_cast %1178 : vector<8x128xf32> to vector<1x8x128xf32>
    tpu.vector_store %arg3[%c0_664, %1329, %c0_665], %1332 {strides = array<i32>} : memref<16x8x128xf32, #tpu.memory_space<vmem>>, vector<1x8x128xf32>,
    %c1_666 = arith.constant 1 : index
    %1333 = arith.index_cast %1 : i32 to index
    %c0_667 = arith.constant 0 : index
    %1334 = vector.load %arg3[%c1_666, %1333, %c0_667] : memref<16x8x128xf32, #tpu.memory_space<vmem>>, vector<1x8x128xf32>
    %1335 = vector.shape_cast %1334 : vector<1x8x128xf32> to vector<8x128xf32>
    %1336 = vector.shape_cast %1188 : vector<8x128xf32> to vector<1x8x128xf32>
    tpu.vector_store %arg3[%c1_666, %1333, %c0_667], %1336 {strides = array<i32>} : memref<16x8x128xf32, #tpu.memory_space<vmem>>, vector<1x8x128xf32>,
    %c2_668 = arith.constant 2 : index
    %1337 = arith.index_cast %1 : i32 to index
    %c0_669 = arith.constant 0 : index
    %1338 = vector.load %arg3[%c2_668, %1337, %c0_669] : memref<16x8x128xf32, #tpu.memory_space<vmem>>, vector<1x8x128xf32>
    %1339 = vector.shape_cast %1338 : vector<1x8x128xf32> to vector<8x128xf32>
    %1340 = vector.shape_cast %1198 : vector<8x128xf32> to vector<1x8x128xf32>
    tpu.vector_store %arg3[%c2_668, %1337, %c0_669], %1340 {strides = array<i32>} : memref<16x8x128xf32, #tpu.memory_space<vmem>>, vector<1x8x128xf32>,
    %c3_670 = arith.constant 3 : index
    %1341 = arith.index_cast %1 : i32 to index
    %c0_671 = arith.constant 0 : index
    %1342 = vector.load %arg3[%c3_670, %1341, %c0_671] : memref<16x8x128xf32, #tpu.memory_space<vmem>>, vector<1x8x128xf32>
    %1343 = vector.shape_cast %1342 : vector<1x8x128xf32> to vector<8x128xf32>
    %1344 = vector.shape_cast %1208 : vector<8x128xf32> to vector<1x8x128xf32>
    tpu.vector_store %arg3[%c3_670, %1341, %c0_671], %1344 {strides = array<i32>} : memref<16x8x128xf32, #tpu.memory_space<vmem>>, vector<1x8x128xf32>,
    %c4_672 = arith.constant 4 : index
    %1345 = arith.index_cast %1 : i32 to index
    %c0_673 = arith.constant 0 : index
    %1346 = vector.load %arg3[%c4_672, %1345, %c0_673] : memref<16x8x128xf32, #tpu.memory_space<vmem>>, vector<1x8x128xf32>
    %1347 = vector.shape_cast %1346 : vector<1x8x128xf32> to vector<8x128xf32>
    %1348 = vector.shape_cast %1218 : vector<8x128xf32> to vector<1x8x128xf32>
    tpu.vector_store %arg3[%c4_672, %1345, %c0_673], %1348 {strides = array<i32>} : memref<16x8x128xf32, #tpu.memory_space<vmem>>, vector<1x8x128xf32>,
    %c5_674 = arith.constant 5 : index
    %1349 = arith.index_cast %1 : i32 to index
    %c0_675 = arith.constant 0 : index
    %1350 = vector.load %arg3[%c5_674, %1349, %c0_675] : memref<16x8x128xf32, #tpu.memory_space<vmem>>, vector<1x8x128xf32>
    %1351 = vector.shape_cast %1350 : vector<1x8x128xf32> to vector<8x128xf32>
    %1352 = vector.shape_cast %1228 : vector<8x128xf32> to vector<1x8x128xf32>
    tpu.vector_store %arg3[%c5_674, %1349, %c0_675], %1352 {strides = array<i32>} : memref<16x8x128xf32, #tpu.memory_space<vmem>>, vector<1x8x128xf32>,
    %c6_676 = arith.constant 6 : index
    %1353 = arith.index_cast %1 : i32 to index
    %c0_677 = arith.constant 0 : index
    %1354 = vector.load %arg3[%c6_676, %1353, %c0_677] : memref<16x8x128xf32, #tpu.memory_space<vmem>>, vector<1x8x128xf32>
    %1355 = vector.shape_cast %1354 : vector<1x8x128xf32> to vector<8x128xf32>
    %1356 = vector.shape_cast %1238 : vector<8x128xf32> to vector<1x8x128xf32>
    tpu.vector_store %arg3[%c6_676, %1353, %c0_677], %1356 {strides = array<i32>} : memref<16x8x128xf32, #tpu.memory_space<vmem>>, vector<1x8x128xf32>,
    %c7_678 = arith.constant 7 : index
    %1357 = arith.index_cast %1 : i32 to index
    %c0_679 = arith.constant 0 : index
    %1358 = vector.load %arg3[%c7_678, %1357, %c0_679] : memref<16x8x128xf32, #tpu.memory_space<vmem>>, vector<1x8x128xf32>
    %1359 = vector.shape_cast %1358 : vector<1x8x128xf32> to vector<8x128xf32>
    %1360 = vector.shape_cast %1248 : vector<8x128xf32> to vector<1x8x128xf32>
    tpu.vector_store %arg3[%c7_678, %1357, %c0_679], %1360 {strides = array<i32>} : memref<16x8x128xf32, #tpu.memory_space<vmem>>, vector<1x8x128xf32>,
    %c8_680 = arith.constant 8 : index
    %1361 = arith.index_cast %1 : i32 to index
    %c0_681 = arith.constant 0 : index
    %1362 = vector.load %arg3[%c8_680, %1361, %c0_681] : memref<16x8x128xf32, #tpu.memory_space<vmem>>, vector<1x8x128xf32>
    %1363 = vector.shape_cast %1362 : vector<1x8x128xf32> to vector<8x128xf32>
    %1364 = vector.shape_cast %1258 : vector<8x128xf32> to vector<1x8x128xf32>
    tpu.vector_store %arg3[%c8_680, %1361, %c0_681], %1364 {strides = array<i32>} : memref<16x8x128xf32, #tpu.memory_space<vmem>>, vector<1x8x128xf32>,
    %c9_682 = arith.constant 9 : index
    %1365 = arith.index_cast %1 : i32 to index
    %c0_683 = arith.constant 0 : index
    %1366 = vector.load %arg3[%c9_682, %1365, %c0_683] : memref<16x8x128xf32, #tpu.memory_space<vmem>>, vector<1x8x128xf32>
    %1367 = vector.shape_cast %1366 : vector<1x8x128xf32> to vector<8x128xf32>
    %1368 = vector.shape_cast %1268 : vector<8x128xf32> to vector<1x8x128xf32>
    tpu.vector_store %arg3[%c9_682, %1365, %c0_683], %1368 {strides = array<i32>} : memref<16x8x128xf32, #tpu.memory_space<vmem>>, vector<1x8x128xf32>,
    %c10_684 = arith.constant 10 : index
    %1369 = arith.index_cast %1 : i32 to index
    %c0_685 = arith.constant 0 : index
    %1370 = vector.load %arg3[%c10_684, %1369, %c0_685] : memref<16x8x128xf32, #tpu.memory_space<vmem>>, vector<1x8x128xf32>
    %1371 = vector.shape_cast %1370 : vector<1x8x128xf32> to vector<8x128xf32>
    %1372 = vector.shape_cast %1278 : vector<8x128xf32> to vector<1x8x128xf32>
    tpu.vector_store %arg3[%c10_684, %1369, %c0_685], %1372 {strides = array<i32>} : memref<16x8x128xf32, #tpu.memory_space<vmem>>, vector<1x8x128xf32>,
    %c11_686 = arith.constant 11 : index
    %1373 = arith.index_cast %1 : i32 to index
    %c0_687 = arith.constant 0 : index
    %1374 = vector.load %arg3[%c11_686, %1373, %c0_687] : memref<16x8x128xf32, #tpu.memory_space<vmem>>, vector<1x8x128xf32>
    %1375 = vector.shape_cast %1374 : vector<1x8x128xf32> to vector<8x128xf32>
    %1376 = vector.shape_cast %1288 : vector<8x128xf32> to vector<1x8x128xf32>
    tpu.vector_store %arg3[%c11_686, %1373, %c0_687], %1376 {strides = array<i32>} : memref<16x8x128xf32, #tpu.memory_space<vmem>>, vector<1x8x128xf32>,
    %c12_688 = arith.constant 12 : index
    %1377 = arith.index_cast %1 : i32 to index
    %c0_689 = arith.constant 0 : index
    %1378 = vector.load %arg3[%c12_688, %1377, %c0_689] : memref<16x8x128xf32, #tpu.memory_space<vmem>>, vector<1x8x128xf32>
    %1379 = vector.shape_cast %1378 : vector<1x8x128xf32> to vector<8x128xf32>
    %1380 = vector.shape_cast %1298 : vector<8x128xf32> to vector<1x8x128xf32>
    tpu.vector_store %arg3[%c12_688, %1377, %c0_689], %1380 {strides = array<i32>} : memref<16x8x128xf32, #tpu.memory_space<vmem>>, vector<1x8x128xf32>,
    %c13_690 = arith.constant 13 : index
    %1381 = arith.index_cast %1 : i32 to index
    %c0_691 = arith.constant 0 : index
    %1382 = vector.load %arg3[%c13_690, %1381, %c0_691] : memref<16x8x128xf32, #tpu.memory_space<vmem>>, vector<1x8x128xf32>
    %1383 = vector.shape_cast %1382 : vector<1x8x128xf32> to vector<8x128xf32>
    %1384 = vector.shape_cast %1308 : vector<8x128xf32> to vector<1x8x128xf32>
    tpu.vector_store %arg3[%c13_690, %1381, %c0_691], %1384 {strides = array<i32>} : memref<16x8x128xf32, #tpu.memory_space<vmem>>, vector<1x8x128xf32>,
    %c14_692 = arith.constant 14 : index
    %1385 = arith.index_cast %1 : i32 to index
    %c0_693 = arith.constant 0 : index
    %1386 = vector.load %arg3[%c14_692, %1385, %c0_693] : memref<16x8x128xf32, #tpu.memory_space<vmem>>, vector<1x8x128xf32>
    %1387 = vector.shape_cast %1386 : vector<1x8x128xf32> to vector<8x128xf32>
    %1388 = vector.shape_cast %1318 : vector<8x128xf32> to vector<1x8x128xf32>
    tpu.vector_store %arg3[%c14_692, %1385, %c0_693], %1388 {strides = array<i32>} : memref<16x8x128xf32, #tpu.memory_space<vmem>>, vector<1x8x128xf32>,
    %c15_694 = arith.constant 15 : index
    %1389 = arith.index_cast %1 : i32 to index
    %c0_695 = arith.constant 0 : index
    %1390 = vector.load %arg3[%c15_694, %1389, %c0_695] : memref<16x8x128xf32, #tpu.memory_space<vmem>>, vector<1x8x128xf32>
    %1391 = vector.shape_cast %1390 : vector<1x8x128xf32> to vector<8x128xf32>
    %1392 = vector.shape_cast %1328 : vector<8x128xf32> to vector<1x8x128xf32>
    tpu.vector_store %arg3[%c15_694, %1389, %c0_695], %1392 {strides = array<i32>} : memref<16x8x128xf32, #tpu.memory_space<vmem>>, vector<1x8x128xf32>,
    %c1_i32 = arith.constant 1 : i32
    return
  }
  func.func @transform_0(%arg0: i32) -> (i32, i32, i32) {
    %c0_i32 = arith.constant 0 : i32
    %c0_i32_0 = arith.constant 0 : i32
    %c0_i32_1 = arith.constant 0 : i32
    %c0_i32_2 = arith.constant 0 : i32
    return %c0_i32, %c0_i32_0, %c0_i32_1 : i32, i32, i32
  }
  func.func @transform_1(%arg0: i32) -> (i32, i32, i32) {
    %c0_i32 = arith.constant 0 : i32
    %c0_i32_0 = arith.constant 0 : i32
    %c0_i32_1 = arith.constant 0 : i32
    return %c0_i32, %arg0, %c0_i32_0 : i32, i32, i32
  }
  func.func @transform_2(%arg0: i32) -> (i32, i32, i32) {
    %c0_i32 = arith.constant 0 : i32
    %c0_i32_0 = arith.constant 0 : i32
    %c0_i32_1 = arith.constant 0 : i32
    return %c0_i32, %arg0, %c0_i32_0 : i32, i32, i32
  }
}

</mosaic_0001>

<bundles_post_ra>
// kernel: tpu_custom_call.1
= control target key start
LH: loop header
LB: loop body
LE: loop exit
PB: predicated region body
PF: predicated region fallthrough
CT: control target
= control target key end

     0   :  { %7 = vsyncpa [#allocation3], 0  ;;  %s1937_s0 = inlined_call_operand.hbm [shape: f32[312,8,128], index: 0, kind: input, shape index: {}]   ;;  %s1938_s1 = inlined_call_operand.hbm [shape: f32[3,8,128], index: 1, kind: input, shape index: {}]   ;;  %s1939_s2 = inlined_call_operand.hbm [shape: f32[16,8,128], index: 2, kind: output, shape index: {}]  }
   0x1   :  { %8 = vsyncpa [#allocation6], 0 }
   0x2   :  { %9 = vsyncpa [#allocation4], 0  ;;  %s1485_s9 = smov [#allocation2]  }
   0x3   :  { %s15_s10 = sshll.u32 %s1485_s9, 4  ;;  %s16_s10 = int_to_ptr.vmem [resolvable:$true] %s15_s10 }
   0x4   :  { %s1427_s11 = scalar_lea.vmem %s16_s10, 39936  ;;  %p1432_p1 = scmp.lt.s32.totalorder %s16_s10, %s16_s10 }
   0x5   :  { %p1428_p0 = scmp.ne.s32.totalorder %s16_s10, %s1427_s11  ;;  %p1433_p2 = scmp.lt.s32.totalorder %s1427_s11, %s1427_s11 }
   0x7   :  { %p1434_p3 = por %p1433_p2, %p1432_p1 }
   0x9   :  { %p1435_p4 = pnand %p1434_p3, %p1428_p0 }
   0xb   :  { %1438 = shalt.err (!%p1435_p4)
}
   0xc   :  { %s1486_s12 = smov 128   ;;  %s1487_s13 = smov 8  }
   0xd   :  { %21 = dma.hbm_to_vmem [thread:$0]  %s1937_s0, 39936, %s16_s10, [#allocation3], %s1486_s12, %s1486_s12, %s1487_s13  }
   0xe   :  { %s1488_s16 = smov [#allocation5]  }
   0xf   :  { %s27_s17 = sshll.u32 %s1488_s16, 4  ;;  %s28_s17 = int_to_ptr.vmem [resolvable:$true] %s27_s17 }
  0x10   :  { %s1447_s18 = scalar_lea.vmem %s28_s17, 384  ;;  %p1452_p6 = scmp.lt.s32.totalorder %s28_s17, %s28_s17 }
  0x11   :  { %p1448_p5 = scmp.ne.s32.totalorder %s28_s17, %s1447_s18  ;;  %p1453_p7 = scmp.lt.s32.totalorder %s1447_s18, %s1447_s18 }
  0x13   :  { %p1454_p8 = por %p1453_p7, %p1452_p6 }
  0x15   :  { %p1455_p9 = pnand %p1454_p8, %p1448_p5 }
  0x17   :  { %1458 = shalt.err (!%p1455_p9)
}
  0x18   :  { %33 = dma.hbm_to_vmem [thread:$0]  %s1938_s1, 384, %s28_s17, [#allocation6], %s1486_s12, %s1486_s12, %s1487_s13  }
  0x19   :  { %1479 = dma.done.wait [#allocation3], 39936  }
  0x1a   :  { %1480 = vsyncadd [#allocation3], 4294927360 }
  0x1b   :  { %1481 = dma.done.wait [#allocation6], 384  }
  0x1c   :  { %1482 = vsyncadd [#allocation6], 4294966912  ;;  %v1517_v0 = vld [vmem:[#allocation5] sm:$0xff]  ;;  %v1519_v1 = vld [vmem:[#allocation5 + $0x8] sm:$0xff]  ;;  %s1489_s0 = smov [#allocation7]  }
  0x1d   :  { %v1521_v2 = vld [vmem:[#allocation5 + $0x10] sm:$0xff]  ;;  %v47_v3 = vld [vmem:[#allocation2] sm:$0xff]  ;;  %v50_v4 = vld [vmem:[#allocation2 + $0x8] sm:$0xff]  ;;  %s1378_s1 = sshll.u32 %s1489_s0, 4  ;;  %s1379_s1 = int_to_ptr.vmem [resolvable:$true] %s1378_s1 }
  0x1e   :  { %v54_v5 = vld [vmem:[#allocation2 + $0x10] sm:$0xff]  ;;  %v48_v6 = vmul.f32 %v47_v3, %v1517_v0  ;;  %v51_v7 = vmul.f32 %v50_v4, %v1519_v1  ;;  %v61_v9 = vld [vmem:[#allocation2 + $0x18] sm:$0xff]  ;;  %v64_v10 = vld [vmem:[#allocation2 + $0x20] sm:$0xff]  ;;  %s1459_s21 = scalar_lea.vmem %s1379_s1, 2048  ;;  %p1464_p11 = scmp.lt.s32.totalorder %s1379_s1, %s1379_s1 }
  0x1f   :  { %v55_v8 = vmul.f32 %v54_v5, %v1521_v2  ;;  %v62_v11 = vmul.f32 %v61_v9, %v1517_v0  ;;  %v65_v12 = vmul.f32 %v64_v10, %v1519_v1  ;;  %v68_v13 = vld [vmem:[#allocation2 + $0x28] sm:$0xff]  ;;  %v75_v14 = vld [vmem:[#allocation2 + $0x30] sm:$0xff]  ;;  %v58_v16 = vld [vmem:[#allocation2 + $0xc0] sm:$0xff]  ;;  %p1460_p10 = scmp.ne.s32.totalorder %s1379_s1, %s1459_s21  ;;  %p1465_p12 = scmp.lt.s32.totalorder %s1459_s21, %s1459_s21 }
  0x20   :  { %v52_v15 = vadd.f32 %v51_v7, %v48_v6  ;;  %v69_v17 = vmul.f32 %v68_v13, %v1521_v2  ;;  %v76_v18 = vmul.f32 %v75_v14, %v1517_v0  ;;  %v78_v19 = vld [vmem:[#allocation2 + $0x38] sm:$0xff]  ;;  %v82_v20 = vld [vmem:[#allocation2 + $0x40] sm:$0xff]  ;;  %v89_v24 = vld [vmem:[#allocation2 + $0x48] sm:$0xff] }
  0x21   :  { %v66_v21 = vadd.f32 %v65_v12, %v62_v11  ;;  %v79_v22 = vmul.f32 %v78_v19, %v1519_v1  ;;  %v83_v23 = vmul.f32 %v82_v20, %v1521_v2  ;;  %v92_v25 = vld [vmem:[#allocation2 + $0x50] sm:$0xff]  ;;  %v96_v26 = vld [vmem:[#allocation2 + $0x58] sm:$0xff]  ;;  %v72_v28 = vld [vmem:[#allocation2 + $0xc8] sm:$0xff]  ;;  %v90_v29 = vmul.f32 %v89_v24, %v1517_v0  ;;  %p1466_p13 = por %p1465_p12, %p1464_p11 }
  0x22   :  { %v56_v27 = vadd.f32 %v55_v8, %v52_v15  ;;  %v93_v30 = vmul.f32 %v92_v25, %v1519_v1  ;;  %v97_v31 = vmul.f32 %v96_v26, %v1521_v2  ;;  %v103_v32 = vld [vmem:[#allocation2 + $0x60] sm:$0xff]  ;;  %v106_v33 = vld [vmem:[#allocation2 + $0x68] sm:$0xff]  ;;  %v86_v36 = vld [vmem:[#allocation2 + $0xd0] sm:$0xff] }
  0x23   :  { %v70_v34 = vadd.f32 %v69_v17, %v66_v21  ;;  %v80_v35 = vadd.f32 %v79_v22, %v76_v18  ;;  %v104_v37 = vmul.f32 %v103_v32, %v1517_v0  ;;  %v107_v38 = vmul.f32 %v106_v33, %v1519_v1  ;;  %v110_v39 = vld [vmem:[#allocation2 + $0x70] sm:$0xff]  ;;  %v117_v40 = vld [vmem:[#allocation2 + $0x78] sm:$0xff]  ;;  %v120_v46 = vld [vmem:[#allocation2 + $0x80] sm:$0xff]  ;;  %p1467_p0 = pnand %p1466_p13, %p1460_p10 }
  0x24   :  { %v1537_v41 = vadd.f32 %v58_v16, %v56_v27  ;;  %v94_v42 = vadd.f32 %v93_v30, %v90_v29  ;;  %v100_v43 = vld [vmem:[#allocation2 + $0xd8] sm:$0xff]  ;;  %v111_v44 = vmul.f32 %v110_v39, %v1521_v2  ;;  %v118_v45 = vmul.f32 %v117_v40, %v1517_v0  ;;  %v124_v47 = vld [vmem:[#allocation2 + $0x88] sm:$0xff]  ;;  %v131_v52 = vld [vmem:[#allocation2 + $0x90] sm:$0xff] }
  0x25   :  { %v1541_v48 = vadd.f32 %v72_v28, %v70_v34  ;;  %v84_v49 = vadd.f32 %v83_v23, %v80_v35  ;;  %v108_v50 = vadd.f32 %v107_v38, %v104_v37  ;;  %v121_v51 = vmul.f32 %v120_v46, %v1519_v1  ;;  %v134_v53 = vld [vmem:[#allocation2 + $0x98] sm:$0xff]  ;;  %v138_v54 = vld [vmem:[#allocation2 + $0xa0] sm:$0xff]  ;;  %v145_v60 = vld [vmem:[#allocation2 + $0xa8] sm:$0xff] }
  0x26   :  { %v98_v55 = vadd.f32 %v97_v31, %v94_v42  ;;  %v114_v56 = vld [vmem:[#allocation2 + $0xe0] sm:$0xff]  ;;  %v125_v57 = vmul.f32 %v124_v47, %v1521_v2  ;;  %v132_v58 = vmul.f32 %v131_v52, %v1517_v0  ;;  %v135_v59 = vmul.f32 %v134_v53, %v1519_v1  ;;  %v148_v61 = vld [vmem:[#allocation2 + $0xb0] sm:$0xff]  ;;  %v152_v5 = vld [vmem:[#allocation2 + $0xb8] sm:$0xff] }
  0x27   :  { %v87_v62 = vadd.f32 %v86_v36, %v84_v49  ;;  %v112_v63 = vadd.f32 %v111_v44, %v108_v50  ;;  %v122_v3 = vadd.f32 %v121_v51, %v118_v45  ;;  %v139_v4 = vmul.f32 %v138_v54, %v1521_v2  ;;  %v128_v12 = vld [vmem:[#allocation2 + $0xe8] sm:$0xff]  ;;  %v142_v19 = vld [vmem:[#allocation2 + $0xf0] sm:$0xff]  ;;  %v176_v35 = vld [vmem:[#allocation2 + $0x100] sm:$0xff] }
  0x28   :  { %v101_v6 = vadd.f32 %v100_v43, %v98_v55  ;;  %v136_v7 = vadd.f32 %v135_v59, %v132_v58  ;;  %v146_v8 = vmul.f32 %v145_v60, %v1517_v0  ;;  %v149_v9 = vmul.f32 %v148_v61, %v1519_v1  ;;  %v156_v1 = vld [vmem:[#allocation2 + $0xf8] sm:$0xff]  ;;  %v185_v36 = vld [vmem:[#allocation2 + $0x108] sm:$0xff]  ;;  %v194_v37 = vld [vmem:[#allocation2 + $0x110] sm:$0xff] }
  0x29   :  { %v115_v10 = vadd.f32 %v114_v56, %v112_v63  ;;  %v126_v11 = vadd.f32 %v125_v57, %v122_v3  ;;  %v153_v13 = vmul.f32 %v152_v5, %v1521_v2  ;;  %v158_v14 = vmul.f32 %v1537_v41, %v1537_v41  ;;  %v203_v38 = vld [vmem:[#allocation2 + $0x118] sm:$0xff]  ;;  %v212_v39 = vld [vmem:[#allocation2 + $0x120] sm:$0xff]  ;;  %v221_v40 = vld [vmem:[#allocation2 + $0x128] sm:$0xff] }
  0x2a   :  { %v140_v15 = vadd.f32 %v139_v4, %v136_v7  ;;  %v150_v16 = vadd.f32 %v149_v9, %v146_v8  ;;  %v159_v17 = vmul.f32 %v1541_v48, %v1541_v48  ;;  %v161_v18 = vmul.f32 %v87_v62, %v87_v62  ;;  %v230_v42 = vld [vmem:[#allocation2 + $0x130] sm:$0xff]  ;;  %v239_v43 = vld [vmem:[#allocation2 + $0x138] sm:$0xff]  ;;  %v180_v46 = vld [vmem:[#allocation2 + $0x140] sm:$0xff] }
  0x2b   :  { %v129_v20 = vadd.f32 %v128_v12, %v126_v11  ;;  %v163_v22 = vmul.f32 %v101_v6, %v101_v6  ;;  %v165_v25 = vmul.f32 %v115_v10, %v115_v10  ;;  %v189_v49 = vld [vmem:[#allocation2 + $0x148] sm:$0xff]  ;;  %v198_v52 = vld [vmem:[#allocation2 + $0x150] sm:$0xff]  ;;  %v207_v53 = vld [vmem:[#allocation2 + $0x158] sm:$0xff] }
  0x2c   :  { %v154_v21 = vadd.f32 %v153_v13, %v150_v16  ;;  %v160_v0 = vadd.f32 %v159_v17, %v158_v14  ;;  %v143_v23 = vadd.f32 %v142_v19, %v140_v15  ;;  %v216_v55 = vld [vmem:[#allocation2 + $0x160] sm:$0xff]  ;;  %v225_v3 = vld [vmem:[#allocation2 + $0x168] sm:$0xff]  ;;  %v234_v4 = vld [vmem:[#allocation2 + $0x170] sm:$0xff] }
  0x2d   :  { %v167_v27 = vmul.f32 %v129_v20, %v129_v20  ;;  %v243_v5 = vld [vmem:[#allocation2 + $0x178] sm:$0xff] }
  0x2e   :  { %v162_v24 = vadd.f32 %v161_v18, %v160_v0  ;;  %v157_v26 = vadd.f32 %v156_v1, %v154_v21  ;;  %v169_v29 = vmul.f32 %v143_v23, %v143_v23  ;;  %v251_v21 = vld [vmem:[#allocation2 + $0x188] sm:$0xff] }
  0x30   :  { %v164_v2 = vadd.f32 %v163_v22, %v162_v24  ;;  %v171_v31 = vmul.f32 %v157_v26, %v157_v26 }
  0x32   :  { %v166_v28 = vadd.f32 %v165_v25, %v164_v2 }
  0x34   :  { %v168_v30 = vadd.f32 %v167_v27, %v166_v28 }
  0x36   :  { %v170_v32 = vadd.f32 %v169_v29, %v168_v30  ;;  %v259_v29 = vld [vmem:[#allocation2 + $0x198] sm:$0xff]  ;;  %v282_v30 = vld [vmem:[#allocation2 + $0x1c0] sm:$0xff] }
  0x38   :  { %v172_v33 = vadd.f32 %v171_v31, %v170_v32  ;;  %v285_v31 = vld [vmem:[#allocation2 + $0x1c8] sm:$0xff] }
  0x3a   :  { %v173_v34 = vadd.f32 8e-05, %v172_v33 }
  0x3c   :  { %1413 = vrsqrt.f32 %v173_v34 }
  0x49   :  { %v1414_v44 = vpop.eup %1413 }
  0x4a   :  { %v177_v45 = vmul.f32 %v1414_v44, %v176_v35  ;;  %v186_v47 = vmul.f32 %v1414_v44, %v185_v36  ;;  %v195_v50 = vmul.f32 %v1414_v44, %v194_v37  ;;  %v204_v51 = vmul.f32 %v1414_v44, %v203_v38  ;;  %v263_v36 = vld [vmem:[#allocation2 + $0x1a0] sm:$0xff]  ;;  %v267_v37 = vld [vmem:[#allocation2 + $0x1a8] sm:$0xff]  ;;  %v289_v38 = vld [vmem:[#allocation2 + $0x1d0] sm:$0xff] }
  0x4b   :  { %v213_v54 = vmul.f32 %v1414_v44, %v212_v39  ;;  %v222_v56 = vmul.f32 %v1414_v44, %v221_v40  ;;  %v231_v57 = vmul.f32 %v1414_v44, %v230_v42  ;;  %v240_v58 = vmul.f32 %v1414_v44, %v239_v43  ;;  %v271_v40 = vld [vmem:[#allocation2 + $0x1b0] sm:$0xff]  ;;  %v275_v42 = vld [vmem:[#allocation2 + $0x1b8] sm:$0xff] }
  0x4c   :  { %v178_v59 = vmul.f32 %v177_v45, %v1537_v41  ;;  %v187_v60 = vmul.f32 %v186_v47, %v1541_v48  ;;  %v196_v61 = vmul.f32 %v195_v50, %v87_v62  ;;  %v205_v63 = vmul.f32 %v204_v51, %v101_v6  ;;  %v248_v41 = vld [vmem:[#allocation2 + $0x180] sm:$0xff]  ;;  %v255_v48 = vld [vmem:[#allocation2 + $0x190] sm:$0xff]  ;;  %v293_v43 = vld [vmem:[#allocation2 + $0x1d8] sm:$0xff] }
  0x4d   :  { %v214_v7 = vmul.f32 %v213_v54, %v115_v10  ;;  %v223_v8 = vmul.f32 %v222_v56, %v129_v20  ;;  %v232_v9 = vmul.f32 %v231_v57, %v143_v23  ;;  %v241_v11 = vmul.f32 %v240_v58, %v157_v26  ;;  %v319_v50 = vld [vmem:[#allocation2 + $0x208] sm:$0xff]  ;;  %v323_v51 = vld [vmem:[#allocation2 + $0x210] sm:$0xff] }
  0x4e   :  { %v181_v12 = vadd.f32 %v180_v46, %v178_v59  ;;  %v190_v13 = vadd.f32 %v189_v49, %v187_v60  ;;  %v199_v14 = vadd.f32 %v198_v52, %v196_v61  ;;  %v208_v15 = vadd.f32 %v207_v53, %v205_v63  ;;  %v316_v49 = vld [vmem:[#allocation2 + $0x200] sm:$0xff]  ;;  %v301_v56 = vld [vmem:[#allocation2 + $0x1e8] sm:$0xff]  ;;  %v305_v61 = vld [vmem:[#allocation2 + $0x1f0] sm:$0xff] }
  0x4f   :  { %v217_v16 = vadd.f32 %v216_v55, %v214_v7  ;;  %v226_v17 = vadd.f32 %v225_v3, %v223_v8  ;;  %v235_v18 = vadd.f32 %v234_v4, %v232_v9  ;;  %v244_v19 = vadd.f32 %v243_v5, %v241_v11  ;;  %v297_v55 = vld [vmem:[#allocation2 + $0x1e0] sm:$0xff]  ;;  %v309_v63 = vld [vmem:[#allocation2 + $0x1f8] sm:$0xff]  ;;  %v353_v11 = vld [vmem:[#allocation2 + $0x248] sm:$0xff] }
  0x50   :  { %v182_v62 = vmul.f32 0.2, %v181_v12  ;;  %v191_v6 = vmul.f32 0.2, %v190_v13  ;;  %v200_v0 = vmul.f32 0.2, %v199_v14 }
  0x51   :  { %v209_v22 = vmul.f32 0.2, %v208_v15  ;;  %v218_v1 = vmul.f32 0.2, %v217_v16  ;;  %v227_v10 = vmul.f32 0.2, %v226_v17 }
  0x52   :  { %v1557_v20 = vmax.f32 %v181_v12, %v182_v62  ;;  %v1559_v23 = vmax.f32 %v190_v13, %v191_v6  ;;  %v1561_v24 = vmax.f32 %v199_v14, %v200_v0  ;;  %v236_v25 = vmul.f32 0.2, %v235_v18  ;;  %v327_v3 = vld [vmem:[#allocation2 + $0x218] sm:$0xff]  ;;  %v350_v9 = vld [vmem:[#allocation2 + $0x240] sm:$0xff] }
  0x53   :  { %v1563_v26 = vmax.f32 %v208_v15, %v209_v22  ;;  %v1565_v2 = vmax.f32 %v217_v16, %v218_v1  ;;  %v1567_v27 = vmax.f32 %v226_v17, %v227_v10  ;;  %v245_v28 = vmul.f32 0.2, %v244_v19  ;;  %v331_v16 = vld [vmem:[#allocation2 + $0x220] sm:$0xff]  ;;  %v335_v17 = vld [vmem:[#allocation2 + $0x228] sm:$0xff]  ;;  %v361_v62 = vld [vmem:[#allocation2 + $0x258] sm:$0xff] }
  0x54   :  { %v1569_v32 = vmax.f32 %v235_v18, %v236_v25  ;;  %v249_v33 = vmul.f32 %v248_v41, %v1557_v20  ;;  %v252_v34 = vmul.f32 %v251_v21, %v1559_v23  ;;  %v256_v35 = vmul.f32 %v255_v48, %v1561_v24  ;;  %v357_v18 = vld [vmem:[#allocation2 + $0x250] sm:$0xff]  ;;  %v365_v25 = vld [vmem:[#allocation2 + $0x260] sm:$0xff] }
  0x55   :  { %v1574_v39 = vmax.f32 %v244_v19, %v245_v28  ;;  %v260_v45 = vmul.f32 %v259_v29, %v1563_v26  ;;  %v283_v46 = vmul.f32 %v282_v30, %v1557_v20  ;;  %v286_v47 = vmul.f32 %v285_v31, %v1559_v23  ;;  %v339_v22 = vld [vmem:[#allocation2 + $0x230] sm:$0xff]  ;;  %v384_v28 = vld [vmem:[#allocation2 + $0x280] sm:$0xff] }
  0x56   :  { %v253_v44 = vadd.f32 %v252_v34, %v249_v33  ;;  %v264_v52 = vmul.f32 %v263_v36, %v1565_v2  ;;  %v268_v53 = vmul.f32 %v267_v37, %v1567_v27  ;;  %v290_v54 = vmul.f32 %v289_v38, %v1561_v24  ;;  %v387_v34 = vld [vmem:[#allocation2 + $0x288] sm:$0xff]  ;;  %v343_v37 = vld [vmem:[#allocation2 + $0x238] sm:$0xff] }
  0x57   :  { %v272_v58 = vmul.f32 %v271_v40, %v1569_v32  ;;  %v287_v59 = vadd.f32 %v286_v47, %v283_v46  ;;  %v294_v60 = vmul.f32 %v293_v43, %v1563_v26  ;;  %v276_v4 = vmul.f32 %v275_v42, %v1574_v39  ;;  %v369_v42 = vld [vmem:[#allocation2 + $0x268] sm:$0xff]  ;;  %v391_v43 = vld [vmem:[#allocation2 + $0x290] sm:$0xff] }
  0x58   :  { %v257_v57 = vadd.f32 %v256_v35, %v253_v44  ;;  %v317_v5 = vmul.f32 %v316_v49, %v1557_v20  ;;  %v320_v7 = vmul.f32 %v319_v50, %v1559_v23  ;;  %v324_v8 = vmul.f32 %v323_v51, %v1561_v24  ;;  %v395_v49 = vld [vmem:[#allocation2 + $0x298] sm:$0xff] }
  0x59   :  { %v291_v13 = vadd.f32 %v290_v54, %v287_v59  ;;  %v298_v14 = vmul.f32 %v297_v55, %v1565_v2  ;;  %v302_v15 = vmul.f32 %v301_v56, %v1567_v27  ;;  %v306_v19 = vmul.f32 %v305_v61, %v1569_v32  ;;  %v373_v54 = vld [vmem:[#allocation2 + $0x270] sm:$0xff]  ;;  %v399_v61 = vld [vmem:[#allocation2 + $0x2a0] sm:$0xff] }
  0x5a   :  { %v261_v12 = vadd.f32 %v260_v45, %v257_v57  ;;  %v310_v41 = vmul.f32 %v309_v63, %v1574_v39  ;;  %v321_v21 = vadd.f32 %v320_v7, %v317_v5  ;;  %v328_v48 = vmul.f32 %v327_v3, %v1563_v26 }
  0x5b   :  { %v295_v0 = vadd.f32 %v294_v60, %v291_v13  ;;  %v351_v1 = vmul.f32 %v350_v9, %v1557_v20  ;;  %v354_v10 = vmul.f32 %v353_v11, %v1559_v23  ;;  %v332_v30 = vmul.f32 %v331_v16, %v1565_v2  ;;  %v425_v9 = vld [vmem:[#allocation2 + $0x2d0] sm:$0xff] }
  0x5c   :  { %v265_v6 = vadd.f32 %v264_v52, %v261_v12  ;;  %v325_v29 = vadd.f32 %v324_v8, %v321_v21  ;;  %v336_v31 = vmul.f32 %v335_v17, %v1567_v27  ;;  %v358_v33 = vmul.f32 %v357_v18, %v1561_v24  ;;  %v421_v8 = vld [vmem:[#allocation2 + $0x2c8] sm:$0xff]  ;;  %v407_v16 = vld [vmem:[#allocation2 + $0x2b0] sm:$0xff]  ;;  %v279_v17 = vld [vmem:[#allocation2 + $0x380] sm:$0xff] }
  0x5d   :  { %v299_v36 = vadd.f32 %v298_v14, %v295_v0  ;;  %v355_v38 = vadd.f32 %v354_v10, %v351_v1  ;;  %v362_v40 = vmul.f32 %v361_v62, %v1563_v26  ;;  %v340_v45 = vmul.f32 %v339_v22, %v1569_v32  ;;  %v411_v62 = vld [vmem:[#allocation2 + $0x2b8] sm:$0xff]  ;;  %v313_v0 = vld [vmem:[#allocation2 + $0x388] sm:$0xff] }
  0x5e   :  { %v269_v35 = vadd.f32 %v268_v53, %v265_v6  ;;  %v329_v44 = vadd.f32 %v328_v48, %v325_v29  ;;  %v366_v46 = vmul.f32 %v365_v25, %v1565_v2  ;;  %v385_v47 = vmul.f32 %v384_v28, %v1557_v20  ;;  %v377_v53 = vld [vmem:[#allocation2 + $0x278] sm:$0xff] }
  0x5f   :  { %v303_v51 = vadd.f32 %v302_v15, %v299_v36  ;;  %v359_v52 = vadd.f32 %v358_v33, %v355_v38  ;;  %v388_v55 = vmul.f32 %v387_v34, %v1559_v23  ;;  %v344_v57 = vmul.f32 %v343_v37, %v1574_v39  ;;  %v403_v15 = vld [vmem:[#allocation2 + $0x2a8] sm:$0xff]  ;;  %v429_v6 = vld [vmem:[#allocation2 + $0x2d8] sm:$0xff] }
  0x60   :  { %v273_v50 = vadd.f32 %v272_v58, %v269_v35  ;;  %v333_v56 = vadd.f32 %v332_v30, %v329_v44  ;;  %v370_v59 = vmul.f32 %v369_v42, %v1567_v27  ;;  %v392_v60 = vmul.f32 %v391_v43, %v1561_v24  ;;  %v418_v58 = vld [vmem:[#allocation2 + $0x2c0] sm:$0xff]  ;;  %v455_v33 = vld [vmem:[#allocation2 + $0x308] sm:$0xff] }
  0x61   :  { %v307_v63 = vadd.f32 %v306_v19, %v303_v51  ;;  %v363_v3 = vadd.f32 %v362_v40, %v359_v52  ;;  %v389_v5 = vadd.f32 %v388_v55, %v385_v47  ;;  %v396_v7 = vmul.f32 %v395_v49, %v1563_v26  ;;  %v433_v30 = vld [vmem:[#allocation2 + $0x2e0] sm:$0xff]  ;;  %v437_v38 = vld [vmem:[#allocation2 + $0x2e8] sm:$0xff]  ;;  %v459_v40 = vld [vmem:[#allocation2 + $0x310] sm:$0xff] }
  0x62   :  { %v277_v11 = vadd.f32 %v276_v4, %v273_v50  ;;  %v337_v12 = vadd.f32 %v336_v31, %v333_v56  ;;  %v374_v13 = vmul.f32 %v373_v54, %v1569_v32  ;;  %v378_v14 = vmul.f32 %v377_v53, %v1574_v39  ;;  %v452_v31 = vld [vmem:[#allocation2 + $0x300] sm:$0xff]  ;;  %v463_v47 = vld [vmem:[#allocation2 + $0x318] sm:$0xff]  ;;  %v347_v49 = vld [vmem:[#allocation2 + $0x390] sm:$0xff] }
  0x63   :  { %v311_v18 = vadd.f32 %v310_v41, %v307_v63  ;;  %v367_v21 = vadd.f32 %v366_v46, %v363_v3  ;;  %v393_v48 = vadd.f32 %v392_v60, %v389_v5  ;;  %v400_v19 = vmul.f32 %v399_v61, %v1565_v2  ;;  %v441_v46 = vld [vmem:[#allocation2 + $0x2f0] sm:$0xff]  ;;  %v445_v52 = vld [vmem:[#allocation2 + $0x2f8] sm:$0xff]  ;;  %v467_v55 = vld [vmem:[#allocation2 + $0x320] sm:$0xff] }
  0x64   :  { %v341_v22 = vadd.f32 %v340_v45, %v337_v12  ;;  %v419_v1 = vmul.f32 %v418_v58, %v1557_v20  ;;  %v422_v4 = vmul.f32 %v421_v8, %v1559_v23  ;;  %v426_v10 = vmul.f32 %v425_v9, %v1561_v24  ;;  %v486_v61 = vld [vmem:[#allocation2 + $0x340] sm:$0xff]  ;;  %v489_v63 = vld [vmem:[#allocation2 + $0x348] sm:$0xff]  ;;  %v381_v3 = vld [vmem:[#allocation2 + $0x398] sm:$0xff] }
  0x65   :  { %v371_v25 = vadd.f32 %v370_v59, %v367_v21  ;;  %v397_v28 = vadd.f32 %v396_v7, %v393_v48  ;;  %v404_v29 = vmul.f32 %v403_v15, %v1567_v27  ;;  %v408_v41 = vmul.f32 %v407_v16, %v1569_v32  ;;  %v471_v9 = vld [vmem:[#allocation2 + $0x328] sm:$0xff]  ;;  %v497_v16 = vld [vmem:[#allocation2 + $0x358] sm:$0xff]  ;;  %v475_v48 = vld [vmem:[#allocation2 + $0x330] sm:$0xff] }
  0x66   :  { %v1615_v34 = vadd.f32 %v279_v17, %v277_v11  ;;  %v412_v35 = vmul.f32 %v411_v62, %v1574_v39  ;;  %v423_v36 = vadd.f32 %v422_v4, %v419_v1  ;;  %v430_v37 = vmul.f32 %v429_v6, %v1563_v26  ;;  %v493_v11 = vld [vmem:[#allocation2 + $0x350] sm:$0xff]  ;;  %v415_v17 = vld [vmem:[#allocation2 + $0x3a0] sm:$0xff] }
  0x67   :  { %v1619_v42 = vadd.f32 %v313_v0, %v311_v18  ;;  %v345_v43 = vadd.f32 %v344_v57, %v341_v22  ;;  %v375_v44 = vadd.f32 %v374_v13, %v371_v25  ;;  %v401_v45 = vadd.f32 %v400_v19, %v397_v28  ;;  %v501_v6 = vld [vmem:[#allocation2 + $0x360] sm:$0xff]  ;;  %v479_v28 = vld [vmem:[#allocation2 + $0x338] sm:$0xff] }
  0x68   :  { %v427_v50 = vadd.f32 %v426_v10, %v423_v36  ;;  %v434_v51 = vmul.f32 %v433_v30, %v1565_v2  ;;  %v453_v54 = vmul.f32 %v452_v31, %v1557_v20  ;;  %v456_v53 = vmul.f32 %v455_v33, %v1559_v23  ;;  %v505_v30 = vld [vmem:[#allocation2 + $0x368] sm:$0xff] }
  0x69   :  { %v379_v56 = vadd.f32 %v378_v14, %v375_v44  ;;  %v405_v59 = vadd.f32 %v404_v29, %v401_v45  ;;  %v438_v60 = vmul.f32 %v437_v38, %v1567_v27  ;;  %v460_v57 = vmul.f32 %v459_v40, %v1561_v24  ;;  %v449_v40 = vld [vmem:[#allocation2 + $0x3a8] sm:$0xff] }
  0x6a   :  { %v431_v5 = vadd.f32 %v430_v37, %v427_v50  ;;  %v442_v7 = vmul.f32 %v441_v46, %v1569_v32  ;;  %v457_v58 = vadd.f32 %v456_v53, %v453_v54  ;;  %v464_v8 = vmul.f32 %v463_v47, %v1563_v26 }
  0x6b   :  { %v1628_v12 = vadd.f32 %v347_v49, %v345_v43  ;;  %v409_v13 = vadd.f32 %v408_v41, %v405_v59  ;;  %v446_v14 = vmul.f32 %v445_v52, %v1574_v39  ;;  %v468_v15 = vmul.f32 %v467_v55, %v1565_v2  ;;  %v513_v49 = vld [vmem:[#allocation2 + $0x378] sm:$0xff] }
  0x6c   :  { %v435_v18 = vadd.f32 %v434_v51, %v431_v5  ;;  %v461_v21 = vadd.f32 %v460_v57, %v457_v58  ;;  %v487_v19 = vmul.f32 %v486_v61, %v1557_v20  ;;  %v490_v62 = vmul.f32 %v489_v63, %v1559_v23  ;;  %v517_v58 = vld [vmem:[#allocation2 + $0x3b8] sm:$0xff] }
  0x6d   :  { %v1634_v0 = vadd.f32 %v381_v3, %v379_v56  ;;  %v413_v22 = vadd.f32 %v412_v35, %v409_v13  ;;  %v472_v1 = vmul.f32 %v471_v9, %v1567_v27  ;;  %v494_v4 = vmul.f32 %v493_v11, %v1561_v24  ;;  %v509_v24 = vld [vmem:[#allocation2 + $0x370] sm:$0xff] }
  0x6e   :  { %v439_v10 = vadd.f32 %v438_v60, %v435_v18  ;;  %v465_v25 = vadd.f32 %v464_v8, %v461_v21  ;;  %v491_v29 = vadd.f32 %v490_v62, %v487_v19  ;;  %v498_v41 = vmul.f32 %v497_v16, %v1563_v26  ;;  %v483_v56 = vld [vmem:[#allocation2 + $0x3b0] sm:$0xff]  ;;  %v546_v18 = vld [vmem:[#allocation2 + $0x3c8] sm:$0xff]  ;;  %v564_v21 = vld [vmem:[#allocation2 + $0x3d8] sm:$0xff] }
  0x6f   :  { %v1639_v31 = vadd.f32 %v415_v17, %v413_v22  ;;  %v476_v20 = vmul.f32 %v475_v48, %v1569_v32  ;;  %v502_v23 = vmul.f32 %v501_v6, %v1565_v2  ;;  %v519_v33 = vmul.f32 %v1615_v34, %v1615_v34  ;;  %v537_v17 = vld [vmem:[#allocation2 + $0x3c0] sm:$0xff] }
  0x70   :  { %v443_v35 = vadd.f32 %v442_v7, %v439_v10  ;;  %v469_v36 = vadd.f32 %v468_v15, %v465_v25  ;;  %v495_v37 = vadd.f32 %v494_v4, %v491_v29  ;;  %v520_v38 = vmul.f32 %v1619_v42, %v1619_v42  ;;  %v582_v4 = vld [vmem:[#allocation2 + $0x3e8] sm:$0xff]  ;;  %v591_v10 = vld [vmem:[#allocation2 + $0x3f0] sm:$0xff]  ;;  %v541_v25 = vld [vmem:[#allocation2 + $0x400] sm:$0xff] }
  0x71   :  { %v480_v26 = vmul.f32 %v479_v28, %v1574_v39  ;;  %v506_v43 = vmul.f32 %v505_v30, %v1567_v27  ;;  %v522_v44 = vmul.f32 %v1628_v12, %v1628_v12  ;;  %v524_v2 = vmul.f32 %v1634_v0, %v1634_v0  ;;  %v550_v28 = vld [vmem:[#allocation2 + $0x408] sm:$0xff]  ;;  %v559_v29 = vld [vmem:[#allocation2 + $0x410] sm:$0xff] }
  0x72   :  { %v447_v45 = vadd.f32 %v446_v14, %v443_v35  ;;  %v473_v46 = vadd.f32 %v472_v1, %v469_v36  ;;  %v499_v47 = vadd.f32 %v498_v41, %v495_v37  ;;  %v521_v50 = vadd.f32 %v520_v38, %v519_v33  ;;  %v573_v1 = vld [vmem:[#allocation2 + $0x3e0] sm:$0xff] }
  0x73   :  { %v510_v51 = vmul.f32 %v509_v24, %v1569_v32  ;;  %v526_v52 = vmul.f32 %v1639_v31, %v1639_v31  ;;  %v514_v59 = vmul.f32 %v513_v49, %v1574_v39  ;;  %v555_v39 = vld [vmem:[#allocation2 + $0x3d0] sm:$0xff] }
  0x74   :  { %v450_v54 = vadd.f32 %v449_v40, %v447_v45  ;;  %v477_v53 = vadd.f32 %v476_v20, %v473_v46  ;;  %v503_v55 = vadd.f32 %v502_v23, %v499_v47  ;;  %v523_v27 = vadd.f32 %v522_v44, %v521_v50  ;;  %v600_v40 = vld [vmem:[#allocation2 + $0x3f8] sm:$0xff]  ;;  %v577_v50 = vld [vmem:[#allocation2 + $0x420] sm:$0xff] }
  0x76   :  { %v481_v60 = vadd.f32 %v480_v26, %v477_v53  ;;  %v507_v57 = vadd.f32 %v506_v43, %v503_v55  ;;  %v525_v61 = vadd.f32 %v524_v2, %v523_v27  ;;  %v528_v63 = vmul.f32 %v450_v54, %v450_v54  ;;  %v568_v26 = vld [vmem:[#allocation2 + $0x418] sm:$0xff]  ;;  %v609_v53 = vld [vmem:[#allocation2 + $0x440] sm:$0xff]  ;;  %v646_v27 = vld [vmem:[#allocation2 + $0x488] sm:$0xff] }
  0x77   :  { %v643_v55 = vld [vmem:[#allocation2 + $0x480] sm:$0xff] }
  0x78   :  { %v484_v3 = vadd.f32 %v483_v56, %v481_v60  ;;  %v511_v5 = vadd.f32 %v510_v51, %v507_v57  ;;  %v527_v7 = vadd.f32 %v526_v52, %v525_v61  ;;  %v586_v51 = vld [vmem:[#allocation2 + $0x428] sm:$0xff]  ;;  %v595_v52 = vld [vmem:[#allocation2 + $0x430] sm:$0xff]  ;;  %v604_v61 = vld [vmem:[#allocation2 + $0x438] sm:$0xff] }
  0x7a   :  { %v515_v8 = vadd.f32 %v514_v59, %v511_v5  ;;  %v529_v32 = vadd.f32 %v528_v63, %v527_v7  ;;  %v530_v9 = vmul.f32 %v484_v3, %v484_v3  ;;  %v616_v5 = vld [vmem:[#allocation2 + $0x450] sm:$0xff] }
  0x7c   :  { %v518_v11 = vadd.f32 %v517_v58, %v515_v8  ;;  %v531_v13 = vadd.f32 %v530_v9, %v529_v32  ;;  %v650_v8 = vld [vmem:[#allocation2 + $0x490] sm:$0xff]  ;;  %v677_v32 = vld [vmem:[#allocation2 + $0x4c0] sm:$0xff]  ;;  %v680_v9 = vld [vmem:[#allocation2 + $0x4c8] sm:$0xff] }
  0x7e   :  { %v532_v14 = vmul.f32 %v518_v11, %v518_v11 }
  0x80   :  { %v533_v15 = vadd.f32 %v532_v14, %v531_v13 }
  0x82   :  { %v534_v16 = vadd.f32 8e-05, %v533_v15 }
  0x84   :  { %1415 = vrsqrt.f32 %v534_v16  ;;  %v714_v16 = vld [vmem:[#allocation2 + $0x508] sm:$0xff] }
  0x91   :  { %v1416_v48 = vpop.eup %1415 }
  0x92   :  { %v538_v19 = vmul.f32 %v1416_v48, %v537_v17  ;;  %v547_v62 = vmul.f32 %v1416_v48, %v546_v18  ;;  %v556_v6 = vmul.f32 %v1416_v48, %v555_v39  ;;  %v565_v22 = vmul.f32 %v1416_v48, %v564_v21 }
  0x93   :  { %v574_v23 = vmul.f32 %v1416_v48, %v573_v1  ;;  %v583_v33 = vmul.f32 %v1416_v48, %v582_v4  ;;  %v592_v35 = vmul.f32 %v1416_v48, %v591_v10  ;;  %v601_v46 = vmul.f32 %v1416_v48, %v600_v40  ;;  %v620_v48 = vld [vmem:[#allocation2 + $0x458] sm:$0xff]  ;;  %v684_v4 = vld [vmem:[#allocation2 + $0x4d0] sm:$0xff]  ;;  %v628_v40 = vld [vmem:[#allocation2 + $0x468] sm:$0xff] }
  0x94   :  { %v539_v41 = vmul.f32 %v538_v19, %v1615_v34  ;;  %v548_v30 = vmul.f32 %v547_v62, %v1619_v42  ;;  %v557_v20 = vmul.f32 %v556_v6, %v1628_v12  ;;  %v566_v38 = vmul.f32 %v565_v22, %v1634_v0  ;;  %v612_v0 = vld [vmem:[#allocation2 + $0x448] sm:$0xff]  ;;  %v654_v6 = vld [vmem:[#allocation2 + $0x498] sm:$0xff] }
  0x95   :  { %v575_v2 = vmul.f32 %v574_v23, %v1639_v31  ;;  %v584_v45 = vmul.f32 %v583_v33, %v450_v54  ;;  %v593_v34 = vmul.f32 %v592_v35, %v484_v3  ;;  %v602_v31 = vmul.f32 %v601_v46, %v518_v11  ;;  %v711_v11 = vld [vmem:[#allocation2 + $0x500] sm:$0xff]  ;;  %v748_v23 = vld [vmem:[#allocation2 + $0x548] sm:$0xff]  ;;  %v636_v46 = vld [vmem:[#allocation2 + $0x478] sm:$0xff] }
  0x96   :  { %v542_v36 = vadd.f32 %v541_v25, %v539_v41  ;;  %v551_v37 = vadd.f32 %v550_v28, %v548_v30  ;;  %v560_v24 = vadd.f32 %v559_v29, %v557_v20  ;;  %v569_v49 = vadd.f32 %v568_v26, %v566_v38  ;;  %v745_v28 = vld [vmem:[#allocation2 + $0x540] sm:$0xff]  ;;  %v718_v20 = vld [vmem:[#allocation2 + $0x510] sm:$0xff] }
  0x97   :  { %v578_v56 = vadd.f32 %v577_v50, %v575_v2  ;;  %v587_v59 = vadd.f32 %v586_v51, %v584_v45  ;;  %v596_v60 = vadd.f32 %v595_v52, %v593_v34  ;;  %v605_v15 = vadd.f32 %v604_v61, %v602_v31  ;;  %v752_v38 = vld [vmem:[#allocation2 + $0x550] sm:$0xff]  ;;  %v779_v61 = vld [vmem:[#allocation2 + $0x580] sm:$0xff] }
  0x98   :  { %v543_v43 = vmul.f32 0.2, %v542_v36  ;;  %v552_v44 = vmul.f32 0.2, %v551_v37  ;;  %v561_v47 = vmul.f32 0.2, %v560_v24 }
  0x99   :  { %v570_v57 = vmul.f32 0.2, %v569_v49  ;;  %v579_v13 = vmul.f32 0.2, %v578_v56  ;;  %v588_v14 = vmul.f32 0.2, %v587_v59 }
  0x9a   :  { %v1662_v42 = vmax.f32 %v542_v36, %v543_v43  ;;  %v1664_v12 = vmax.f32 %v551_v37, %v552_v44  ;;  %v1666_v54 = vmax.f32 %v560_v24, %v561_v47  ;;  %v597_v18 = vmul.f32 0.2, %v596_v60  ;;  %v624_v37 = vld [vmem:[#allocation2 + $0x460] sm:$0xff]  ;;  %v632_v26 = vld [vmem:[#allocation2 + $0x470] sm:$0xff]  ;;  %v688_v47 = vld [vmem:[#allocation2 + $0x4d8] sm:$0xff] }
  0x9b   :  { %v1672_v17 = vmax.f32 %v569_v49, %v570_v57  ;;  %v1680_v29 = vmax.f32 %v578_v56, %v579_v13  ;;  %v1682_v41 = vmax.f32 %v587_v59, %v588_v14  ;;  %v606_v30 = vmul.f32 0.2, %v605_v15  ;;  %v658_v44 = vld [vmem:[#allocation2 + $0x4a0] sm:$0xff]  ;;  %v756_v56 = vld [vmem:[#allocation2 + $0x558] sm:$0xff] }
  0x9c   :  { %v610_v63 = vmul.f32 %v609_v53, %v1662_v42  ;;  %v613_v3 = vmul.f32 %v612_v0, %v1664_v12  ;;  %v644_v7 = vmul.f32 %v643_v55, %v1662_v42  ;;  %v647_v58 = vmul.f32 %v646_v27, %v1664_v12  ;;  %v662_v0 = vld [vmem:[#allocation2 + $0x4a8] sm:$0xff]  ;;  %v722_v55 = vld [vmem:[#allocation2 + $0x518] sm:$0xff]  ;;  %v692_v13 = vld [vmem:[#allocation2 + $0x4e0] sm:$0xff] }
  0x9d   :  { %v617_v21 = vmul.f32 %v616_v5, %v1666_v54  ;;  %v651_v62 = vmul.f32 %v650_v8, %v1666_v54  ;;  %v678_v22 = vmul.f32 %v677_v32, %v1662_v42  ;;  %v681_v1 = vmul.f32 %v680_v9, %v1664_v12  ;;  %v670_v8 = vld [vmem:[#allocation2 + $0x4b8] sm:$0xff] }
  0x9e   :  { %v614_v39 = vadd.f32 %v613_v3, %v610_v63  ;;  %v648_v19 = vadd.f32 %v647_v58, %v644_v7  ;;  %v712_v10 = vmul.f32 %v711_v11, %v1662_v42  ;;  %v715_v25 = vmul.f32 %v714_v16, %v1664_v12  ;;  %v782_v63 = vld [vmem:[#allocation2 + $0x588] sm:$0xff]  ;;  %v786_v3 = vld [vmem:[#allocation2 + $0x590] sm:$0xff] }
  0x9f   :  { %v1684_v33 = vmax.f32 %v596_v60, %v597_v18  ;;  %v621_v36 = vmul.f32 %v620_v48, %v1672_v17  ;;  %v655_v24 = vmul.f32 %v654_v6, %v1672_v17  ;;  %v682_v2 = vadd.f32 %v681_v1, %v678_v22  ;;  %v666_v58 = vld [vmem:[#allocation2 + $0x4b0] sm:$0xff]  ;;  %v760_v48 = vld [vmem:[#allocation2 + $0x560] sm:$0xff] }
  0xa0   :  { %v618_v35 = vadd.f32 %v617_v21, %v614_v39  ;;  %v652_v43 = vadd.f32 %v651_v62, %v648_v19  ;;  %v685_v45 = vmul.f32 %v684_v4, %v1666_v54  ;;  %v746_v34 = vmul.f32 %v745_v28, %v1662_v42  ;;  %v696_v39 = vld [vmem:[#allocation2 + $0x4e8] sm:$0xff]  ;;  %v726_v21 = vld [vmem:[#allocation2 + $0x520] sm:$0xff] }
  0xa1   :  { %v716_v49 = vadd.f32 %v715_v25, %v712_v10  ;;  %v719_v50 = vmul.f32 %v718_v20, %v1666_v54  ;;  %v749_v51 = vmul.f32 %v748_v23, %v1664_v12  ;;  %v1692_v52 = vmax.f32 %v605_v15, %v606_v30  ;;  %v790_v25 = vld [vmem:[#allocation2 + $0x598] sm:$0xff]  ;;  %v813_v28 = vld [vmem:[#allocation2 + $0x5c0] sm:$0xff]  ;;  %v816_v30 = vld [vmem:[#allocation2 + $0x5c8] sm:$0xff] }
  0xa2   :  { %v625_v53 = vmul.f32 %v624_v37, %v1680_v29  ;;  %v753_v27 = vmul.f32 %v752_v38, %v1666_v54  ;;  %v629_v59 = vmul.f32 %v628_v40, %v1682_v41  ;;  %v1698_v60 = vmul.f32 %v632_v26, %v1684_v33  ;;  %v704_v37 = vld [vmem:[#allocation2 + $0x4f8] sm:$0xff]  ;;  %v820_v38 = vld [vmem:[#allocation2 + $0x5d0] sm:$0xff] }
  0xa3   :  { %v659_v31 = vmul.f32 %v658_v44, %v1680_v29  ;;  %v750_v57 = vadd.f32 %v749_v51, %v746_v34  ;;  %v622_v5 = vadd.f32 %v621_v36, %v618_v35  ;;  %v656_v7 = vadd.f32 %v655_v24, %v652_v43  ;;  %v700_v36 = vld [vmem:[#allocation2 + $0x4f0] sm:$0xff] }
  0xa4   :  { %v686_v32 = vadd.f32 %v685_v45, %v682_v2  ;;  %v689_v9 = vmul.f32 %v688_v47, %v1672_v17  ;;  %v720_v14 = vadd.f32 %v719_v50, %v716_v49  ;;  %v723_v15 = vmul.f32 %v722_v55, %v1672_v17  ;;  %v730_v2 = vld [vmem:[#allocation2 + $0x528] sm:$0xff] }
  0xa5   :  { %v754_v11 = vadd.f32 %v753_v27, %v750_v57  ;;  %v757_v16 = vmul.f32 %v756_v56, %v1672_v17  ;;  %v1705_v18 = vmul.f32 %v636_v46, %v1692_v52  ;;  %v780_v19 = vmul.f32 %v779_v61, %v1662_v42  ;;  %v764_v45 = vld [vmem:[#allocation2 + $0x568] sm:$0xff]  ;;  %v847_v27 = vld [vmem:[#allocation2 + $0x600] sm:$0xff] }
  0xa6   :  { %v783_v62 = vmul.f32 %v782_v63, %v1664_v12  ;;  %v787_v6 = vmul.f32 %v786_v3, %v1666_v54  ;;  %v663_v22 = vmul.f32 %v662_v0, %v1682_v41  ;;  %v667_v1 = vmul.f32 %v666_v58, %v1684_v33  ;;  %v794_v0 = vld [vmem:[#allocation2 + $0x5a0] sm:$0xff]  ;;  %v850_v56 = vld [vmem:[#allocation2 + $0x608] sm:$0xff]  ;;  %v734_v63 = vld [vmem:[#allocation2 + $0x530] sm:$0xff] }
  0xa7   :  { %v1713_v4 = vmul.f32 %v670_v8, %v1692_v52  ;;  %v693_v10 = vmul.f32 %v692_v13, %v1680_v29  ;;  %v626_v20 = vadd.f32 %v625_v53, %v622_v5  ;;  %v660_v23 = vadd.f32 %v659_v31, %v656_v7  ;;  %v824_v5 = vld [vmem:[#allocation2 + $0x5d8] sm:$0xff]  ;;  %v854_v7 = vld [vmem:[#allocation2 + $0x610] sm:$0xff] }
  0xa8   :  { %v690_v35 = vadd.f32 %v689_v9, %v686_v32  ;;  %v784_v24 = vadd.f32 %v783_v62, %v780_v19  ;;  %v724_v40 = vadd.f32 %v723_v15, %v720_v14  ;;  %v727_v26 = vmul.f32 %v726_v21, %v1680_v29  ;;  %v768_v13 = vld [vmem:[#allocation2 + $0x570] sm:$0xff]  ;;  %v738_v21 = vld [vmem:[#allocation2 + $0x538] sm:$0xff] }
  0xa9   :  { %v758_v43 = vadd.f32 %v757_v16, %v754_v11  ;;  %v761_v44 = vmul.f32 %v760_v48, %v1680_v29  ;;  %v791_v46 = vmul.f32 %v790_v25, %v1672_v17  ;;  %v814_v47 = vmul.f32 %v813_v28, %v1662_v42  ;;  %v881_v16 = vld [vmem:[#allocation2 + $0x640] sm:$0xff]  ;;  %v798_v48 = vld [vmem:[#allocation2 + $0x5a8] sm:$0xff] }
  0xaa   :  { %v788_v34 = vadd.f32 %v787_v6, %v784_v24  ;;  %v817_v49 = vmul.f32 %v816_v30, %v1664_v12  ;;  %v697_v50 = vmul.f32 %v696_v39, %v1682_v41  ;;  %v701_v51 = vmul.f32 %v700_v36, %v1684_v33  ;;  %v828_v30 = vld [vmem:[#allocation2 + $0x5e0] sm:$0xff]  ;;  %v772_v24 = vld [vmem:[#allocation2 + $0x578] sm:$0xff] }
  0xab   :  { %v1724_v53 = vmul.f32 %v704_v37, %v1692_v52  ;;  %v821_v55 = vmul.f32 %v820_v38, %v1666_v54  ;;  %v630_v31 = vadd.f32 %v629_v59, %v626_v20  ;;  %v664_v57 = vadd.f32 %v663_v22, %v660_v23  ;;  %v884_v22 = vld [vmem:[#allocation2 + $0x648] sm:$0xff]  ;;  %v858_v23 = vld [vmem:[#allocation2 + $0x618] sm:$0xff] }
  0xac   :  { %v694_v61 = vadd.f32 %v693_v10, %v690_v35  ;;  %v818_v3 = vadd.f32 %v817_v49, %v814_v47  ;;  %v728_v58 = vadd.f32 %v727_v26, %v724_v40  ;;  %v731_v8 = vmul.f32 %v730_v2, %v1682_v41  ;;  %v888_v40 = vld [vmem:[#allocation2 + $0x650] sm:$0xff]  ;;  %v862_v49 = vld [vmem:[#allocation2 + $0x620] sm:$0xff] }
  0xad   :  { %v762_v32 = vadd.f32 %v761_v44, %v758_v43  ;;  %v765_v9 = vmul.f32 %v764_v45, %v1682_v41  ;;  %v792_v14 = vadd.f32 %v791_v46, %v788_v34  ;;  %v795_v15 = vmul.f32 %v794_v0, %v1680_v29  ;;  %v832_v34 = vld [vmem:[#allocation2 + $0x5e8] sm:$0xff] }
  0xae   :  { %v848_v11 = vmul.f32 %v847_v27, %v1662_v42  ;;  %v851_v59 = vmul.f32 %v850_v56, %v1664_v12  ;;  %v735_v39 = vmul.f32 %v734_v63, %v1684_v33  ;;  %v822_v19 = vadd.f32 %v821_v55, %v818_v3  ;;  %v915_v56 = vld [vmem:[#allocation2 + $0x680] sm:$0xff] }
  0xaf   :  { %v825_v62 = vmul.f32 %v824_v5, %v1672_v17  ;;  %v855_v6 = vmul.f32 %v854_v7, %v1666_v54  ;;  %v634_v10 = vadd.f32 %v1698_v60, %v630_v31  ;;  %v668_v25 = vadd.f32 %v667_v1, %v664_v57  ;;  %v802_v1 = vld [vmem:[#allocation2 + $0x5b0] sm:$0xff]  ;;  %v918_v31 = vld [vmem:[#allocation2 + $0x688] sm:$0xff]  ;;  %v640_v57 = vld [vmem:[#allocation2 + $0x840] sm:$0xff] }
  0xb0   :  { %v698_v28 = vadd.f32 %v697_v50, %v694_v61  ;;  %v852_v20 = vadd.f32 %v851_v59, %v848_v11  ;;  %v732_v35 = vadd.f32 %v731_v8, %v728_v58  ;;  %v766_v36 = vadd.f32 %v765_v9, %v762_v32  ;;  %v892_v7 = vld [vmem:[#allocation2 + $0x658] sm:$0xff]  ;;  %v674_v58 = vld [vmem:[#allocation2 + $0x848] sm:$0xff] }
  0xb1   :  { %v769_v37 = vmul.f32 %v768_v13, %v1684_v33  ;;  %v882_v38 = vmul.f32 %v881_v16, %v1662_v42  ;;  %v739_v26 = vmul.f32 %v738_v21, %v1692_v52  ;;  %v796_v43 = vadd.f32 %v795_v15, %v792_v14  ;;  %v806_v13 = vld [vmem:[#allocation2 + $0x5b8] sm:$0xff]  ;;  %v836_v15 = vld [vmem:[#allocation2 + $0x5f0] sm:$0xff]  ;;  %v866_v59 = vld [vmem:[#allocation2 + $0x628] sm:$0xff] }
  0xb2   :  { %v799_v44 = vmul.f32 %v798_v48, %v1682_v41  ;;  %v885_v60 = vmul.f32 %v884_v22, %v1664_v12  ;;  %v826_v2 = vadd.f32 %v825_v62, %v822_v19  ;;  %v829_v45 = vmul.f32 %v828_v30, %v1680_v29  ;;  %v896_v19 = vld [vmem:[#allocation2 + $0x660] sm:$0xff]  ;;  %v952_v30 = vld [vmem:[#allocation2 + $0x6c8] sm:$0xff] }
  0xb3   :  { %v856_v46 = vadd.f32 %v855_v6, %v852_v20  ;;  %v859_v47 = vmul.f32 %v858_v23, %v1672_v17  ;;  %v638_v50 = vadd.f32 %v1705_v18, %v634_v10  ;;  %v773_v0 = vmul.f32 %v772_v24, %v1692_v52  ;;  %v742_v20 = vld [vmem:[#allocation2 + $0x858] sm:$0xff]  ;;  %v776_v23 = vld [vmem:[#allocation2 + $0x860] sm:$0xff] }
  0xb4   :  { %v886_v55 = vadd.f32 %v885_v60, %v882_v38  ;;  %v889_v27 = vmul.f32 %v888_v40, %v1666_v54  ;;  %v672_v61 = vadd.f32 %v1713_v4, %v668_v25  ;;  %v702_v63 = vadd.f32 %v701_v51, %v698_v28  ;;  %v922_v25 = vld [vmem:[#allocation2 + $0x690] sm:$0xff]  ;;  %v949_v28 = vld [vmem:[#allocation2 + $0x6c0] sm:$0xff]  ;;  %v840_v24 = vld [vmem:[#allocation2 + $0x5f8] sm:$0xff] }
  0xb5   :  { %v736_v3 = vadd.f32 %v735_v39, %v732_v35  ;;  %v770_v5 = vadd.f32 %v769_v37, %v766_v36  ;;  %v800_v8 = vadd.f32 %v799_v44, %v796_v43  ;;  %v803_v32 = vmul.f32 %v802_v1, %v1684_v33  ;;  %v708_v39 = vld [vmem:[#allocation2 + $0x850] sm:$0xff]  ;;  %v983_v60 = vld [vmem:[#allocation2 + $0x700] sm:$0xff]  ;;  %v986_v1 = vld [vmem:[#allocation2 + $0x708] sm:$0xff] }
  0xb6   :  { %v833_v18 = vmul.f32 %v832_v34, %v1682_v41  ;;  %v863_v9 = vmul.f32 %v862_v49, %v1680_v29  ;;  %v830_v14 = vadd.f32 %v829_v45, %v826_v2  ;;  %v860_v11 = vadd.f32 %v859_v47, %v856_v46  ;;  %v870_v44 = vld [vmem:[#allocation2 + $0x630] sm:$0xff]  ;;  %v900_v45 = vld [vmem:[#allocation2 + $0x668] sm:$0xff]  ;;  %v926_v46 = vld [vmem:[#allocation2 + $0x698] sm:$0xff] }
  0xb7   :  { %v916_v16 = vmul.f32 %v915_v56, %v1662_v42  ;;  %v919_v4 = vmul.f32 %v918_v31, %v1664_v12  ;;  %v1752_v51 = vadd.f32 %v640_v57, %v638_v50  ;;  %v890_v21 = vadd.f32 %v889_v27, %v886_v55  ;;  %v874_v56 = vld [vmem:[#allocation2 + $0x638] sm:$0xff]  ;;  %v956_v31 = vld [vmem:[#allocation2 + $0x6d0] sm:$0xff] }
  0xb8   :  { %v893_v48 = vmul.f32 %v892_v7, %v1672_v17  ;;  %v1755_v62 = vadd.f32 %v674_v58, %v672_v61  ;;  %v706_v6 = vadd.f32 %v1724_v53, %v702_v63  ;;  %v740_v22 = vadd.f32 %v739_v26, %v736_v3  ;;  %v904_v63 = vld [vmem:[#allocation2 + $0x670] sm:$0xff]  ;;  %v908_v3 = vld [vmem:[#allocation2 + $0x678] sm:$0xff]  ;;  %v1017_v58 = vld [vmem:[#allocation2 + $0x740] sm:$0xff] }
  0xb9   :  { %v774_v10 = vadd.f32 %v773_v0, %v770_v5  ;;  %v804_v35 = vadd.f32 %v803_v32, %v800_v8  ;;  %v807_v36 = vmul.f32 %v806_v13, %v1692_v52  ;;  %v837_v37 = vmul.f32 %v836_v15, %v1684_v33  ;;  %v810_v8 = vld [vmem:[#allocation2 + $0x868] sm:$0xff] }
  0xba   :  { %v867_v38 = vmul.f32 %v866_v59, %v1682_v41  ;;  %v834_v40 = vadd.f32 %v833_v18, %v830_v14  ;;  %v864_v43 = vadd.f32 %v863_v9, %v860_v11  ;;  %v897_v53 = vmul.f32 %v896_v19, %v1680_v29  ;;  %v990_v14 = vld [vmem:[#allocation2 + $0x710] sm:$0xff]  ;;  %v1020_v15 = vld [vmem:[#allocation2 + $0x748] sm:$0xff] }
  0xbb   :  { %v920_v26 = vadd.f32 %v919_v4, %v916_v16  ;;  %v894_v2 = vadd.f32 %v893_v48, %v890_v21  ;;  %v923_v34 = vmul.f32 %v922_v25, %v1666_v54  ;;  %v950_v47 = vmul.f32 %v949_v28, %v1662_v42  ;;  %v930_v16 = vld [vmem:[#allocation2 + $0x6a0] sm:$0xff]  ;;  %v934_v4 = vld [vmem:[#allocation2 + $0x6a8] sm:$0xff]  ;;  %v938_v28 = vld [vmem:[#allocation2 + $0x6b0] sm:$0xff] }
  0xbc   :  { %v953_v49 = vmul.f32 %v952_v30, %v1664_v12  ;;  %v1765_v50 = vadd.f32 %v708_v39, %v706_v6  ;;  %v1767_v0 = vadd.f32 %v742_v20, %v740_v22  ;;  %v1769_v55 = vadd.f32 %v776_v23, %v774_v10  ;;  %v960_v22 = vld [vmem:[#allocation2 + $0x6d8] sm:$0xff] }
  0xbd   :  { %v841_v27 = vmul.f32 %v840_v24, %v1692_v52  ;;  %v808_v57 = vadd.f32 %v807_v36, %v804_v35  ;;  %v871_v61 = vmul.f32 %v870_v44, %v1684_v33  ;;  %v984_v5 = vmul.f32 %v983_v60, %v1662_v42  ;;  %v1024_v35 = vld [vmem:[#allocation2 + $0x750] sm:$0xff]  ;;  %v1051_v36 = vld [vmem:[#allocation2 + $0x780] sm:$0xff]  ;;  %v994_v44 = vld [vmem:[#allocation2 + $0x718] sm:$0xff] }
  0xbe   :  { %v987_v7 = vmul.f32 %v986_v1, %v1664_v12  ;;  %v838_v32 = vadd.f32 %v837_v37, %v834_v40  ;;  %v868_v18 = vadd.f32 %v867_v38, %v864_v43  ;;  %v901_v9 = vmul.f32 %v900_v45, %v1682_v41  ;;  %v942_v43 = vld [vmem:[#allocation2 + $0x6b8] sm:$0xff] }
  0xbf   :  { %v927_v13 = vmul.f32 %v926_v46, %v1672_v17  ;;  %v898_v11 = vadd.f32 %v897_v53, %v894_v2  ;;  %v924_v59 = vadd.f32 %v923_v34, %v920_v26  ;;  %v954_v39 = vadd.f32 %v953_v49, %v950_v47  ;;  %v1054_v53 = vld [vmem:[#allocation2 + $0x788] sm:$0xff]  ;;  %v844_v26 = vld [vmem:[#allocation2 + $0x870] sm:$0xff]  ;;  %v964_v34 = vld [vmem:[#allocation2 + $0x6e0] sm:$0xff] }
  0xc0   :  { %v957_v21 = vmul.f32 %v956_v31, %v1666_v54  ;;  %v875_v48 = vmul.f32 %v874_v56, %v1692_v52  ;;  %v905_v19 = vmul.f32 %v904_v63, %v1684_v33  ;;  %v1781_v6 = vmul.f32 %v908_v3, %v1692_v52  ;;  %v1058_v46 = vld [vmem:[#allocation2 + $0x790] sm:$0xff]  ;;  %v1028_v63 = vld [vmem:[#allocation2 + $0x758] sm:$0xff] }
  0xc1   :  { %v1018_v10 = vmul.f32 %v1017_v58, %v1662_v42  ;;  %v1784_v25 = vadd.f32 %v810_v8, %v808_v57  ;;  %v988_v30 = vadd.f32 %v987_v7, %v984_v5  ;;  %v991_v20 = vmul.f32 %v990_v14, %v1666_v54  ;;  %v1085_v5 = vld [vmem:[#allocation2 + $0x7c0] sm:$0xff]  ;;  %v1088_v7 = vld [vmem:[#allocation2 + $0x7c8] sm:$0xff] }
  0xc2   :  { %v1021_v23 = vmul.f32 %v1020_v15, %v1664_v12  ;;  %v842_v37 = vadd.f32 %v841_v27, %v838_v32  ;;  %v872_v24 = vadd.f32 %v871_v61, %v868_v18  ;;  %v931_v38 = vmul.f32 %v930_v16, %v1680_v29  ;;  %v968_v18 = vld [vmem:[#allocation2 + $0x6e8] sm:$0xff] }
  0xc3   :  { %v935_v40 = vmul.f32 %v934_v4, %v1682_v41  ;;  %v902_v60 = vadd.f32 %v901_v9, %v898_v11  ;;  %v928_v1 = vadd.f32 %v927_v13, %v924_v59  ;;  %v958_v2 = vadd.f32 %v957_v21, %v954_v39  ;;  %v972_v9 = vld [vmem:[#allocation2 + $0x6f0] sm:$0xff]  ;;  %v998_v13 = vld [vmem:[#allocation2 + $0x720] sm:$0xff]  ;;  %v1062_v4 = vld [vmem:[#allocation2 + $0x798] sm:$0xff] }
  0xc4   :  { %v961_v45 = vmul.f32 %v960_v22, %v1672_v17  ;;  %v1792_v47 = vmul.f32 %v938_v28, %v1684_v33  ;;  %v1022_v49 = vadd.f32 %v1021_v23, %v1018_v10  ;;  %v1025_v27 = vmul.f32 %v1024_v35, %v1666_v54  ;;  %v1092_v39 = vld [vmem:[#allocation2 + $0x7d0] sm:$0xff]  ;;  %v878_v21 = vld [vmem:[#allocation2 + $0x878] sm:$0xff] }
  0xc5   :  { %v1052_v56 = vmul.f32 %v1051_v36, %v1662_v42  ;;  %v1797_v31 = vmul.f32 %v942_v43, %v1692_v52  ;;  %v992_v57 = vadd.f32 %v991_v20, %v988_v30  ;;  %v995_v61 = vmul.f32 %v994_v44, %v1672_v17  ;;  %v976_v22 = vld [vmem:[#allocation2 + $0x6f8] sm:$0xff]  ;;  %v1032_v36 = vld [vmem:[#allocation2 + $0x760] sm:$0xff] }
  0xc6   :  { %v1055_v3 = vmul.f32 %v1054_v53, %v1664_v12  ;;  %v1801_v58 = vadd.f32 %v844_v26, %v842_v37  ;;  %v876_v8 = vadd.f32 %v875_v48, %v872_v24  ;;  %v965_v32 = vmul.f32 %v964_v34, %v1680_v29  ;;  %v1119_v37 = vld [vmem:[#allocation2 + $0x800] sm:$0xff]  ;;  %v1002_v24 = vld [vmem:[#allocation2 + $0x728] sm:$0xff]  ;;  %v1096_v26 = vld [vmem:[#allocation2 + $0x7d8] sm:$0xff] }
  0xc7   :  { %v1059_v14 = vmul.f32 %v1058_v46, %v1666_v54  ;;  %v906_v15 = vadd.f32 %v905_v19, %v902_v60  ;;  %v932_v11 = vadd.f32 %v931_v38, %v928_v1  ;;  %v962_v59 = vadd.f32 %v961_v45, %v958_v2  ;;  %v1122_v60 = vld [vmem:[#allocation2 + $0x808] sm:$0xff]  ;;  %v1066_v46 = vld [vmem:[#allocation2 + $0x7a0] sm:$0xff] }
  0xc8   :  { %v1056_v16 = vadd.f32 %v1055_v3, %v1052_v56  ;;  %v1026_v10 = vadd.f32 %v1025_v27, %v1022_v49  ;;  %v1029_v28 = vmul.f32 %v1028_v63, %v1672_v17  ;;  %v1086_v48 = vmul.f32 %v1085_v5, %v1662_v42  ;;  %v1126_v49 = vld [vmem:[#allocation2 + $0x810] sm:$0xff]  ;;  %v1130_v3 = vld [vmem:[#allocation2 + $0x818] sm:$0xff] }
  0xc9   :  { %v1089_v30 = vmul.f32 %v1088_v7, %v1664_v12  ;;  %v969_v20 = vmul.f32 %v968_v18, %v1682_v41  ;;  %v973_v23 = vmul.f32 %v972_v9, %v1684_v33  ;;  %v996_v35 = vadd.f32 %v995_v61, %v992_v57  ;;  %v1006_v56 = vld [vmem:[#allocation2 + $0x730] sm:$0xff]  ;;  %v1036_v7 = vld [vmem:[#allocation2 + $0x768] sm:$0xff] }
  0xca   :  { %v999_v19 = vmul.f32 %v998_v13, %v1680_v29  ;;  %v1060_v38 = vadd.f32 %v1059_v14, %v1056_v16  ;;  %v1063_v43 = vmul.f32 %v1062_v4, %v1672_v17  ;;  %v1093_v53 = vmul.f32 %v1092_v39, %v1666_v54 }
  0xcb   :  { %v1090_v44 = vadd.f32 %v1089_v30, %v1086_v48  ;;  %v1813_v1 = vadd.f32 %v878_v21, %v876_v8  ;;  %v1816_v2 = vadd.f32 %v1781_v6, %v906_v15  ;;  %v936_v45 = vadd.f32 %v935_v40, %v932_v11  ;;  %v1070_v11 = vld [vmem:[#allocation2 + $0x7a8] sm:$0xff] }
  0xcc   :  { %v1819_v34 = vmul.f32 %v976_v22, %v1692_v52  ;;  %v966_v27 = vadd.f32 %v965_v32, %v962_v59  ;;  %v1030_v57 = vadd.f32 %v1029_v28, %v1026_v10  ;;  %v1033_v61 = vmul.f32 %v1032_v36, %v1680_v29  ;;  %v1100_v32 = vld [vmem:[#allocation2 + $0x7e0] sm:$0xff]  ;;  %v1010_v10 = vld [vmem:[#allocation2 + $0x738] sm:$0xff]  ;;  %v1040_v28 = vld [vmem:[#allocation2 + $0x770] sm:$0xff] }
  0xcd   :  { %v1120_v63 = vmul.f32 %v1119_v37, %v1662_v42  ;;  %v1003_v5 = vmul.f32 %v1002_v24, %v1682_v41  ;;  %v1094_v8 = vadd.f32 %v1093_v53, %v1090_v44  ;;  %v1097_v6 = vmul.f32 %v1096_v26, %v1672_v17  ;;  %v1074_v37 = vld [vmem:[#allocation2 + $0x7b0] sm:$0xff] }
  0xce   :  { %v1123_v40 = vmul.f32 %v1122_v60, %v1664_v12  ;;  %v1000_v18 = vadd.f32 %v999_v19, %v996_v35  ;;  %v1064_v9 = vadd.f32 %v1063_v43, %v1060_v38  ;;  %v1067_v13 = vmul.f32 %v1066_v46, %v1680_v29  ;;  %v1134_v12 = vld [vmem:[#allocation2 + $0x820] sm:$0xff]  ;;  %v1138_v46 = vld [vmem:[#allocation2 + $0x828] sm:$0xff] }
  0xcf   :  { %v1127_v14 = vmul.f32 %v1126_v49, %v1666_v54  ;;  %v940_v15 = vadd.f32 %v1792_v47, %v936_v45  ;;  %v1007_v42 = vmul.f32 %v1006_v56, %v1684_v33  ;;  %v1131_v16 = vmul.f32 %v1130_v3, %v1672_v17  ;;  %v912_v49 = vld [vmem:[#allocation2 + $0x880] sm:$0xff] }
  0xd0   :  { %v1124_v59 = vadd.f32 %v1123_v40, %v1120_v63  ;;  %v970_v4 = vadd.f32 %v969_v20, %v966_v27  ;;  %v1034_v39 = vadd.f32 %v1033_v61, %v1030_v57  ;;  %v1037_v21 = vmul.f32 %v1036_v7, %v1682_v41  ;;  %v1104_v20 = vld [vmem:[#allocation2 + $0x7e8] sm:$0xff]  ;;  %v1044_v27 = vld [vmem:[#allocation2 + $0x778] sm:$0xff]  ;;  %v1108_v61 = vld [vmem:[#allocation2 + $0x7f0] sm:$0xff] }
  0xd1   :  { %v1152_v22 = vmul.f32 %v1752_v51, %v1752_v51  ;;  %v1098_v48 = vadd.f32 %v1097_v6, %v1094_v8  ;;  %v1101_v54 = vmul.f32 %v1100_v32, %v1680_v29  ;;  %v1153_v30 = vmul.f32 %v1755_v62, %v1755_v62  ;;  %v946_v8 = vld [vmem:[#allocation2 + $0x888] sm:$0xff]  ;;  %v1078_v6 = vld [vmem:[#allocation2 + $0x7b8] sm:$0xff] }
  0xd2   :  { %v1128_v47 = vadd.f32 %v1127_v14, %v1124_v59  ;;  %v1004_v35 = vadd.f32 %v1003_v5, %v1000_v18  ;;  %v1068_v19 = vadd.f32 %v1067_v13, %v1064_v9  ;;  %v1071_v17 = vmul.f32 %v1070_v11, %v1682_v41  ;;  %v1142_v9 = vld [vmem:[#allocation2 + $0x830] sm:$0xff] }
  0xd3   :  { %v1155_v36 = vmul.f32 %v1765_v50, %v1765_v50  ;;  %v1135_v38 = vmul.f32 %v1134_v12, %v1680_v29  ;;  %v1154_v43 = vadd.f32 %v1153_v30, %v1152_v22  ;;  %v1157_v44 = vmul.f32 %v1767_v0, %v1767_v0 }
  0xd4   :  { %v1132_v24 = vadd.f32 %v1131_v16, %v1128_v47  ;;  %v974_v53 = vadd.f32 %v973_v23, %v970_v4  ;;  %v1011_v26 = vmul.f32 %v1010_v10, %v1692_v52  ;;  %v1038_v60 = vadd.f32 %v1037_v21, %v1034_v39  ;;  %v1112_v4 = vld [vmem:[#allocation2 + $0x7f8] sm:$0xff] }
  0xd5   :  { %v1041_v45 = vmul.f32 %v1040_v28, %v1684_v33  ;;  %v1102_v56 = vadd.f32 %v1101_v54, %v1098_v48  ;;  %v1105_v57 = vmul.f32 %v1104_v20, %v1682_v41  ;;  %v1156_v63 = vadd.f32 %v1155_v36, %v1154_v43  ;;  %v1146_v48 = vld [vmem:[#allocation2 + $0x838] sm:$0xff] }
  0xd6   :  { %v1159_v29 = vmul.f32 %v1769_v55, %v1769_v55  ;;  %v944_v3 = vadd.f32 %v1797_v31, %v940_v15  ;;  %v1008_v5 = vadd.f32 %v1007_v42, %v1004_v35  ;;  %v1072_v23 = vadd.f32 %v1071_v17, %v1068_v19  ;;  %v980_v42 = vld [vmem:[#allocation2 + $0x890] sm:$0xff] }
  0xd7   :  { %v1075_v7 = vmul.f32 %v1074_v37, %v1684_v33  ;;  %v1136_v40 = vadd.f32 %v1135_v38, %v1132_v24  ;;  %v1139_v18 = vmul.f32 %v1138_v46, %v1682_v41  ;;  %v1158_v13 = vadd.f32 %v1157_v44, %v1156_v63  ;;  %v1150_v63 = vld [vmem:[#allocation2 + $0x8b8] sm:$0xff] }
  0xd8   :  { %v1161_v32 = vmul.f32 %v1784_v25, %v1784_v25  ;;  %v1854_v14 = vadd.f32 %v912_v49, %v1816_v2  ;;  %v978_v11 = vadd.f32 %v1819_v34, %v974_v53  ;;  %v1045_v31 = vmul.f32 %v1044_v27, %v1692_v52  ;;  %v1014_v34 = vld [vmem:[#allocation2 + $0x898] sm:$0xff]  ;;  %v1116_v27 = vld [vmem:[#allocation2 + $0x8b0] sm:$0xff] }
  0xd9   :  { %v1109_v15 = vmul.f32 %v1108_v61, %v1684_v33  ;;  %v1042_v59 = vadd.f32 %v1041_v45, %v1038_v60  ;;  %v1106_v16 = vadd.f32 %v1105_v57, %v1102_v56  ;;  %v1160_v39 = vadd.f32 %v1159_v29, %v1158_v13 }
  0xda   :  { %v1163_v41 = vmul.f32 %v1801_v58, %v1801_v58  ;;  %v1861_v21 = vadd.f32 %v946_v8, %v944_v3  ;;  %v1012_v12 = vadd.f32 %v1011_v26, %v1008_v5  ;;  %v1079_v2 = vmul.f32 %v1078_v6, %v1692_v52  ;;  %v1082_v26 = vld [vmem:[#allocation2 + $0x8a8] sm:$0xff] }
  0xdb   :  { %v1143_v22 = vmul.f32 %v1142_v9, %v1684_v33  ;;  %v1076_v10 = vadd.f32 %v1075_v7, %v1072_v23  ;;  %v1140_v28 = vadd.f32 %v1139_v18, %v1136_v40  ;;  %v1162_v54 = vadd.f32 %v1161_v32, %v1160_v39  ;;  %v1048_v33 = vld [vmem:[#allocation2 + $0x8a0] sm:$0xff]  ;;  %v1240_v39 = vld [vmem:[#allocation2 + $0x8f0] sm:$0xff] }
  0xdc   :  { %v1165_v47 = vmul.f32 %v1813_v1, %v1813_v1  ;;  %v1867_v30 = vadd.f32 %v980_v42, %v978_v11  ;;  %v1113_v35 = vmul.f32 %v1112_v4, %v1692_v52  ;;  %v1046_v19 = vadd.f32 %v1045_v31, %v1042_v59  ;;  %v1186_v31 = vld [vmem:[#allocation2 + $0x8c0] sm:$0xff]  ;;  %v1204_v42 = vld [vmem:[#allocation2 + $0x8d0] sm:$0xff]  ;;  %v1213_v59 = vld [vmem:[#allocation2 + $0x8d8] sm:$0xff] }
  0xdd   :  { %v1110_v17 = vadd.f32 %v1109_v15, %v1106_v16  ;;  %v1164_v20 = vadd.f32 %v1163_v41, %v1162_v54  ;;  %v1167_v36 = vmul.f32 %v1854_v14, %v1854_v14  ;;  %v1872_v37 = vadd.f32 %v1014_v34, %v1012_v12  ;;  %v1195_v15 = vld [vmem:[#allocation2 + $0x8c8] sm:$0xff]  ;;  %v1222_v16 = vld [vmem:[#allocation2 + $0x8e0] sm:$0xff]  ;;  %v1249_v41 = vld [vmem:[#allocation2 + $0x8f8] sm:$0xff] }
  0xde   :  { %v1147_v24 = vmul.f32 %v1146_v48, %v1692_v52  ;;  %v1080_v38 = vadd.f32 %v1079_v2, %v1076_v10  ;;  %v1144_v43 = vadd.f32 %v1143_v22, %v1140_v28  ;;  %v1169_v53 = vmul.f32 %v1861_v21, %v1861_v21  ;;  %v1231_v4 = vld [vmem:[#allocation2 + $0x8e8] sm:$0xff]  ;;  %v1190_v22 = vld [vmem:[#allocation2 + $0x940] sm:$0xff]  ;;  %v1208_v54 = vld [vmem:[#allocation2 + $0x950] sm:$0xff] }
  0xdf   :  { %v1166_v44 = vadd.f32 %v1165_v47, %v1164_v20  ;;  %v1877_v60 = vadd.f32 %v1048_v33, %v1046_v19  ;;  %v1114_v45 = vadd.f32 %v1113_v35, %v1110_v17  ;;  %v1171_v49 = vmul.f32 %v1867_v30, %v1867_v30  ;;  %v1199_v10 = vld [vmem:[#allocation2 + $0x948] sm:$0xff]  ;;  %v1217_v47 = vld [vmem:[#allocation2 + $0x958] sm:$0xff]  ;;  %v1226_v19 = vld [vmem:[#allocation2 + $0x960] sm:$0xff] }
  0xe0   :  { %v1881_v56 = vadd.f32 %v1082_v26, %v1080_v38  ;;  %v1148_v57 = vadd.f32 %v1147_v24, %v1144_v43  ;;  %v1173_v52 = vmul.f32 %v1872_v37, %v1872_v37  ;;  %v1253_v26 = vld [vmem:[#allocation2 + $0x978] sm:$0xff] }
  0xe1   :  { %v1168_v46 = vadd.f32 %v1167_v36, %v1166_v44  ;;  %v1885_v29 = vadd.f32 %v1116_v27, %v1114_v45  ;;  %v1175_v5 = vmul.f32 %v1877_v60, %v1877_v60  ;;  %v1235_v44 = vld [vmem:[#allocation2 + $0x968] sm:$0xff] }
  0xe2   :  { %v1889_v23 = vadd.f32 %v1150_v63, %v1148_v57  ;;  %v1177_v8 = vmul.f32 %v1881_v56, %v1881_v56  ;;  %v1258_v57 = vld [vmem:[#allocation2 + $0x900] sm:$0xff]  ;;  %v1267_v63 = vld [vmem:[#allocation2 + $0x908] sm:$0xff] }
  0xe3   :  { %v1170_v61 = vadd.f32 %v1169_v53, %v1168_v46  ;;  %v1179_v40 = vmul.f32 %v1885_v29, %v1885_v29  ;;  %v1244_v53 = vld [vmem:[#allocation2 + $0x970] sm:$0xff] }
  0xe4   :  { %v1181_v9 = vmul.f32 %v1889_v23, %v1889_v23 }
  0xe5   :  { %v1172_v3 = vadd.f32 %v1171_v49, %v1170_v61 }
  0xe7   :  { %v1174_v7 = vadd.f32 %v1173_v52, %v1172_v3 }
  0xe9   :  { %v1176_v6 = vadd.f32 %v1175_v5, %v1174_v7  ;;  %v1276_v7 = vld [vmem:[#allocation2 + $0x910] sm:$0xff] }
  0xeb   :  { %v1178_v18 = vadd.f32 %v1177_v8, %v1176_v6 }
  0xed   :  { %v1180_v13 = vadd.f32 %v1179_v40, %v1178_v18 }
  0xef   :  { %v1182_v32 = vadd.f32 %v1181_v9, %v1180_v13 }
  0xf1   :  { %v1183_v11 = vadd.f32 0.00016, %v1182_v32 }
  0xf3   :  { %1417 = vrsqrt.f32 %v1183_v11 }
 0x100   :  { %v1897_v12 = vpop.eup %1417 }
 0x101   :  { %v1187_v2 = vmul.f32 %v1897_v12, %v1186_v31  ;;  %v1196_v34 = vmul.f32 %v1897_v12, %v1195_v15  ;;  %v1205_v28 = vmul.f32 %v1897_v12, %v1204_v42  ;;  %v1214_v48 = vmul.f32 %v1897_v12, %v1213_v59  ;;  %v1285_v31 = vld [vmem:[#allocation2 + $0x918] sm:$0xff]  ;;  %v1294_v15 = vld [vmem:[#allocation2 + $0x920] sm:$0xff]  ;;  %v1303_v42 = vld [vmem:[#allocation2 + $0x928] sm:$0xff] }
 0x102   :  { %v1223_v35 = vmul.f32 %v1897_v12, %v1222_v16  ;;  %v1232_v17 = vmul.f32 %v1897_v12, %v1231_v4  ;;  %v1241_v20 = vmul.f32 %v1897_v12, %v1240_v39  ;;  %v1250_v36 = vmul.f32 %v1897_v12, %v1249_v41  ;;  %v1262_v41 = vld [vmem:[#allocation2 + $0x980] sm:$0xff] }
 0x103   :  { %v1188_v33 = vmul.f32 %v1187_v2, %v1752_v51  ;;  %v1197_v24 = vmul.f32 %v1196_v34, %v1755_v62  ;;  %v1206_v38 = vmul.f32 %v1205_v28, %v1765_v50  ;;  %v1215_v43 = vmul.f32 %v1214_v48, %v1767_v0  ;;  %v1271_v2 = vld [vmem:[#allocation2 + $0x988] sm:$0xff] }
 0x104   :  { %v1224_v45 = vmul.f32 %v1223_v35, %v1769_v55  ;;  %v1233_v46 = vmul.f32 %v1232_v17, %v1784_v25  ;;  %v1242_v49 = vmul.f32 %v1241_v20, %v1801_v58  ;;  %v1251_v27 = vmul.f32 %v1250_v36, %v1813_v1  ;;  %v1280_v35 = vld [vmem:[#allocation2 + $0x990] sm:$0xff] }
 0x105   :  { %v1191_v61 = vadd.f32 %v1190_v22, %v1188_v33  ;;  %v1200_v51 = vadd.f32 %v1199_v10, %v1197_v24  ;;  %v1209_v52 = vadd.f32 %v1208_v54, %v1206_v38  ;;  %v1218_v62 = vadd.f32 %v1217_v47, %v1215_v43  ;;  %v1312_v22 = vld [vmem:[#allocation2 + $0x930] sm:$0xff]  ;;  %v1321_v54 = vld [vmem:[#allocation2 + $0x938] sm:$0xff]  ;;  %v1298_v24 = vld [vmem:[#allocation2 + $0x9a0] sm:$0xff] }
 0x106   :  { %v1227_v50 = vadd.f32 %v1226_v19, %v1224_v45  ;;  %v1236_v3 = vadd.f32 %v1235_v44, %v1233_v46  ;;  %v1245_v0 = vadd.f32 %v1244_v53, %v1242_v49  ;;  %v1254_v5 = vadd.f32 %v1253_v26, %v1251_v27  ;;  %v1307_v38 = vld [vmem:[#allocation2 + $0x9a8] sm:$0xff]  ;;  %v1316_v45 = vld [vmem:[#allocation2 + $0x9b0] sm:$0xff] }
 0x107   :  { %v1192_v8 = vmul.f32 0.2, %v1191_v61  ;;  %v1201_v6 = vmul.f32 0.2, %v1200_v51  ;;  %v1210_v55 = vmul.f32 0.2, %v1209_v52  ;;  %v1259_v25 = vmul.f32 %v1897_v12, %v1258_v57 }
 0x108   :  { %v1219_v40 = vmul.f32 0.2, %v1218_v62  ;;  %v1228_v58 = vmul.f32 0.2, %v1227_v50  ;;  %v1237_v18 = vmul.f32 0.2, %v1236_v3  ;;  %v1268_v1 = vmul.f32 %v1897_v12, %v1267_v63 }
 0x109   :  { %v1193_v9 = vmax.f32 %v1191_v61, %v1192_v8  ;;  %v1202_v13 = vmax.f32 %v1200_v51, %v1201_v6  ;;  %v1211_v32 = vmax.f32 %v1209_v52, %v1210_v55  ;;  %v1246_v11 = vmul.f32 0.2, %v1245_v0  ;;  %v1325_v61 = vld [vmem:[#allocation2 + $0x9b8] sm:$0xff] }
 0x10a   :  { %v1220_v59 = vmax.f32 %v1218_v62, %v1219_v40  ;;  %v1229_v16 = vmax.f32 %v1227_v50, %v1228_v58  ;;  %v1238_v4 = vmax.f32 %v1236_v3, %v1237_v18  ;;  %v1255_v39 = vmul.f32 0.2, %v1254_v5 }
 0x10b   :  { %1329 = vst [vmem:[#allocation7] sm:$0xff] %v1193_v9  ;;  %1331 = vst [vmem:[#allocation7 + $0x8] sm:$0xff] %v1202_v13  ;;  %v1247_v34 = vmax.f32 %v1245_v0, %v1246_v11  ;;  %v1260_v10 = vmul.f32 %v1259_v25, %v1854_v14  ;;  %v1269_v28 = vmul.f32 %v1268_v1, %v1861_v21  ;;  %v1289_v21 = vld [vmem:[#allocation2 + $0x998] sm:$0xff] }
 0x10c   :  { %1333 = vst [vmem:[#allocation7 + $0x10] sm:$0xff] %v1211_v32  ;;  %v1277_v48 = vmul.f32 %v1897_v12, %v1276_v7  ;;  %1336 = vst [vmem:[#allocation7 + $0x18] sm:$0xff] %v1220_v59  ;;  %v1256_v47 = vmax.f32 %v1254_v5, %v1255_v39  ;;  %v1286_v19 = vmul.f32 %v1897_v12, %v1285_v31 }
 0x10d   :  { %1339 = vst [vmem:[#allocation7 + $0x20] sm:$0xff] %v1229_v16  ;;  %1342 = vst [vmem:[#allocation7 + $0x28] sm:$0xff] %v1238_v4  ;;  %v1295_v17 = vmul.f32 %v1897_v12, %v1294_v15  ;;  %v1304_v20 = vmul.f32 %v1897_v12, %v1303_v42  ;;  %v1263_v36 = vadd.f32 %v1262_v41, %v1260_v10 }
 0x10e   :  { %1345 = vst [vmem:[#allocation7 + $0x30] sm:$0xff] %v1247_v34  ;;  %v1272_v33 = vadd.f32 %v1271_v2, %v1269_v28  ;;  %v1278_v14 = vmul.f32 %v1277_v48, %v1867_v30  ;;  %v1313_v43 = vmul.f32 %v1897_v12, %v1312_v22  ;;  %1348 = vst [vmem:[#allocation7 + $0x38] sm:$0xff] %v1256_v47 }
 0x10f   :  { %v1287_v44 = vmul.f32 %v1286_v19, %v1872_v37  ;;  %v1296_v53 = vmul.f32 %v1295_v17, %v1877_v60  ;;  %v1305_v26 = vmul.f32 %v1304_v20, %v1881_v56  ;;  %v1322_v46 = vmul.f32 %v1897_v12, %v1321_v54 }
 0x110   :  { %v1264_v49 = vmul.f32 0.2, %v1263_v36  ;;  %v1273_v27 = vmul.f32 0.2, %v1272_v33  ;;  %v1281_v57 = vadd.f32 %v1280_v35, %v1278_v14  ;;  %v1314_v30 = vmul.f32 %v1313_v43, %v1885_v29 }
 0x111   :  { %v1290_v51 = vadd.f32 %v1289_v21, %v1287_v44  ;;  %v1299_v52 = vadd.f32 %v1298_v24, %v1296_v53  ;;  %v1308_v62 = vadd.f32 %v1307_v38, %v1305_v26  ;;  %v1323_v63 = vmul.f32 %v1322_v46, %v1889_v23 }
 0x112   :  { %v1265_v50 = vmax.f32 %v1263_v36, %v1264_v49  ;;  %v1274_v37 = vmax.f32 %v1272_v33, %v1273_v27  ;;  %v1282_v3 = vmul.f32 0.2, %v1281_v57  ;;  %v1317_v60 = vadd.f32 %v1316_v45, %v1314_v30 }
 0x113   :  { %v1291_v0 = vmul.f32 0.2, %v1290_v51  ;;  %v1300_v56 = vmul.f32 0.2, %v1299_v52  ;;  %v1309_v5 = vmul.f32 0.2, %v1308_v62  ;;  %v1326_v7 = vadd.f32 %v1325_v61, %v1323_v63 }
 0x114   :  { %1351 = vst [vmem:[#allocation7 + $0x40] sm:$0xff] %v1265_v50  ;;  %1354 = vst [vmem:[#allocation7 + $0x48] sm:$0xff] %v1274_v37  ;;  %v1283_v12 = vmax.f32 %v1281_v57, %v1282_v3  ;;  %v1318_v8 = vmul.f32 0.2, %v1317_v60 }
 0x115   :  { %v1292_v29 = vmax.f32 %v1290_v51, %v1291_v0  ;;  %v1301_v6 = vmax.f32 %v1299_v52, %v1300_v56  ;;  %v1310_v55 = vmax.f32 %v1308_v62, %v1309_v5  ;;  %v1327_v25 = vmul.f32 0.2, %v1326_v7 }
 0x116   :  { %1357 = vst [vmem:[#allocation7 + $0x50] sm:$0xff] %v1283_v12  ;;  %v1319_v23 = vmax.f32 %v1317_v60, %v1318_v8 }
 0x117   :  { %1360 = vst [vmem:[#allocation7 + $0x58] sm:$0xff] %v1292_v29  ;;  %1363 = vst [vmem:[#allocation7 + $0x60] sm:$0xff] %v1301_v6  ;;  %v1328_v40 = vmax.f32 %v1326_v7, %v1327_v25 }
 0x118   :  { %1366 = vst [vmem:[#allocation7 + $0x68] sm:$0xff] %v1310_v55  ;;  %1369 = vst [vmem:[#allocation7 + $0x70] sm:$0xff] %v1319_v23 }
 0x119   :  { %1372 = vst [vmem:[#allocation7 + $0x78] sm:$0xff] %v1328_v40 }
 0x11a   :  { %1470 = shalt.err (!%p1467_p0)
}
 0x11b   :  { %1384 = dma.vmem_to_hbm [thread:$0]  %s1379_s1, 2048, %s1939_s2, [#allocation4], %s1486_s12, %s1486_s12, %s1487_s13  }
 0x11c   :  { %1483 = dma.done.wait [#allocation4], 2048  }
 0x11d   :  { %1484 = vsyncadd [#allocation4], 4294965248 }
 0x11e   :  { %1388 = vsyncpa [#allocation3], 1 }
 0x11f   :  { %1389 = vsyncpa [#allocation6], 1 }
 0x120   :  { %1390 = vsyncpa [#allocation4], 1 }

</bundles_post_ra>
